<compile_context>
chip_gen: v6e
topology: v6e:2x2x1
jax: 0.10.0
libtpu: 0.0.40
codegen_flags: <defaults>
</compile_context>

<pallas_src>
import jax
import jax.numpy as jnp
import numpy as np
from jax.experimental import pallas as pl
from jax.experimental.pallas import tpu as pltpu

C = 128      # channels fixed by the module (Conv2d(128, 128, ...))
K = 3        # kernel size
HALO = 2     # input row halo per side (two fused 3x3 convs)


def _vmem_capacity_bytes():
    try:
        return int(pltpu.get_tpu_info().vmem_capacity_bytes)
    except Exception:            # no TPU visible at trace time / interpret mode
        return 64 * 1024 * 1024  # conservative (v7x-sized) fallback


def _pick_row_tile(H, W, max_rows):
    """Largest divisor TH of H with TH*W <= max_rows."""
    th = 1
    for cand in range(1, H + 1):
        if H % cand == 0 and cand * W <= max_rows:
            th = cand
    return th


def _make_kernel(TH, W):
    R1 = TH + 2          # conv1 output rows per tile (1-row halo each side)
    Wp = W + 2           # padded width (1-column halo each side)

    def conv_taps(src, w_ref, rows):
        """3x3 conv as 3 MXU dots: per dy, (rows*W, 3C) @ (3C, C), f32 acc."""
        acc = None
        for dy in range(K):
            patch = jnp.concatenate(
                [src[dy:dy + rows, dx:dx + W, :] for dx in range(K)], axis=-1)
            patch = patch.reshape(rows * W, K * C)
            term = jnp.dot(patch, w_ref[dy],
                           preferred_element_type=jnp.float32)
            acc = term if acc is None else acc + term
        return acc

    def kernel(x_ref, w1_ref, b1_ref, w2_ref, b2_ref, out_ref, mid_ref):
        # x_ref:   (1, 1, TH+4, Wp, C) bf16  input row band (halo + width pad)
        # w*_ref:  (3, 3C, C)          bf16  dy-major, dx folded into K
        # b*_ref:  (1, C)              f32
        # out_ref: (1, TH, W, C)       f32
        # mid_ref: (R1, Wp, C)         f32   conv1 output, width-padded
        t = pl.program_id(1)
        xp = x_ref[0, 0]                                       # (TH+4, Wp, C)

        # ---- conv1: 3 accumulated K=384 MXU matmuls ----
        acc1 = conv_taps(xp, w1_ref, R1) + b1_ref[0][None, :]  # (R1*W, C) f32
        mid_ref[:, 1:W + 1, :] = acc1.reshape(R1, W, C)

        # conv2's zero padding: halo columns always; halo *rows* only at the
        # image top/bottom (interior bands carry real conv1 rows there).
        zcol = jnp.zeros((R1, 1, C), jnp.float32)
        mid_ref[:, 0:1, :] = zcol
        mid_ref[:, Wp - 1:Wp, :] = zcol

        zrow = jnp.zeros((1, Wp, C), jnp.float32)

        @pl.when(t == 0)
        def _():
            mid_ref[0:1, :, :] = zrow

        @pl.when(t == pl.num_programs(1) - 1)
        def _():
            mid_ref[R1 - 1:R1, :, :] = zrow

        # Single cast of the mid tile to bf16 (matches the reference, which
        # rounds conv1's output to bf16 before conv2).
        mp = mid_ref[...].astype(jnp.bfloat16)                 # (R1, Wp, C)

        # ---- conv2: 3 accumulated K=384 MXU matmuls ----
        acc2 = conv_taps(mp, w2_ref, TH) + b2_ref[0][None, :]  # (TH*W, C) f32
        out_ref[0] = acc2.reshape(TH, W, C).astype(out_ref.dtype)

    return kernel


def dual_gan_refinement(x_nchw, w1, b1, w2, b2):
    """Forward pass of DualGANRefinement.

    x_nchw: (N, 128, H, W) f32 (NCHW);  w1, w2: (128, 128, 3, 3) OIHW;  b: (128,)
    returns (N, 128, H, W) f32
    """
    N, Cin, H, W = x_nchw.shape
    assert Cin == C

    vmem_cap = _vmem_capacity_bytes()
    # Target output rows per band: big enough to amortize the ~0.35us/step
    # pipeline overhead, small enough to leave headroom on v7x (64 MiB VMEM).
    max_rows = 2048 if vmem_cap >= (96 << 20) else 1024
    if W > max_rows:
        raise NotImplementedError(
            f"W={W} exceeds the per-band row budget ({max_rows}); "
            "width tiling is not implemented")

    TH = _pick_row_tile(H, W, max_rows)
    T = H // TH
    # v7x has 2 TensorCores: avoid a degenerate single-point grid.
    if N * T < 2 and TH % 2 == 0:
        TH //= 2
        T = H // TH

    Hh = TH + 2 * HALO
    Wp = W + 2
    R1 = TH + 2

    # NCHW f32 -> NHWC bf16, pad (2 rows / 1 col per side), then gather the
    # overlapping row bands (XLA fuses transpose+cast+pad into the gather).
    x_nhwc = jnp.transpose(x_nchw, (0, 2, 3, 1)).astype(jnp.bfloat16)
    x_pad = jnp.pad(x_nhwc, ((0, 0), (HALO, HALO), (1, 1), (0, 0)))
    row_idx = (jnp.arange(T) * TH)[:, None] + jnp.arange(Hh)[None, :]  # (T, Hh)
    x_tiles = x_pad[:, row_idx]                     # (N, T, Hh, Wp, C)

    # OIHW -> (dy, dx*C + cin, cout): the 3 dx taps are folded into the
    # contraction dim so each dy is a single (3C, C) MXU matmul RHS.
    def repack(w):
        return (jnp.transpose(w, (2, 3, 1, 0))       # (dy, dx, cin, cout)
                .reshape(K, K * C, C).astype(jnp.bfloat16))

    w1p, w2p = repack(w1), repack(w2)
    b1p = b1.reshape(1, C).astype(jnp.float32)
    b2p = b2.reshape(1, C).astype(jnp.float32)

    # VMEM budget: double-buffered pipeline blocks + scratch + live values.
    M1 = R1 * W
    est = (2 * Hh * Wp * C * 2            # input block (bf16), double buffered
           + 2 * TH * W * C * 4           # output block (f32), double buffered
           + 2 * 2 * K * K * C * C * 2    # both weight tensors, double buffered
           + 4 * 2 * C * 4                # biases
           + R1 * Wp * C * 4              # mid scratch (f32)
           + M1 * (K * C * 2 + 2 * C * 4))  # live patch (bf16) + dot/acc (f32)
    # Generation-aware scoped-VMEM request (<= ~60% of physical: ~38 MiB on v7x).
    vmem_limit = min(int(0.6 * vmem_cap), max(32 << 20, 2 * est))
    assert est <= vmem_limit, ("row tile too large for VMEM budget", est, vmem_limit)

    kernel = _make_kernel(TH, W)

    out_nhwc = pl.pallas_call(
        kernel,
        out_shape=jax.ShapeDtypeStruct((N, H, W, C), jnp.float32),
        grid_spec=pltpu.PrefetchScalarGridSpec(
            num_scalar_prefetch=0,
            grid=(N, T),
            in_specs=[
                pl.BlockSpec((1, 1, Hh, Wp, C), lambda n, t: (n, t, 0, 0, 0)),
                pl.BlockSpec((K, K * C, C), lambda n, t: (0, 0, 0)),
                pl.BlockSpec((1, C), lambda n, t: (0, 0)),
                pl.BlockSpec((K, K * C, C), lambda n, t: (0, 0, 0)),
                pl.BlockSpec((1, C), lambda n, t: (0, 0)),
            ],
            out_specs=pl.BlockSpec((1, TH, W, C), lambda n, t: (n, t, 0, 0)),
            scratch_shapes=[pltpu.VMEM((R1, Wp, C), jnp.float32)],
        ),
        compiler_params=pltpu.CompilerParams(
            dimension_semantics=("parallel", "parallel"),
            vmem_limit_bytes=int(vmem_limit)),
    )(x_tiles, w1p, b1p, w2p, b2p)

    # NHWC -> NCHW to match the PyTorch output convention.
    return jnp.transpose(out_nhwc, (0, 3, 1, 2))


def _reference(x_nchw, w1, b1, w2, b2):
    """Pure-JAX reference emulating the kernel's bf16 rounding points."""
    rd = lambda a: a.astype(jnp.bfloat16).astype(jnp.float32)
    dn = jax.lax.conv_dimension_numbers(x_nchw.shape, w1.shape,
                                        ("NCHW", "OIHW", "NCHW"))
    y = jax.lax.conv_general_dilated(
        rd(x_nchw), rd(w1), (1, 1), ((1, 1), (1, 1)), dimension_numbers=dn,
        precision=jax.lax.Precision.HIGHEST)
    y = y + b1[None, :, None, None]
    z = jax.lax.conv_general_dilated(
        rd(y), rd(w2), (1, 1), ((1, 1), (1, 1)), dimension_numbers=dn,
        precision=jax.lax.Precision.HIGHEST)
    return z + b2[None, :, None, None]


if __name__ == "__main__":
    # Small shapes consistent with the module: channels fixed at 128.
    N, H, W = 2, 16, 16
    key = jax.random.PRNGKey(0)
    kx, kw1, kb1, kw2, kb2 = jax.random.split(key, 5)

    fan_in = C * K * K
    bound = 1.0 / np.sqrt(fan_in)
    x = jax.random.normal(kx, (N, C, H, W), dtype=jnp.float32)
    w1 = jax.random.uniform(kw1, (C, C, K, K), jnp.float32, -bound, bound)
    b1 = jax.random.uniform(kb1, (C,), jnp.float32, -bound, bound)
    w2 = jax.random.uniform(kw2, (C, C, K, K), jnp.float32, -bound, bound)
    b2 = jax.random.uniform(kb2, (C,), jnp.float32, -bound, bound)

    out = dual_gan_refinement(x, w1, b1, w2, b2)
    out = jax.block_until_ready(out)

    ref = jax.block_until_ready(_reference(x, w1, b1, w2, b2))
    assert out.shape == (N, C, H, W)
    if not np.allclose(np.asarray(out), np.asarray(ref), atol=1e-2, rtol=1e-2):
        diff = np.max(np.abs(np.asarray(out) - np.asarray(ref)))
        raise AssertionError(
            f"Pallas kernel does not match reference conv, max|d|={diff}")

    print("KERNEL_OK")
</pallas_src>

<mosaic_0001>
module attributes {stable_mosaic.version = 11 : i64} {
  func.func @kernel(%arg0: i32, %arg1: i32, %arg2: memref<1x1x20x18x128xbf16, #tpu.memory_space<vmem>>, %arg3: memref<3x384x128xbf16, #tpu.memory_space<vmem>>, %arg4: memref<1x128xf32, #tpu.memory_space<vmem>>, %arg5: memref<3x384x128xbf16, #tpu.memory_space<vmem>>, %arg6: memref<1x128xf32, #tpu.memory_space<vmem>>, %arg7: memref<1x16x16x128xf32, #tpu.memory_space<vmem>>, %arg8: memref<18x18x128xf32, #tpu.memory_space<vmem>>) attributes {dimension_semantics = [#tpu.dimension_semantics<parallel>, #tpu.dimension_semantics<parallel>], iteration_bounds = array<i64: 2, 1>, scalar_prefetch = 0 : i64, scratch_operands = 1 : i64, tpu.core_type = #tpu.core_type<tc>, window_params = [{transform_indices = @transform_0, window_bounds = array<i64: 1, 1, 20, 18, 128>}, {pipeline_mode = #tpu.pipeline_mode<synchronous>, transform_indices = @transform_1, window_bounds = array<i64: 3, 384, 128>}, {pipeline_mode = #tpu.pipeline_mode<synchronous>, transform_indices = @transform_2, window_bounds = array<i64: 1, 128>}, {pipeline_mode = #tpu.pipeline_mode<synchronous>, transform_indices = @transform_3, window_bounds = array<i64: 3, 384, 128>}, {pipeline_mode = #tpu.pipeline_mode<synchronous>, transform_indices = @transform_4, window_bounds = array<i64: 1, 128>}, {transform_indices = @transform_5, window_bounds = array<i64: 1, 16, 16, 128>}]} {
    %c0 = arith.constant 0 : index
    %c0_0 = arith.constant 0 : index
    %c0_1 = arith.constant 0 : index
    %c0_2 = arith.constant 0 : index
    %c0_3 = arith.constant 0 : index
    %0 = vector.load %arg2[%c0, %c0_0, %c0_1, %c0_2, %c0_3] : memref<1x1x20x18x128xbf16, #tpu.memory_space<vmem>>, vector<1x1x20x18x128xbf16>
    %1 = vector.shape_cast %0 : vector<1x1x20x18x128xbf16> to vector<20x18x128xbf16>
    %2 = vector.extract_strided_slice %1 {offsets = [0, 0, 0], sizes = [18, 16, 128], strides = [1, 1, 1]} : vector<20x18x128xbf16> to vector<18x16x128xbf16>
    %3 = vector.extract_strided_slice %1 {offsets = [0, 1, 0], sizes = [18, 16, 128], strides = [1, 1, 1]} : vector<20x18x128xbf16> to vector<18x16x128xbf16>
    %4 = vector.extract_strided_slice %1 {offsets = [0, 2, 0], sizes = [18, 16, 128], strides = [1, 1, 1]} : vector<20x18x128xbf16> to vector<18x16x128xbf16>
    %5 = tpu.concatenate %2, %3, %4 in 2 : vector<18x16x128xbf16>, vector<18x16x128xbf16>, vector<18x16x128xbf16> -> vector<18x16x384xbf16>
    %6 = vector.shape_cast %5 : vector<18x16x384xbf16> to vector<288x384xbf16>
    %c0_4 = arith.constant 0 : index
    %c0_5 = arith.constant 0 : index
    %c0_6 = arith.constant 0 : index
    %7 = vector.load %arg3[%c0_4, %c0_5, %c0_6] : memref<3x384x128xbf16, #tpu.memory_space<vmem>>, vector<1x384x128xbf16>
    %8 = vector.shape_cast %7 : vector<1x384x128xbf16> to vector<384x128xbf16>
    %cst = arith.constant dense<0.000000e+00> : vector<288x128xf32>
    %9 = tpu.matmul %6, %8, %cst {dimension_numbers = #tpu.dot_dimension_numbers<[1], [0], [0], [1], [0, 0, 1, 1], [], []>} : vector<288x384xbf16>, vector<384x128xbf16>, vector<288x128xf32> -> vector<288x128xf32>
    %10 = vector.extract_strided_slice %1 {offsets = [1, 0, 0], sizes = [18, 16, 128], strides = [1, 1, 1]} : vector<20x18x128xbf16> to vector<18x16x128xbf16>
    %11 = vector.extract_strided_slice %1 {offsets = [1, 1, 0], sizes = [18, 16, 128], strides = [1, 1, 1]} : vector<20x18x128xbf16> to vector<18x16x128xbf16>
    %12 = vector.extract_strided_slice %1 {offsets = [1, 2, 0], sizes = [18, 16, 128], strides = [1, 1, 1]} : vector<20x18x128xbf16> to vector<18x16x128xbf16>
    %13 = tpu.concatenate %10, %11, %12 in 2 : vector<18x16x128xbf16>, vector<18x16x128xbf16>, vector<18x16x128xbf16> -> vector<18x16x384xbf16>
    %14 = vector.shape_cast %13 : vector<18x16x384xbf16> to vector<288x384xbf16>
    %c1 = arith.constant 1 : index
    %c0_7 = arith.constant 0 : index
    %c0_8 = arith.constant 0 : index
    %15 = vector.load %arg3[%c1, %c0_7, %c0_8] : memref<3x384x128xbf16, #tpu.memory_space<vmem>>, vector<1x384x128xbf16>
    %16 = vector.shape_cast %15 : vector<1x384x128xbf16> to vector<384x128xbf16>
    %cst_9 = arith.constant dense<0.000000e+00> : vector<288x128xf32>
    %17 = tpu.matmul %14, %16, %cst_9 {dimension_numbers = #tpu.dot_dimension_numbers<[1], [0], [0], [1], [0, 0, 1, 1], [], []>} : vector<288x384xbf16>, vector<384x128xbf16>, vector<288x128xf32> -> vector<288x128xf32>
    %18 = arith.addf %9, %17 : vector<288x128xf32>
    %19 = vector.extract_strided_slice %1 {offsets = [2, 0, 0], sizes = [18, 16, 128], strides = [1, 1, 1]} : vector<20x18x128xbf16> to vector<18x16x128xbf16>
    %20 = vector.extract_strided_slice %1 {offsets = [2, 1, 0], sizes = [18, 16, 128], strides = [1, 1, 1]} : vector<20x18x128xbf16> to vector<18x16x128xbf16>
    %21 = vector.extract_strided_slice %1 {offsets = [2, 2, 0], sizes = [18, 16, 128], strides = [1, 1, 1]} : vector<20x18x128xbf16> to vector<18x16x128xbf16>
    %22 = tpu.concatenate %19, %20, %21 in 2 : vector<18x16x128xbf16>, vector<18x16x128xbf16>, vector<18x16x128xbf16> -> vector<18x16x384xbf16>
    %23 = vector.shape_cast %22 : vector<18x16x384xbf16> to vector<288x384xbf16>
    %c2 = arith.constant 2 : index
    %c0_10 = arith.constant 0 : index
    %c0_11 = arith.constant 0 : index
    %24 = vector.load %arg3[%c2, %c0_10, %c0_11] : memref<3x384x128xbf16, #tpu.memory_space<vmem>>, vector<1x384x128xbf16>
    %25 = vector.shape_cast %24 : vector<1x384x128xbf16> to vector<384x128xbf16>
    %cst_12 = arith.constant dense<0.000000e+00> : vector<288x128xf32>
    %26 = tpu.matmul %23, %25, %cst_12 {dimension_numbers = #tpu.dot_dimension_numbers<[1], [0], [0], [1], [0, 0, 1, 1], [], []>} : vector<288x384xbf16>, vector<384x128xbf16>, vector<288x128xf32> -> vector<288x128xf32>
    %27 = arith.addf %18, %26 : vector<288x128xf32>
    %c0_13 = arith.constant 0 : index
    %c0_14 = arith.constant 0 : index
    %28 = vector.load %arg4[%c0_13, %c0_14] : memref<1x128xf32, #tpu.memory_space<vmem>>, vector<1x128xf32>
    %29 = vector.shape_cast %28 : vector<1x128xf32> to vector<128xf32>
    %30 = vector.shape_cast %29 : vector<128xf32> to vector<1x128xf32>
    %31 = vector.broadcast %30 : vector<1x128xf32> to vector<288x128xf32>
    %32 = arith.addf %27, %31 : vector<288x128xf32>
    %33 = vector.shape_cast %32 : vector<288x128xf32> to vector<18x16x128xf32>
    %c0_15 = arith.constant 0 : index
    %c1_16 = arith.constant 1 : index
    %c0_17 = arith.constant 0 : index
    %34 = vector.load %arg8[%c0_15, %c1_16, %c0_17] : memref<18x18x128xf32, #tpu.memory_space<vmem>>, vector<18x16x128xf32>
    tpu.vector_store %arg8[%c0_15, %c1_16, %c0_17], %33 {strides = array<i32>} : memref<18x18x128xf32, #tpu.memory_space<vmem>>, vector<18x16x128xf32>,
    %cst_18 = arith.constant 0.000000e+00 : f32
    %35 = vector.broadcast %cst_18 : f32 to vector<18x1x128xf32>
    %c0_19 = arith.constant 0 : index
    %c0_20 = arith.constant 0 : index
    %c0_21 = arith.constant 0 : index
    %36 = vector.load %arg8[%c0_19, %c0_20, %c0_21] : memref<18x18x128xf32, #tpu.memory_space<vmem>>, vector<18x1x128xf32>
    tpu.vector_store %arg8[%c0_19, %c0_20, %c0_21], %35 {strides = array<i32>} : memref<18x18x128xf32, #tpu.memory_space<vmem>>, vector<18x1x128xf32>,
    %c0_22 = arith.constant 0 : index
    %c17 = arith.constant 17 : index
    %c0_23 = arith.constant 0 : index
    %37 = vector.load %arg8[%c0_22, %c17, %c0_23] : memref<18x18x128xf32, #tpu.memory_space<vmem>>, vector<18x1x128xf32>
    tpu.vector_store %arg8[%c0_22, %c17, %c0_23], %35 {strides = array<i32>} : memref<18x18x128xf32, #tpu.memory_space<vmem>>, vector<18x1x128xf32>,
    %cst_24 = arith.constant 0.000000e+00 : f32
    %38 = vector.broadcast %cst_24 : f32 to vector<1x18x128xf32>
    %c0_i32 = arith.constant 0 : i32
    %39 = arith.cmpi eq, %arg1, %c0_i32 : i32
    %40 = arith.extui %39 : i1 to i32
    %c0_i32_25 = arith.constant 0 : i32
    %41 = arith.cmpi ne, %40, %c0_i32_25 : i32
    scf.if %41 {
      %c0_49 = arith.constant 0 : index
      %c0_50 = arith.constant 0 : index
      %c0_51 = arith.constant 0 : index
      %82 = vector.load %arg8[%c0_49, %c0_50, %c0_51] : memref<18x18x128xf32, #tpu.memory_space<vmem>>, vector<1x18x128xf32>
      tpu.vector_store %arg8[%c0_49, %c0_50, %c0_51], %38 {strides = array<i32>} : memref<18x18x128xf32, #tpu.memory_space<vmem>>, vector<1x18x128xf32>,
    } else {
    }
    %c0_i32_26 = arith.constant 0 : i32
    %42 = arith.cmpi eq, %arg1, %c0_i32_26 : i32
    %43 = arith.extui %42 : i1 to i32
    %c0_i32_27 = arith.constant 0 : i32
    %44 = arith.cmpi ne, %43, %c0_i32_27 : i32
    scf.if %44 {
      %c17_49 = arith.constant 17 : index
      %c0_50 = arith.constant 0 : index
      %c0_51 = arith.constant 0 : index
      %82 = vector.load %arg8[%c17_49, %c0_50, %c0_51] : memref<18x18x128xf32, #tpu.memory_space<vmem>>, vector<1x18x128xf32>
      tpu.vector_store %arg8[%c17_49, %c0_50, %c0_51], %38 {strides = array<i32>} : memref<18x18x128xf32, #tpu.memory_space<vmem>>, vector<1x18x128xf32>,
    } else {
    }
    %c0_28 = arith.constant 0 : index
    %c0_29 = arith.constant 0 : index
    %c0_30 = arith.constant 0 : index
    %45 = vector.load %arg8[%c0_28, %c0_29, %c0_30] : memref<18x18x128xf32, #tpu.memory_space<vmem>>, vector<18x18x128xf32>
    %46 = arith.truncf %45 : vector<18x18x128xf32> to vector<18x18x128xbf16>
    %47 = vector.extract_strided_slice %46 {offsets = [0, 0, 0], sizes = [16, 16, 128], strides = [1, 1, 1]} : vector<18x18x128xbf16> to vector<16x16x128xbf16>
    %48 = vector.extract_strided_slice %46 {offsets = [0, 1, 0], sizes = [16, 16, 128], strides = [1, 1, 1]} : vector<18x18x128xbf16> to vector<16x16x128xbf16>
    %49 = vector.extract_strided_slice %46 {offsets = [0, 2, 0], sizes = [16, 16, 128], strides = [1, 1, 1]} : vector<18x18x128xbf16> to vector<16x16x128xbf16>
    %50 = tpu.concatenate %47, %48, %49 in 2 : vector<16x16x128xbf16>, vector<16x16x128xbf16>, vector<16x16x128xbf16> -> vector<16x16x384xbf16>
    %51 = vector.shape_cast %50 : vector<16x16x384xbf16> to vector<256x384xbf16>
    %c0_31 = arith.constant 0 : index
    %c0_32 = arith.constant 0 : index
    %c0_33 = arith.constant 0 : index
    %52 = vector.load %arg5[%c0_31, %c0_32, %c0_33] : memref<3x384x128xbf16, #tpu.memory_space<vmem>>, vector<1x384x128xbf16>
    %53 = vector.shape_cast %52 : vector<1x384x128xbf16> to vector<384x128xbf16>
    %cst_34 = arith.constant dense<0.000000e+00> : vector<256x128xf32>
    %54 = tpu.matmul %51, %53, %cst_34 {dimension_numbers = #tpu.dot_dimension_numbers<[1], [0], [0], [1], [0, 0, 1, 1], [], []>} : vector<256x384xbf16>, vector<384x128xbf16>, vector<256x128xf32> -> vector<256x128xf32>
    %55 = vector.extract_strided_slice %46 {offsets = [1, 0, 0], sizes = [16, 16, 128], strides = [1, 1, 1]} : vector<18x18x128xbf16> to vector<16x16x128xbf16>
    %56 = vector.extract_strided_slice %46 {offsets = [1, 1, 0], sizes = [16, 16, 128], strides = [1, 1, 1]} : vector<18x18x128xbf16> to vector<16x16x128xbf16>
    %57 = vector.extract_strided_slice %46 {offsets = [1, 2, 0], sizes = [16, 16, 128], strides = [1, 1, 1]} : vector<18x18x128xbf16> to vector<16x16x128xbf16>
    %58 = tpu.concatenate %55, %56, %57 in 2 : vector<16x16x128xbf16>, vector<16x16x128xbf16>, vector<16x16x128xbf16> -> vector<16x16x384xbf16>
    %59 = vector.shape_cast %58 : vector<16x16x384xbf16> to vector<256x384xbf16>
    %c1_35 = arith.constant 1 : index
    %c0_36 = arith.constant 0 : index
    %c0_37 = arith.constant 0 : index
    %60 = vector.load %arg5[%c1_35, %c0_36, %c0_37] : memref<3x384x128xbf16, #tpu.memory_space<vmem>>, vector<1x384x128xbf16>
    %61 = vector.shape_cast %60 : vector<1x384x128xbf16> to vector<384x128xbf16>
    %cst_38 = arith.constant dense<0.000000e+00> : vector<256x128xf32>
    %62 = tpu.matmul %59, %61, %cst_38 {dimension_numbers = #tpu.dot_dimension_numbers<[1], [0], [0], [1], [0, 0, 1, 1], [], []>} : vector<256x384xbf16>, vector<384x128xbf16>, vector<256x128xf32> -> vector<256x128xf32>
    %63 = arith.addf %54, %62 : vector<256x128xf32>
    %64 = vector.extract_strided_slice %46 {offsets = [2, 0, 0], sizes = [16, 16, 128], strides = [1, 1, 1]} : vector<18x18x128xbf16> to vector<16x16x128xbf16>
    %65 = vector.extract_strided_slice %46 {offsets = [2, 1, 0], sizes = [16, 16, 128], strides = [1, 1, 1]} : vector<18x18x128xbf16> to vector<16x16x128xbf16>
    %66 = vector.extract_strided_slice %46 {offsets = [2, 2, 0], sizes = [16, 16, 128], strides = [1, 1, 1]} : vector<18x18x128xbf16> to vector<16x16x128xbf16>
    %67 = tpu.concatenate %64, %65, %66 in 2 : vector<16x16x128xbf16>, vector<16x16x128xbf16>, vector<16x16x128xbf16> -> vector<16x16x384xbf16>
    %68 = vector.shape_cast %67 : vector<16x16x384xbf16> to vector<256x384xbf16>
    %c2_39 = arith.constant 2 : index
    %c0_40 = arith.constant 0 : index
    %c0_41 = arith.constant 0 : index
    %69 = vector.load %arg5[%c2_39, %c0_40, %c0_41] : memref<3x384x128xbf16, #tpu.memory_space<vmem>>, vector<1x384x128xbf16>
    %70 = vector.shape_cast %69 : vector<1x384x128xbf16> to vector<384x128xbf16>
    %cst_42 = arith.constant dense<0.000000e+00> : vector<256x128xf32>
    %71 = tpu.matmul %68, %70, %cst_42 {dimension_numbers = #tpu.dot_dimension_numbers<[1], [0], [0], [1], [0, 0, 1, 1], [], []>} : vector<256x384xbf16>, vector<384x128xbf16>, vector<256x128xf32> -> vector<256x128xf32>
    %72 = arith.addf %63, %71 : vector<256x128xf32>
    %c0_43 = arith.constant 0 : index
    %c0_44 = arith.constant 0 : index
    %73 = vector.load %arg6[%c0_43, %c0_44] : memref<1x128xf32, #tpu.memory_space<vmem>>, vector<1x128xf32>
    %74 = vector.shape_cast %73 : vector<1x128xf32> to vector<128xf32>
    %75 = vector.shape_cast %74 : vector<128xf32> to vector<1x128xf32>
    %76 = vector.broadcast %75 : vector<1x128xf32> to vector<256x128xf32>
    %77 = arith.addf %72, %76 : vector<256x128xf32>
    %78 = vector.shape_cast %77 : vector<256x128xf32> to vector<16x16x128xf32>
    %c0_45 = arith.constant 0 : index
    %c0_46 = arith.constant 0 : index
    %c0_47 = arith.constant 0 : index
    %c0_48 = arith.constant 0 : index
    %79 = vector.load %arg7[%c0_45, %c0_46, %c0_47, %c0_48] : memref<1x16x16x128xf32, #tpu.memory_space<vmem>>, vector<1x16x16x128xf32>
    %80 = vector.shape_cast %79 : vector<1x16x16x128xf32> to vector<16x16x128xf32>
    %81 = vector.shape_cast %78 : vector<16x16x128xf32> to vector<1x16x16x128xf32>
    tpu.vector_store %arg7[%c0_45, %c0_46, %c0_47, %c0_48], %81 {strides = array<i32>} : memref<1x16x16x128xf32, #tpu.memory_space<vmem>>, vector<1x16x16x128xf32>,
    return
  }
  func.func @transform_0(%arg0: i32, %arg1: i32) -> (i32, i32, i32, i32, i32) {
    %c0_i32 = arith.constant 0 : i32
    %c0_i32_0 = arith.constant 0 : i32
    %c0_i32_1 = arith.constant 0 : i32
    %c0_i32_2 = arith.constant 0 : i32
    return %arg0, %arg1, %c0_i32, %c0_i32_0, %c0_i32_1 : i32, i32, i32, i32, i32
  }
  func.func @transform_1(%arg0: i32, %arg1: i32) -> (i32, i32, i32) {
    %c0_i32 = arith.constant 0 : i32
    %c0_i32_0 = arith.constant 0 : i32
    %c0_i32_1 = arith.constant 0 : i32
    %c0_i32_2 = arith.constant 0 : i32
    return %c0_i32, %c0_i32_0, %c0_i32_1 : i32, i32, i32
  }
  func.func @transform_2(%arg0: i32, %arg1: i32) -> (i32, i32) {
    %c0_i32 = arith.constant 0 : i32
    %c0_i32_0 = arith.constant 0 : i32
    %c0_i32_1 = arith.constant 0 : i32
    return %c0_i32, %c0_i32_0 : i32, i32
  }
  func.func @transform_3(%arg0: i32, %arg1: i32) -> (i32, i32, i32) {
    %c0_i32 = arith.constant 0 : i32
    %c0_i32_0 = arith.constant 0 : i32
    %c0_i32_1 = arith.constant 0 : i32
    %c0_i32_2 = arith.constant 0 : i32
    return %c0_i32, %c0_i32_0, %c0_i32_1 : i32, i32, i32
  }
  func.func @transform_4(%arg0: i32, %arg1: i32) -> (i32, i32) {
    %c0_i32 = arith.constant 0 : i32
    %c0_i32_0 = arith.constant 0 : i32
    %c0_i32_1 = arith.constant 0 : i32
    return %c0_i32, %c0_i32_0 : i32, i32
  }
  func.func @transform_5(%arg0: i32, %arg1: i32) -> (i32, i32, i32, i32) {
    %c0_i32 = arith.constant 0 : i32
    %c0_i32_0 = arith.constant 0 : i32
    %c0_i32_1 = arith.constant 0 : i32
    return %arg0, %arg1, %c0_i32, %c0_i32_0 : i32, i32, i32, i32
  }
}

</mosaic_0001>

<bundles_post_ra>
// kernel: tpu_custom_call.1
= control target key start
LH: loop header
LB: loop body
LE: loop exit
PB: predicated region body
PF: predicated region fallthrough
CT: control target
= control target key end

     0   :  { %10 = vsyncpa [#allocation4], 0  ;;  %s8514_s0 = inlined_call_operand.vmem [shape: bf16[2,1,20,18,128], index: 0, kind: input, shape index: {}]   ;;  %s8515_s1 = inlined_call_operand.vmem [shape: bf16[3,384,128], index: 1, kind: input, shape index: {}]   ;;  %s8516_s2 = inlined_call_operand.vmem [shape: f32[1,128], index: 2, kind: input, shape index: {}]   ;;  %s8517_s3 = inlined_call_operand.hbm [shape: bf16[3,384,128], index: 3, kind: input, shape index: {}]   ;;  %s8518_s4 = inlined_call_operand.vmem [shape: f32[1,128], index: 4, kind: input, shape index: {}]   ;;  %s8519_s5 = inlined_call_operand.hbm [shape: f32[2,16,16,128], index: 5, kind: output, shape index: {}]  }
   0x1   :  { %11 = vsyncpa [#allocation5], 0 }
   0x2   :  { %13 = vsyncpa [#allocation5 + $0x1], 0  ;;  %s6348_s18 = smov 0   ;;  %s6350_s19 = smov 0  }
   0x3   :  { %s6352_s20 = smov 0   ;;  %s6354_s21 = smov 0  }
   0x4   :  { %s6356_s22 = smov 0   ;;  %s6358_s23 = smov 0  }
   0x5 LB: > { %s4842_s24 = sadd.s32 4294967295, %s6307_s23   ;;  %s4843_s25 = sadd.s32 4294967294, %s6307_s23   ;;  %s6307_s23 = sphi %s6358_s23, %s19_s23   ;;  %s6303_s22 = sphi %s6356_s22, %s8615_s22   ;;  %s6299_s21 = sphi %s6354_s21, %s8614_s21   ;;  %s6295_s20 = sphi %s6352_s20, %s8613_s20   ;;  %s6291_s19 = sphi %s6350_s19, %s8612_s19   ;;  %s6287_s18 = sphi %s6348_s18, %s8611_s18  }
   0x6   : > { %s31_s26 = sadd.s32 1, %s6303_s22  ;;  %s152_s27 = sadd.s32 1, %s6295_s20 }
   0x7   : > { %p33_p0 = scmp.ge.s32.totalorder %s31_s26, 2  ;;  %p162_p1 = scmp.ne.s32.totalorder %s6295_s20, %s6291_s19 }
   0x8   : > { %p163_p2 = scmp.eq.s32.totalorder %s4842_s24, 1  ;;  %p168_p3 = scmp.ne.s32.totalorder %s6291_s19, %s6287_s18 }
   0x9   : > { %s8617_s26 = smov (%p33_p0, %s31_s26), 0  ;;  %p169_p5 = scmp.eq.s32.totalorder %s4843_s25, 1 }
   0xa   : > { %p6388_p4 = por %p163_p2, %p162_p1  ;;  %s147_s29 = ssub.s32 %s6303_s22, %s8617_s26 }
   0xb   : > { %p4844_p6 = scmp.ge.s32.totalorder %s6307_s23, 1  ;;  %p150_p7 = scmp.eq.s32.totalorder %s147_s29, 0 }
   0xc   : > { %p6395_p8 = por %p169_p5, %p168_p3  ;;  %p176_p9 = scmp.lt.s32.totalorder %s6307_s23, 3 }
   0xd   : > { %s6401_s6 = scalar_select %p150_p7, %s6295_s20, %s152_s27  }
   0xe   : > { %p6403_p10 = pnand %p4844_p6, %p176_p9  ;;  %p6407_p11 = scmp.eq.s32.totalorder %s4842_s24, 0 }
   0xf   : > { %s6309_s9 = smov [#allocation3]  }
  0x10   : > { %p5932_p12 = pneg %p6403_p10  ;;  %s194_s10 = sshll.u32 %s6309_s9, 4  ;;  %s195_s10 = int_to_ptr.vmem [resolvable:$true] %s194_s10 }
  0x11   : > { %s6212_s11 = scalar_lea.vmem %s195_s10, 9216  ;;  %p6220_p5 = scmp.lt.s32.totalorder %s195_s10, %s195_s10 }
  0x12   : > { %p5933_p13 = pnand %p6407_p11, %p5932_p12  ;;  %p6213_p1 = scmp.ne.s32.totalorder %s195_s10, %s6212_s11 }
  0x13   : > { %p6221_p6 = scmp.lt.s32.totalorder %s6212_s11, %s6212_s11 }
  0x14   : > { %p6203_p0 = pneg %p5933_p13 }
  0x15   : > { %p6222_p7 = por %p6221_p6, %p6220_p5 }
  0x16   : > { %p6215_p2 = pnand %p6213_p1, %p6203_p0 }
  0x18   : > { %p6216_p3 = pneg %p6215_p2 }
  0x1a   : > { %p6223_p9 = pnand %p6222_p7, %p6216_p3 }
  0x1c   : > { %6226 = shalt.err (!%p6223_p9)
}
  0x1d   : > { %s6310_s12 = smov 64   ;;  %s6311_s13 = smov 4  }
  0x1e   : > { %5935 = dma.hbm_to_vmem [thread:$0]  (!%p5933_p13), %s8517_s3, 9216, %s195_s10, [#allocation4], %s6310_s12, %s6310_s12, %s6311_s13  }
  0x1f   : > { %225 = sbr.rel (%p6403_p10) target bundleno = 1076 (0x434), region = 40 }
  0x24   : > { %6278 = dma.done.wait (%p6407_p11), [#allocation4], 9216  }
  0x25   : > { %6280 = vsyncadd (%p6407_p11), [#allocation4], 4294958080  ;;  %v8520_v0 = vmov 0   ;;  %v5998_v1 = vld [vmem:[%s8515_s1 + $0xf8] sm:$0xff]   ;;  %v6000_v3 = vld [vmem:[%s8515_s1 + $0xf0] sm:$0xff]   ;;  %p257_p10 = scmp.lt.s32.totalorder %s6299_s21, 1 }
  0x26   : > { %1065 = vmatprep.subr.bf16.mxu0 %v8520_v0  ;;  %v5999_v2 = vld [vmem:[%s8515_s1 + $0x178] sm:$0xff]   ;;  %v6001_v4 = vld [vmem:[%s8515_s1 + $0x170] sm:$0xff]   ;;  %v6003_v5 = vld [vmem:[%s8515_s1 + $0x168] sm:$0xff]   ;;  %vm725_vm0 = vcmask 1046528   ;;  %vm490_vm1 = vsmask.f32 7424 }
  0x27   : > { %1066 = vmatpush1.bf16.msra.mxu0 %v5998_v1  ;;  %5625 = vmatprep.subr.bf16.mxu1 %v5999_v2  ;;  %v6002_v6 = vld [vmem:[%s8515_s1 + $0xe8] sm:$0xff]   ;;  %s258_s13 = scalar_select %p257_p10, %s6299_s21, 1  ;;  %v6005_v7 = vld [vmem:[%s8515_s1 + $0x160] sm:$0xff]   ;;  %v6007_v9 = vld [vmem:[%s8515_s1 + $0x158] sm:$0xff]  }
  0x28   : > { %1067 = vmatprep.subr.bf16.mxu0 %v8520_v0  ;;  %5626 = vmatpush3.bf16.msra.mxu1 %v5999_v2  ;;  %v6004_v8 = vld [vmem:[%s8515_s1 + $0xe0] sm:$0xff]   ;;  %v6006_v10 = vld [vmem:[%s8515_s1 + $0xd8] sm:$0xff]   ;;  %v6009_v11 = vld [vmem:[%s8515_s1 + $0x150] sm:$0xff]   ;;  %s254_s12 = sand.u32 1, %s6291_s19   ;;  %s5138_s17 = sshll.u32 %s6299_s21, 12 }
  0x29   : > { %5627 = vmatprep.subr.bf16.mxu1 %v6001_v4  ;;  %s5925_s24 = smul.u32 240, %s258_s13  ;;  %v6008_v14 = vld [vmem:[%s8515_s1 + $0xd0] sm:$0xff]   ;;  %v6010_v17 = vld [vmem:[%s8515_s1 + $0xc8] sm:$0xff]   ;;  %v6013_v24 = vld [vmem:[%s8515_s1 + $0x140] sm:$0xff]   ;;  %s4849_s13 = sshll.u32 %s254_s12, 8 }
  0x2a   : > { %v6011_v19 = vld [vmem:[%s8515_s1 + $0x148] sm:$0xff]   ;;  %v6012_v25 = vld [vmem:[%s8515_s1 + $0xc0] sm:$0xff]   ;;  %v6016_v31 = vld [vmem:[%s8515_s1 + $0x138] sm:$0xff]   ;;  %s8360_s16 = scalar_lea.vmem [#allocation6], %s4849_s13  ;;  %s8461_s29 = scalar_lea.hbm %s8519_s5, %s5138_s17 }
  0x2b   : > { %1068 = vmatpush1.bf16.msra.mxu0 %v6000_v3  ;;  %s6463_s10 = scalar_lea.vmem %s8514_s0, %s5925_s24  ;;  %v6025_v34 = vld [vmem:[%s8515_s1 + $0x38] sm:$0xff]   ;;  %v6019_v42 = vld [vmem:[%s8515_s1 + $0x130] sm:$0xff]   ;;  %v6022_v50 = vld [vmem:[%s8515_s1 + $0x128] sm:$0xff]   ;;  %s4748_s24 = sshll.u32 %s8360_s16, 4  ;;  %s8463_s24 = int_to_ptr.vmem [resolvable:$true] %s4748_s24 }
  0x2c   : > { %1069 = vmatprep.subr.bf16.mxu0 %v8520_v0  ;;  %5628 = vmatpush3.bf16.msra.mxu1 %v6001_v4  ;;  %v6470_v12 = vld [vmem:[%s6463_s10 + $0xc] sm:$0xff]   ;;  %v6015_v13 = vld [vmem:[%s6463_s10 + $0x14] ss:$0 sps:$4 sm:$0x11]   ;;  %v6492_v21 = vld [vmem:[%s6463_s10 + $0x18] sm:$0xff]   ;;  %s8469_s7 = scalar_lea.sflag [#allocation5], %s254_s12 }
  0x2d   : > { %5629 = vmatprep.subr.bf16.mxu1 %v6003_v5  ;;  %v729_v15 = vrot.slane %v6470_v12, 1  ;;  %v730_v16 = vrot.slane %v6015_v13, 1  ;;  %v6482_v18 = vld [vmem:[%s6463_s10 + $0x20] ss:$0 sps:$4 sm:$0x11]   ;;  %v6496_v22 = vld [vmem:[%s6463_s10 + $0x24] sm:$0xff]  }
  0x2e   : > { %v6499_v23 = vld [vmem:[%s6463_s10 + $0x2c] ss:$0 sps:$4 sm:$0x11]   ;;  %v732_v26 = vrot.slane %v6492_v21, 1  ;;  %v733_v27 = vrot.slane %v6482_v18, 1  ;;  %v506_v28 = vshll.u32 %v6470_v12, 16 }
  0x2f   : > { %1070 = vmatpush1.bf16.msra.mxu0 %v6002_v6  ;;  %v6488_v20 = vsel %vm725_vm0, %v729_v15, %v730_v16  ;;  %v735_v29 = vrot.slane %v6496_v22, 1  ;;  %v736_v30 = vrot.slane %v6499_v23, 1  ;;  %v6517_v32 = vld [vmem:[%s6463_s10 + $0x30] sm:$0xff]   ;;  %v6520_v33 = vld [vmem:[%s6463_s10 + $0x38] ss:$0 sps:$4 sm:$0x11]  }
  0x30   : > { %1071 = vmatprep.subr.bf16.mxu0 %v8520_v0  ;;  %5630 = vmatpush3.bf16.msra.mxu1 %v6003_v5  ;;  %v504_v35 = vshrl.u32 %v6470_v12, 16  ;;  %v6528_v36 = vld [vmem:[%s6463_s10 + $0x44] ss:$0 sps:$4 sm:$0x11]   ;;  %v508_v37 = vrot.slane %v506_v28, 1  ;;  %v6531_v38 = vsel %vm725_vm0, %v732_v26, %v733_v27  ;;  %v6534_v39 = vld [vmem:[%s6463_s10 + $0x3c] sm:$0xff]  }
  0x31   : > { %5631 = vmatprep.subr.bf16.mxu1 %v6005_v7  ;;  %5641 = vmatprep.mubr.bf16.mxu1 %v6488_v20  ;;  %v6537_v40 = vsel %vm725_vm0, %v735_v29, %v736_v30  ;;  %v511_v41 = vshll.u32 %v6015_v13, 16  ;;  %v738_v43 = vrot.slane %v6517_v32, 1  ;;  %v739_v44 = vrot.slane %v6520_v33, 1  ;;  %v6027_v46 = vld [vmem:[%s8515_s1 + $0x30] sm:$0xff]   ;;  %v6562_v52 = vld [vmem:[%s6463_s10 + $0x48] sm:$0xff]   ;;  %v6026_v59 = vld [vmem:[%s8515_s1 + $0x120] sm:$0xff]  }
  0x32   : > { %v509_v45 = vor.u32 %v508_v37, %v504_v35  ;;  %v741_v47 = vrot.slane %v6534_v39, 1  ;;  %v742_v48 = vrot.slane %v6528_v36, 1  ;;  %v6558_v51 = vld [vmem:[%s6463_s10 + $0x50] ss:$0 sps:$4 sm:$0x11]   ;;  %v6033_v55 = vld [vmem:[%s8515_s1 + $0x28] sm:$0xff]  }
  0x33   : > { %1072 = vmatpush1.bf16.msra.mxu0 %v6004_v8  ;;  %v513_v49 = vrot.slane %v511_v41, 1  ;;  %v6568_v54 = vsel %vm725_vm0, %v738_v43, %v739_v44  ;;  %v6579_v57 = vld [vmem:[%s6463_s10 + $0x54] sm:$0xff]   ;;  %v6582_v58 = vld [vmem:[%s6463_s10 + $0x5c] ss:$0 sps:$4 sm:$0x11]   ;;  %v744_v60 = vrot.slane %v6562_v52, 1 }
  0x34   : > { %1073 = vmatprep.subr.bf16.mxu0 %v8520_v0  ;;  %5632 = vmatpush3.bf16.msra.mxu1 %v6005_v7  ;;  %v6575_v56 = vsel %vm725_vm0, %v741_v47, %v742_v48  ;;  %v6030_v61 = vld [vmem:[%s8515_s1 + $0x118] sm:$0xff]   ;;  %v745_v62 = vrot.slane %v6558_v51, 1  ;;  %v6035_v63 = vld [vmem:[%s8515_s1 + $0x20] sm:$0xff]   ;;  %v747_v1 = vrot.slane %v6579_v57, 1  ;;  %v748_v2 = vrot.slane %v6582_v58, 1  ;;  %v6616_v8 = vld [vmem:[%s6463_s10 + $0x6c] sm:$0xff]  }
  0x35   : > { %5633 = vmatprep.subr.bf16.mxu1 %v6007_v9  ;;  %v6565_v53 = vsel %vm490_vm1, %v509_v45, %v513_v49  ;;  %v6602_v3 = vld [vmem:[%s6463_s10 + $0x60] sm:$0xff]   ;;  %v6605_v4 = vld [vmem:[%s6463_s10 + $0x68] ss:$0 sps:$4 sm:$0x11]   ;;  %v6041_v5 = vld [vmem:[%s8515_s1 + $0x18] sm:$0xff]   ;;  %v518_v6 = vshll.u32 %v6492_v21, 16 }
  0x36   : > { %1097 = vmatprep.mubr.bf16.mxu0 %v6565_v53  ;;  %v6613_v7 = vsel %vm725_vm0, %v744_v60, %v745_v62  ;;  %v750_v13 = vrot.slane %v6602_v3, 1  ;;  %v751_v15 = vrot.slane %v6605_v4, 1  ;;  %v6644_v26 = vld [vmem:[%s6463_s10 + $0x80] ss:$0 sps:$4 sm:$0x11]   ;;  %v6648_v27 = vld [vmem:[%s6463_s10 + $0x78] sm:$0xff]  }
  0x37   : > { %1074 = vmatpush1.bf16.msra.mxu0 %v6006_v10  ;;  %v6622_v10 = vsel %vm725_vm0, %v747_v1, %v748_v2  ;;  %v520_v16 = vrot.slane %v518_v6, 1  ;;  %v6049_v28 = vld [vmem:[%s8515_s1 + $0x8] sm:$0xff]   ;;  %v523_v29 = vshll.u32 %v6482_v18, 16  ;;  %v6042_v37 = vld [vmem:[%s8515_s1 + $0x100] sm:$0xff]   ;;  %v530_v18 = vshll.u32 %v6496_v22, 16  ;;  %v6046_v41 = vld [vmem:[%s8515_s1 + $0xb8] sm:$0xff]  }
  0x38   : > { %1075 = vmatprep.subr.bf16.mxu0 %v8520_v0  ;;  %5634 = vmatpush3.bf16.msra.mxu1 %v6007_v9  ;;  %v6034_v9 = vld [vmem:[%s8515_s1 + $0x110] sm:$0xff]   ;;  %v6655_v30 = vld [vmem:[%s6463_s10 + $0x8c] ss:$0 sps:$4 sm:$0x11]   ;;  %v757_v43 = vrot.slane %v6644_v26, 1  ;;  %v535_v62 = vshll.u32 %v6499_v23, 16 }
  0x39   : > { %5635 = vmatprep.subr.bf16.mxu1 %v6009_v11  ;;  %v525_v45 = vrot.slane %v523_v29, 1  ;;  %v760_v48 = vrot.slane %v6655_v30, 1  ;;  %v6686_v49 = vld [vmem:[%s6463_s10 + $0x90] sm:$0xff]   ;;  %v532_v60 = vrot.slane %v530_v18, 1  ;;  %v6061_v29 = vld [vmem:[%s8515_s1 + $0x68] sm:$0xff]   ;;  %s6227_s21 = scalar_lea.vmem %s8463_s24, 4096 }
  0x3a   : > { %v6062_v2 = vld [vmem:[%s8515_s1 + $0xb0] sm:$0xff]   ;;  %v762_v6 = vrot.slane %v6686_v49, 1  ;;  %v6715_v23 = vld [vmem:[%s6463_s10 + $0xa4] ss:$0 sps:$4 sm:$0x11]   ;;  %p6228_p11 = scmp.ne.s32.totalorder %s8463_s24, %s6227_s21 }
  0x3b   : > { %1076 = vmatpush1.bf16.msra.mxu0 %v6008_v14  ;;  %v516_v14 = vshrl.u32 %v6492_v21, 16 }
  0x3c   : > { %1077 = vmatprep.subr.bf16.mxu0 %v8520_v0  ;;  %5636 = vmatpush3.bf16.msra.mxu1 %v6009_v11  ;;  %v6626_v11 = vld [vmem:[%s6463_s10 + $0x74] ss:$0 sps:$4 sm:$0x11]   ;;  %p6229_p12 = pnand %p6228_p11, %p6388_p4 }
  0x3d   : > { %5637 = vmatprep.subr.bf16.mxu1 %v6011_v19  ;;  %v521_v44 = vor.u32 %v520_v16, %v516_v14  ;;  %v537_v14 = vrot.slane %v535_v62, 1  ;;  %v6056_v16 = vld [vmem:[%s8515_s1 + $0x70] sm:$0xff]   ;;  %v6769_v62 = vld [vmem:[%s6463_s10 + $0xc8] ss:$0 sps:$4 sm:$0x11]  }
  0x3e   : > { %p6230_p13 = pneg %p6229_p12 }
  0x3f   : > { %1078 = vmatpush1.bf16.msra.mxu0 %v6010_v17  ;;  %v6038_v17 = vld [vmem:[%s8515_s1 + $0x108] sm:$0xff]  }
  0x40   : > { %1079 = vmatprep.subr.bf16.mxu0 %v8520_v0  ;;  %5638 = vmatpush3.bf16.msra.mxu1 %v6011_v19  ;;  %v6043_v19 = vld [vmem:[%s8515_s1 + $0x10] sm:$0xff]  }
  0x41   : > { %5639 = vmatprep.subr.bf16.mxu1 %v6013_v24 }
  0x43   : > { %1080 = vmatpush1.bf16.msra.mxu0 %v6012_v25  ;;  %v754_v25 = vrot.slane %v6626_v11, 1 }
  0x44   : > { %1081 = vmatprep.subr.bf16.mxu0 %v8520_v0  ;;  %5640 = vmatpush3.bf16.msra.mxu1 %v6013_v24  ;;  %v753_v24 = vrot.slane %v6616_v8, 1 }
  0x45   : > { %1563 = vmatprep.subr.bf16.mxu1 %v8520_v0 }
  0x46   : > { %v6664_v35 = vsel %vm725_vm0, %v753_v24, %v754_v25  ;;  %v6729_v24 = vld [vmem:[%s6463_s10 + $0xb0] ss:$0 sps:$4 sm:$0x11]   ;;  %v6732_v25 = vld [vmem:[%s6463_s10 + $0xa8] sm:$0xff]  }
  0x47   : > { %1082 = vmatpush2.bf16.msra.mxu0 %v6016_v31  ;;  %5642 = vmatmul.mubr.bf16.vlgmr.msra.gmra.mxu1 %v6531_v38  ;;  %v6658_v31 = vsel %vm725_vm0, %v750_v13, %v751_v15  ;;  %v542_v15 = vshll.u32 %v6517_v32, 16 }
  0x48   : > { %1083 = vmatprep.subr.bf16.mxu0 %v8520_v0  ;;  %5645 = vmatprep.mubr.bf16.mxu1 %v6537_v40 }
  0x49   : > { %1564 = vmatpush1.bf16.msra.mxu1 %v6025_v34  ;;  %v6661_v34 = vld [vmem:[%s6463_s10 + $0x84] sm:$0xff]   ;;  %v544_v18 = vrot.slane %v542_v15, 1  ;;  %v559_v15 = vshll.u32 %v6528_v36, 16  ;;  %v6797_v36 = vld [vmem:[%s6463_s10 + $0xd4] ss:$0 sps:$4 sm:$0x11]  }
  0x4a   : > { %1565 = vmatprep.subr.bf16.mxu1 %v8520_v0  ;;  %v759_v47 = vrot.slane %v6661_v34, 1 }
  0x4b   : > { %1084 = vmatpush2.bf16.msra.mxu0 %v6019_v42  ;;  %v756_v42 = vrot.slane %v6648_v27, 1 }
  0x4c   : > { %1085 = vmatprep.subr.bf16.mxu0 %v8520_v0 }
  0x4d   : > { %1566 = vmatpush1.bf16.msra.mxu1 %v6027_v46  ;;  %v6050_v46 = vld [vmem:[%s8515_s1] sm:$0xff]   ;;  %v6703_v1 = vsel %vm725_vm0, %v756_v42, %v757_v43  ;;  %v6746_v43 = vld [vmem:[%s6463_s10 + $0xb4] sm:$0xff]  }
  0x4e   : > { %1567 = vmatprep.subr.bf16.mxu1 %v8520_v0 }
  0x4f   : > { %1086 = vmatpush2.bf16.msra.mxu0 %v6022_v50  ;;  %5646 = vmatmul.mubr.bf16.gmra.mxu1 %v6568_v54  ;;  %v6689_v50 = vld [vmem:[%s6463_s10 + $0x98] ss:$0 sps:$4 sm:$0x11]  }
  0x50   : > { %1087 = vmatprep.subr.bf16.mxu0 %v8520_v0  ;;  %5649 = vmatprep.mubr.bf16.mxu1 %v6575_v56 }
  0x51   : > { %1568 = vmatpush1.bf16.msra.mxu1 %v6033_v55  ;;  %v6055_v55 = vld [vmem:[%s8515_s1 + $0x78] sm:$0xff]  }
  0x52   : > { %1569 = vmatprep.subr.bf16.mxu1 %v8520_v0 }
  0x53   : > { %1088 = vmatpush2.bf16.msra.mxu0 %v6026_v59  ;;  %v528_v59 = vshrl.u32 %v6496_v22, 16 }
  0x54   : > { %1089 = vmatprep.subr.bf16.mxu0 %v8520_v0 }
  0x55   : > { %1570 = vmatpush1.bf16.msra.mxu1 %v6035_v63  ;;  %v6700_v63 = vld [vmem:[%s6463_s10 + $0x9c] sm:$0xff]   ;;  %v533_v13 = vor.u32 %v532_v60, %v528_v59  ;;  %v771_v59 = vrot.slane %v6746_v43, 1 }
  0x56   : > { %1571 = vmatprep.subr.bf16.mxu1 %v8520_v0 }
  0x57   : > { %1090 = vmatpush2.bf16.msra.mxu0 %v6030_v61  ;;  %5650 = vmatmul.mubr.bf16.gmra.mxu1 %v6613_v7  ;;  %v6696_v61 = vsel %vm490_vm1, %v521_v44, %v525_v45  ;;  %v6754_v45 = vld [vmem:[%s6463_s10 + $0xbc] ss:$0 sps:$4 sm:$0x11]  }
  0x58   : > { %1091 = vmatprep.subr.bf16.mxu0 %v8520_v0  ;;  %5653 = vmatprep.mubr.bf16.mxu1 %v6622_v10  ;;  %v772_v60 = vrot.slane %v6754_v45, 1 }
  0x59   : > { %1572 = vmatpush1.bf16.msra.mxu1 %v6041_v5  ;;  %v6710_v5 = vsel %vm725_vm0, %v759_v47, %v760_v48 }
  0x5a   : > { %1573 = vmatprep.subr.bf16.mxu1 %v8520_v0  ;;  %8554 = vst [vmem:[#allocation9_spill] sm:$0xff] %v6710_v5 }
  0x5b   : > { %1092 = vmatpush2.bf16.msra.mxu0 %v6034_v9  ;;  %v763_v9 = vrot.slane %v6689_v50, 1 }
  0x5c   : > { %1093 = vmatprep.subr.bf16.mxu0 %v8520_v0 }
  0x5d   : > { %1574 = vmatpush1.bf16.msra.mxu1 %v6043_v19  ;;  %v766_v19 = vrot.slane %v6715_v23, 1  ;;  %v6743_v42 = vsel %vm725_vm0, %v762_v6, %v763_v9  ;;  %v6775_v6 = vld [vmem:[%s6463_s10 + $0xc0] sm:$0xff]   ;;  %v552_v9 = vshrl.u32 %v6534_v39, 16 }
  0x5e   : > { %1575 = vmatprep.subr.bf16.mxu1 %v8520_v0  ;;  %8555 = vst [vmem:[#allocation10_spill] sm:$0xff] %v6743_v42 }
  0x5f   : > { %1094 = vmatpush2.bf16.msra.mxu0 %v6038_v17  ;;  %5654 = vmatmul.mubr.bf16.gmra.mxu1 %v6658_v31  ;;  %v765_v17 = vrot.slane %v6700_v63, 1 }
  0x60   : > { %1095 = vmatprep.subr.bf16.mxu0 %v8520_v0  ;;  %5657 = vmatprep.mubr.bf16.mxu1 %v6664_v35 }
  0x61   : > { %1576 = vmatpush1.bf16.msra.mxu1 %v6049_v28  ;;  %v6735_v28 = vsel %vm490_vm1, %v533_v13, %v537_v14  ;;  %v6750_v44 = vsel %vm725_vm0, %v765_v17, %v766_v19  ;;  %v6068_v17 = vld [vmem:[%s8515_s1 + $0x58] sm:$0xff]   ;;  %v6789_v19 = vld [vmem:[%s6463_s10 + $0xcc] sm:$0xff]  }
  0x62   : > { %1577 = vmatprep.subr.bf16.mxu1 %v8520_v0  ;;  %8556 = vst [vmem:[#allocation11_spill] sm:$0xff] %v6750_v44 }
  0x63   : > { %1096 = vmatpush2.bf16.msra.mxu0 %v6042_v37  ;;  %v540_v37 = vshrl.u32 %v6517_v32, 16 }
  0x64   : > { %5677 = vmatprep.subr.bf16.mxu0 %v6046_v41 }
  0x65   : > { %1578 = vmatpush1.bf16.msra.mxu1 %v6050_v46  ;;  %v769_v46 = vrot.slane %v6729_v24, 1  ;;  %v545_v47 = vor.u32 %v544_v18, %v540_v37  ;;  %v6800_v37 = vld [vmem:[%s6463_s10] sm:$0xff]   ;;  %v774_v18 = vrot.slane %v6775_v6, 1 }
  0x66   : > { %1098 = vmatmul.mubr.bf16.vlgmr.msra.gmra.mxu0 %v6470_v12  ;;  %1579 = vmatprep.subr.bf16.mxu1 %v8520_v0 }
  0x67   : > { %5678 = vmatpush3.bf16.msra.mxu0 %v6046_v41  ;;  %1105 = vmatprep.mubr.bf16.mxu0 %v6696_v61  ;;  %v547_v41 = vshll.u32 %v6520_v33, 16  ;;  %v768_v33 = vrot.slane %v6732_v25, 1 }
  0x68   : > { %5658 = vmatmul.mubr.bf16.gmra.mxu1 %v6703_v1  ;;  %5679 = vmatprep.subr.bf16.mxu0 %v6062_v2 }
  0x69   : > { %5661 = vmatprep.mubr.bf16.mxu1 %v6710_v5  ;;  %1580 = vmatpush2.bf16.msra.mxu1 %v6055_v55  ;;  %v549_v48 = vrot.slane %v547_v41, 1  ;;  %v6063_v55 = vld [vmem:[%s8515_s1 + $0x60] sm:$0xff]   ;;  %v775_v41 = vrot.slane %v6769_v62, 1  ;;  %v576_v5 = vshrl.u32 %v6579_v57, 16 }
  0x6a   : > { %1581 = vmatprep.subr.bf16.mxu1 %v8520_v0 }
  0x6b   : > { %5680 = vmatpush3.bf16.msra.mxu0 %v6062_v2  ;;  %v6075_v2 = vld [vmem:[%s8515_s1 + $0xa8] sm:$0xff]   ;;  %v6779_v13 = vsel %vm490_vm1, %v545_v47, %v549_v48  ;;  %v6079_v47 = vld [vmem:[%s8515_s1 + $0xa0] sm:$0xff]   ;;  %v6069_v48 = vld [vmem:[%s8515_s1 + $0x50] sm:$0xff]  }
  0x6c   : > { %5681 = vmatprep.subr.bf16.mxu0 %v6075_v2 }
  0x6d   : > { %1582 = vmatpush2.bf16.msra.mxu1 %v6056_v16  ;;  %v6783_v16 = vsel %vm725_vm0, %v768_v33, %v769_v46  ;;  %v561_v33 = vrot.slane %v559_v15, 1  ;;  %v566_v46 = vshll.u32 %v6562_v52, 16 }
  0x6e   : > { %1106 = vmatmul.mubr.bf16.gmra.mxu0 %v6492_v21  ;;  %1583 = vmatprep.subr.bf16.mxu1 %v8520_v0  ;;  %v554_v21 = vshll.u32 %v6534_v39, 16  ;;  %8557 = vst [vmem:[#allocation12_spill] sm:$0xff] %v6783_v16 }
  0x6f   : > { %1113 = vmatprep.mubr.bf16.mxu0 %v6735_v28  ;;  %5682 = vmatpush3.bf16.msra.mxu0 %v6075_v2  ;;  %v6081_v2 = vld [vmem:[%s8515_s1 + $0x98] sm:$0xff]  }
  0x70   : > { %5662 = vmatmul.mubr.bf16.gmra.mxu1 %v6743_v42  ;;  %v556_v14 = vrot.slane %v554_v21, 1  ;;  %v6815_v21 = vld [vmem:[%s6463_s10 + $0x8] ss:$0 sps:$4 sm:$0x11]   ;;  %5683 = vmatprep.subr.bf16.mxu0 %v6079_v47 }
  0x71   : > { %5665 = vmatprep.mubr.bf16.mxu1 %v6750_v44  ;;  %1584 = vmatpush2.bf16.msra.mxu1 %v6061_v29  ;;  %v6793_v29 = vsel %vm725_vm0, %v771_v59, %v772_v60  ;;  %v778_v59 = vrot.slane %v6797_v36, 1  ;;  %v494_v60 = vshll.u32 %v6800_v37, 16  ;;  %v6074_v44 = vld [vmem:[%s8515_s1 + $0x48] sm:$0xff]  }
  0x72   : > { %1585 = vmatprep.subr.bf16.mxu1 %v8520_v0  ;;  %8558 = vst [vmem:[#allocation13_spill] sm:$0xff] %v6793_v29 }
  0x73   : > { %5684 = vmatpush3.bf16.msra.mxu0 %v6079_v47 }
  0x74   : > { %5685 = vmatprep.subr.bf16.mxu0 %v6081_v2 }
  0x75   : > { %1586 = vmatpush2.bf16.msra.mxu1 %v6063_v55  ;;  %v777_v55 = vrot.slane %v6789_v19, 1 }
  0x76   : > { %1114 = vmatmul.mubr.bf16.gmra.mxu0 %v6496_v22  ;;  %1587 = vmatprep.subr.bf16.mxu1 %v8520_v0  ;;  %v557_v22 = vor.u32 %v556_v14, %v552_v9  ;;  %v6825_v9 = vld [vmem:[%s6463_s10 + $0xd8] sm:$0xff]   ;;  %v564_v14 = vshrl.u32 %v6562_v52, 16 }
  0x77   : > { %1121 = vmatprep.mubr.bf16.mxu0 %v6779_v13  ;;  %v6843_v47 = vsel %vm725_vm0, %v777_v55, %v778_v59  ;;  %5686 = vmatpush3.bf16.msra.mxu0 %v6081_v2 }
  0x78   : > { %5666 = vmatmul.mubr.bf16.gmra.mxu1 %v6783_v16  ;;  %v6829_v15 = vsel %vm490_vm1, %v557_v22, %v561_v33  ;;  %v6836_v16 = vld [vmem:[%s6463_s10 + $0xe0] ss:$0 sps:$4 sm:$0x11]   ;;  %v8560_v22 = vmov 0   ;;  %v496_v33 = vrot.slane %v494_v60, 1 }
  0x79   : > { %5669 = vmatprep.mubr.bf16.mxu1 %v6793_v29  ;;  %1588 = vmatpush2.bf16.msra.mxu1 %v6068_v17  ;;  %v568_v17 = vrot.slane %v566_v46, 1  ;;  %v6833_v29 = vsel %vm725_vm0, %v774_v18, %v775_v41  ;;  %v499_v18 = vshll.u32 %v6815_v21, 16  ;;  %v6084_v41 = vld [vmem:[%s8515_s1 + $0x90] sm:$0xff]   ;;  %v578_v46 = vshll.u32 %v6579_v57, 16  ;;  %v6076_v60 = vld [vmem:[%s8515_s1 + $0x40] sm:$0xff]  }
  0x7a   : > { %1589 = vmatprep.subr.bf16.mxu1 %v8520_v0  ;;  %v571_v0 = vshll.u32 %v6558_v51, 16  ;;  %8559 = vst [vmem:[#allocation14_spill] sm:$0xff] %v6833_v29  ;;  %v492_v51 = vshrl.u32 %v6800_v37, 16  ;;  %5687 = vmatprep.subr.bf16.mxu0 %v6084_v41  ;;  %v869_v59 = vrot.slane %v6836_v16, 1 }
  0x7b   : > { %v501_v2 = vrot.slane %v499_v18, 1  ;;  %5688 = vmatpush3.bf16.msra.mxu0 %v6084_v41  ;;  %v595_v18 = vshll.u32 %v6605_v4, 16  ;;  %v619_v4 = vshll.u32 %v6644_v26, 16 }
  0x7c   : > { %v573_v55 = vrot.slane %v571_v0, 1  ;;  %v497_v42 = vor.u32 %v496_v33, %v492_v51  ;;  %v590_v33 = vshll.u32 %v6602_v3, 16 }
  0x7d   : > { %1590 = vmatpush2.bf16.msra.mxu1 %v6069_v48  ;;  %v569_v48 = vor.u32 %v568_v17, %v564_v14  ;;  %v580_v14 = vrot.slane %v578_v46, 1  ;;  %v602_v46 = vshll.u32 %v6616_v8, 16 }
  0x7e   : > { %1122 = vmatmul.mubr.bf16.gmra.mxu0 %v6517_v32  ;;  %1591 = vmatprep.subr.bf16.mxu1 %v8560_v22  ;;  %v868_v32 = vrot.slane %v6825_v9, 1  ;;  %v502_v51 = vsel %vm490_vm1, %v497_v42, %v501_v2  ;;  %v614_v42 = vshll.u32 %v6648_v27, 16 }
  0x7f   : > { %1129 = vmatprep.mubr.bf16.mxu0 %v6829_v15  ;;  %v6864_v0 = vsel %vm490_vm1, %v569_v48, %v573_v55  ;;  %v581_v41 = vor.u32 %v580_v14, %v576_v5  ;;  %v592_v5 = vrot.slane %v590_v33, 1  ;;  %v597_v48 = vrot.slane %v595_v18, 1  ;;  %v6080_v14 = vld [vmem:[%s8515_s1 + $0x1b8] sm:$0xff]  }
  0x80   : > { %5670 = vmatmul.mubr.bf16.gmra.mxu1 %v6833_v29  ;;  %v583_v29 = vshll.u32 %v6582_v58, 16  ;;  %v6870_v17 = vsel %vm725_vm0, %v868_v32, %v869_v59  ;;  %v607_v32 = vshll.u32 %v6626_v11, 16  ;;  %v600_v55 = vshrl.u32 %v6616_v8, 16 }
  0x81   : > { %5673 = vmatprep.mubr.bf16.mxu1 %v6843_v47  ;;  %1592 = vmatpush2.bf16.msra.mxu1 %v6074_v44  ;;  %v6087_v44 = vld [vmem:[%s8515_s1 + $0x88] sm:$0xff]   ;;  %v616_v26 = vrot.slane %v614_v42, 1  ;;  %v726_v33 = vrot.slane %v6800_v37, 1  ;;  %v621_v18 = vrot.slane %v619_v4, 1  ;;  %v631_v11 = vshll.u32 %v6655_v30, 16  ;;  %v6082_v42 = vld [vmem:[%s8515_s1 + $0x1b0] sm:$0xff]  }
  0x82   : > { %1593 = vmatprep.subr.bf16.mxu1 %v8560_v22  ;;  %v585_v58 = vrot.slane %v583_v29, 1  ;;  %5689 = vmatprep.subr.bf16.mxu0 %v6087_v44  ;;  %v6090_v29 = vld [vmem:[%s8515_s1 + $0x80] sm:$0xff]   ;;  %v609_v2 = vrot.slane %v607_v32, 1  ;;  %v643_v32 = vshll.u32 %v6689_v50, 16 }
  0x83   : > { %5690 = vmatpush3.bf16.msra.mxu0 %v6087_v44  ;;  %v633_v50 = vrot.slane %v631_v11, 1  ;;  %v660_v11 = vshrl.u32 %v6732_v25, 16 }
  0x84   : > { %v6890_v59 = vsel %vm490_vm1, %v581_v41, %v585_v58  ;;  %5691 = vmatprep.subr.bf16.mxu0 %v6090_v29  ;;  %v727_v58 = vrot.slane %v6815_v21, 1  ;;  %v6903_v41 = vld [vmem:[%s8515_s1 + $0x238] sm:$0xff]  }
  0x85   : > { %1594 = vmatpush2.bf16.msra.mxu1 %v6076_v60  ;;  %v604_v60 = vrot.slane %v602_v46, 1  ;;  %v638_v46 = vshll.u32 %v6686_v49, 16 }
  0x86   : > { %1130 = vmatmul.mubr.bf16.gmra.mxu0 %v6534_v39  ;;  %2136 = vmatprep.subr.bf16.mxu1 %v8560_v22  ;;  %v588_v39 = vshrl.u32 %v6602_v3, 16  ;;  %v6913_v30 = vsel %vm725_vm0, %v726_v33, %v727_v58  ;;  %v6923_v33 = vrot.slane %v643_v32, 1  ;;  %v672_v58 = vshrl.u32 %v6746_v43, 16 }
  0x87   : > { %1137 = vmatprep.mubr.bf16.mxu0 %v6864_v0  ;;  %5692 = vmatpush3.bf16.msra.mxu0 %v6090_v29  ;;  %v648_v29 = vshrl.u32 %v6700_v63, 16  ;;  %v6921_v44 = vrot.slane %v638_v46, 1  ;;  %v674_v32 = vshll.u32 %v6746_v43, 16 }
  0x88   : > { %5674 = vmatmul.mubr.bf16.gmra.mxu1 %v6870_v17  ;;  %5729 = vmatprep.subr.bf16.mxu0 %v6903_v41  ;;  %v593_v21 = vor.u32 %v592_v5, %v588_v39  ;;  %v650_v39 = vshll.u32 %v6700_v63, 16  ;;  %v655_v5 = vshll.u32 %v6715_v23, 16  ;;  %v6085_v23 = vld [vmem:[%s8515_s1 + $0x1a0] sm:$0xff]  }
  0x89   : > { %1595 = vmatprep.mubr.bf16.mxu1 %v502_v51  ;;  %v626_v51 = vshll.u32 %v6661_v34, 16 }
  0x8a   : > { %v6945_v46 = vrot.slane %v655_v5, 1  ;;  %v6089_v5 = vld [vmem:[%s8515_s1 + $0x188] sm:$0xff]  }
  0x8b   : > { %v628_v4 = vrot.slane %v626_v51, 1  ;;  %v667_v51 = vshll.u32 %v6729_v24, 16  ;;  %v605_v24 = vor.u32 %v604_v60, %v600_v55  ;;  %v6088_v55 = vld [vmem:[%s8515_s1 + $0x190] sm:$0xff]   ;;  %v6969_v60 = vld [vmem:[%s6463_s10 + $0x18] sm:$0xff]  }
  0x8e   : > { %1138 = vmatmul.mubr.bf16.gmra.mxu0 %v6562_v52  ;;  %v636_v52 = vshrl.u32 %v6686_v49, 16 }
  0x8f   : > { %1145 = vmatprep.mubr.bf16.mxu0 %v6890_v59 }
  0x90   : > { %1596 = vmatmul.mubr.bf16.vlgmr.msra.gmra.mxu1 %v6800_v37  ;;  %v6083_v37 = vld [vmem:[%s8515_s1 + $0x1a8] sm:$0xff]  }
  0x91   : > { %1603 = vmatprep.mubr.bf16.mxu1 %v6565_v53  ;;  %2137 = vmatpush1.bf16.msra.mxu1 %v6080_v14  ;;  %v6931_v53 = vsel %vm490_vm1, %v593_v21, %v597_v48  ;;  %v662_v14 = vshll.u32 %v6732_v25, 16  ;;  %v6943_v48 = vrot.slane %v650_v39, 1  ;;  %v6086_v21 = vld [vmem:[%s8515_s1 + $0x198] sm:$0xff]   ;;  %v679_v39 = vshll.u32 %v6754_v45, 16 }
  0x92   : > { %2138 = vmatprep.subr.bf16.mxu1 %v8560_v22  ;;  %v8561_v45 = vshrl.u32 %v6648_v27, 16 }
  0x95   : > { %2139 = vmatpush1.bf16.msra.mxu1 %v6082_v42  ;;  %v6953_v42 = vrot.slane %v667_v51, 1 }
  0x96   : > { %1146 = vmatmul.mubr.bf16.gmra.mxu0 %v6579_v57  ;;  %2140 = vmatprep.subr.bf16.mxu1 %v8560_v22  ;;  %v6950_v57 = vrot.slane %v662_v14, 1  ;;  %v8562_v14 = vshrl.u32 %v6661_v34, 16 }
  0x97   : > { %1153 = vmatprep.mubr.bf16.mxu0 %v6931_v53 }
  0x98   : > { %1604 = vmatmul.mubr.bf16.gmra.mxu1 %v6470_v12  ;;  %v6960_v12 = vsel %vm490_vm1, %v605_v24, %v609_v2  ;;  %v617_v2 = vor.u32 %v616_v26, %v8561_v45  ;;  %v6091_v26 = vld [vmem:[%s8515_s1 + $0x180] sm:$0xff]   ;;  %v629_v51 = vor.u32 %v628_v4, %v8562_v14  ;;  %v6092_v24 = vld [vmem:[%s8515_s1 + $0x1f8] sm:$0xff]   ;;  %v6094_v4 = vld [vmem:[%s8515_s1 + $0x1f0] sm:$0xff]   ;;  %v686_v45 = vshll.u32 %v6775_v6, 16 }
  0x99   : > { %1611 = vmatprep.mubr.bf16.mxu1 %v6696_v61  ;;  %2141 = vmatpush1.bf16.msra.mxu1 %v6083_v37  ;;  %v684_v37 = vshrl.u32 %v6775_v6, 16  ;;  %v7091_v14 = vld [vmem:[%s6463_s10 + $0x60] sm:$0xff]  }
  0x9a   : > { %2142 = vmatprep.subr.bf16.mxu1 %v8560_v22 }
  0x9d   : > { %2143 = vmatpush1.bf16.msra.mxu1 %v6085_v23  ;;  %v676_v23 = vrot.slane %v674_v32, 1 }
  0x9e   : > { %1154 = vmatmul.mubr.bf16.gmra.mxu0 %v6602_v3  ;;  %2144 = vmatprep.subr.bf16.mxu1 %v8560_v22  ;;  %v6977_v3 = vsel %vm490_vm1, %v617_v2, %v621_v18  ;;  %v6990_v18 = vld [vmem:[%s6463_s10 + $0x24] sm:$0xff]  }
  0x9f   : > { %1161 = vmatprep.mubr.bf16.mxu0 %v6960_v12 }
  0xa0   : > { %1612 = vmatmul.mubr.bf16.gmra.mxu1 %v6969_v60 }
  0xa1   : > { %1619 = vmatprep.mubr.bf16.mxu1 %v6735_v28  ;;  %2145 = vmatpush1.bf16.msra.mxu1 %v6086_v21  ;;  %v7010_v21 = vld [vmem:[%s6463_s10 + $0x30] sm:$0xff]  }
  0xa2   : > { %2146 = vmatprep.subr.bf16.mxu1 %v8560_v22 }
  0xa5   : > { %2147 = vmatpush1.bf16.msra.mxu1 %v6088_v55  ;;  %v681_v55 = vrot.slane %v679_v39, 1 }
  0xa6   : > { %1162 = vmatmul.mubr.bf16.gmra.mxu0 %v6616_v8  ;;  %2148 = vmatprep.subr.bf16.mxu1 %v8560_v22  ;;  %v6998_v8 = vsel %vm490_vm1, %v629_v51, %v633_v50  ;;  %v641_v50 = vor.u32 %v6921_v44, %v636_v52  ;;  %v6098_v44 = vld [vmem:[%s8515_s1 + $0x1e0] sm:$0xff]  }
  0xa7   : > { %1169 = vmatprep.mubr.bf16.mxu0 %v6977_v3  ;;  %v7033_v52 = vld [vmem:[%s6463_s10 + $0x3c] sm:$0xff]  }
  0xa8   : > { %1620 = vmatmul.mubr.bf16.gmra.mxu1 %v6990_v18  ;;  %v7023_v32 = vsel %vm490_vm1, %v641_v50, %v6923_v33  ;;  %v6099_v33 = vld [vmem:[%s8515_s1 + $0x1d8] sm:$0xff]   ;;  %v7106_v50 = vld [vmem:[%s6463_s10 + $0x6c] sm:$0xff]  }
  0xa9   : > { %1627 = vmatprep.mubr.bf16.mxu1 %v6779_v13  ;;  %2149 = vmatpush1.bf16.msra.mxu1 %v6089_v5  ;;  %v688_v5 = vrot.slane %v686_v45, 1 }
  0xaa   : > { %2150 = vmatprep.subr.bf16.mxu1 %v8560_v22 }
  0xad   : > { %2151 = vmatpush1.bf16.msra.mxu1 %v6091_v26  ;;  %v691_v26 = vshll.u32 %v6769_v62, 16 }
  0xae   : > { %1170 = vmatmul.mubr.bf16.gmra.mxu0 %v6648_v27  ;;  %2152 = vmatprep.subr.bf16.mxu1 %v8560_v22  ;;  %v6096_v27 = vld [vmem:[%s8515_s1 + $0x1e8] sm:$0xff]  }
  0xaf   : > { %1177 = vmatprep.mubr.bf16.mxu0 %v6998_v8  ;;  %v693_v51 = vrot.slane %v691_v26, 1  ;;  %v6106_v26 = vld [vmem:[%s8515_s1 + $0x208] sm:$0xff]  }
  0xb0   : > { %1628 = vmatmul.mubr.bf16.gmra.mxu1 %v7010_v21 }
  0xb1   : > { %1635 = vmatprep.mubr.bf16.mxu1 %v6829_v15  ;;  %2153 = vmatpush2.bf16.msra.mxu1 %v6092_v24  ;;  %v696_v24 = vshrl.u32 %v6789_v19, 16 }
  0xb2   : > { %2154 = vmatprep.subr.bf16.mxu1 %v8560_v22 }
  0xb5   : > { %2155 = vmatpush2.bf16.msra.mxu1 %v6094_v4  ;;  %v703_v4 = vshll.u32 %v6797_v36, 16  ;;  %v856_v36 = vshrl.u32 %v6825_v9, 16 }
  0xb6   : > { %1178 = vmatmul.mubr.bf16.gmra.mxu0 %v6661_v34  ;;  %2156 = vmatprep.subr.bf16.mxu1 %v8560_v22  ;;  %v653_v34 = vor.u32 %v6943_v48, %v648_v29  ;;  %v6101_v29 = vld [vmem:[%s8515_s1 + $0x1d0] sm:$0xff]   ;;  %v7055_v48 = vld [vmem:[%s6463_s10 + $0x48] sm:$0xff]  }
  0xb7   : > { %1185 = vmatprep.mubr.bf16.mxu0 %v7023_v32 }
  0xb8   : > { %1636 = vmatmul.mubr.bf16.gmra.mxu1 %v7033_v52  ;;  %v7046_v39 = vsel %vm490_vm1, %v653_v34, %v6945_v46  ;;  %v665_v46 = vor.u32 %v6950_v57, %v660_v11  ;;  %v6104_v11 = vld [vmem:[%s8515_s1 + $0x1c0] sm:$0xff]   ;;  %v7077_v57 = vld [vmem:[%s6463_s10 + $0x54] sm:$0xff]  }
  0xb9   : > { %1643 = vmatprep.mubr.bf16.mxu1 %v6864_v0  ;;  %2157 = vmatpush2.bf16.msra.mxu1 %v6096_v27  ;;  %v705_v27 = vrot.slane %v703_v4, 1  ;;  %v7119_v34 = vld [vmem:[%s6463_s10 + $0x78] sm:$0xff]   ;;  %v7188_v4 = vld [vmem:[%s6463_s10 + $0xc0] sm:$0xff]  }
  0xba   : > { %2158 = vmatprep.subr.bf16.mxu1 %v8560_v22  ;;  %v7068_v2 = vsel %vm490_vm1, %v665_v46, %v6953_v42  ;;  %v677_v42 = vor.u32 %v676_v23, %v672_v58  ;;  %v689_v58 = vor.u32 %v688_v5, %v684_v37  ;;  %v698_v23 = vshll.u32 %v6789_v19, 16  ;;  %v7173_v5 = vld [vmem:[%s6463_s10 + $0xb4] sm:$0xff]   ;;  %8570 = vst [vmem:[#allocation22_spill] sm:$0xff] %v7188_v4 }
  0xbb   : > { %8563 = vst [vmem:[#allocation15_spill] sm:$0xff] %v7068_v2  ;;  %8569 = vst [vmem:[#allocation21_spill] sm:$0xff] %v7173_v5 }
  0xbc   : > { %v7099_v62 = vsel %vm490_vm1, %v689_v58, %v693_v51 }
  0xbd   : > { %2159 = vmatpush2.bf16.msra.mxu1 %v6098_v44  ;;  %8565 = vst [vmem:[#allocation17_spill] sm:$0xff] %v7099_v62 }
  0xbe   : > { %1186 = vmatmul.mubr.bf16.gmra.mxu0 %v6686_v49  ;;  %2160 = vmatprep.subr.bf16.mxu1 %v8560_v22  ;;  %v6102_v49 = vld [vmem:[%s8515_s1 + $0x1c8] sm:$0xff]  }
  0xbf   : > { %1193 = vmatprep.mubr.bf16.mxu0 %v7046_v39 }
  0xc0   : > { %1644 = vmatmul.mubr.bf16.gmra.mxu1 %v7055_v48 }
  0xc1   : > { %1651 = vmatprep.mubr.bf16.mxu1 %v6890_v59  ;;  %2161 = vmatpush2.bf16.msra.mxu1 %v6099_v33 }
  0xc2   : > { %2162 = vmatprep.subr.bf16.mxu1 %v8560_v22 }
  0xc5   : > { %2163 = vmatpush2.bf16.msra.mxu1 %v6101_v29 }
  0xc6   : > { %1194 = vmatmul.mubr.bf16.gmra.mxu0 %v6700_v63  ;;  %2164 = vmatprep.subr.bf16.mxu1 %v8560_v22  ;;  %v7085_v63 = vsel %vm490_vm1, %v677_v42, %v681_v55  ;;  %v858_v55 = vshll.u32 %v6825_v9, 16 }
  0xc7   : > { %1201 = vmatprep.mubr.bf16.mxu0 %v7068_v2  ;;  %8564 = vst [vmem:[#allocation16_spill] sm:$0xff] %v7085_v63 }
  0xc8   : > { %1652 = vmatmul.mubr.bf16.gmra.mxu1 %v7077_v57  ;;  %v860_v44 = vrot.slane %v858_v55, 1 }
  0xc9   : > { %1659 = vmatprep.mubr.bf16.mxu1 %v6931_v53  ;;  %2165 = vmatpush2.bf16.msra.mxu1 %v6102_v49  ;;  %v6103_v49 = vld [vmem:[%s8515_s1 + $0x218] sm:$0xff]  }
  0xca   : > { %2166 = vmatprep.subr.bf16.mxu1 %v8560_v22  ;;  %v861_v33 = vor.u32 %v860_v44, %v856_v36  ;;  %v7199_v44 = vld [vmem:[%s6463_s10 + $0xcc] sm:$0xff]  }
  0xcb   : > { %8571 = vst [vmem:[#allocation23_spill] sm:$0xff] %v7199_v44 }
  0xcd   : > { %2167 = vmatpush2.bf16.msra.mxu1 %v6104_v11  ;;  %v6105_v11 = vld [vmem:[%s8515_s1 + $0x210] sm:$0xff]  }
  0xce   : > { %1202 = vmatmul.mubr.bf16.gmra.mxu0 %v6732_v25  ;;  %v700_v25 = vrot.slane %v698_v23, 1  ;;  %v6107_v23 = vld [vmem:[%s8515_s1 + $0x200] sm:$0xff]  }
  0xcf   : > { %1209 = vmatprep.mubr.bf16.mxu0 %v7085_v63 }
  0xd0   : > { %1660 = vmatmul.mubr.bf16.gmra.mxu1 %v7091_v14  ;;  %v701_v37 = vor.u32 %v700_v25, %v696_v24 }
  0xd1   : > { %1667 = vmatprep.mubr.bf16.mxu1 %v6960_v12 }
  0xd2   : > { %v7112_v45 = vsel %vm490_vm1, %v701_v37, %v705_v27 }
  0xd3   : > { %8566 = vst [vmem:[#allocation18_spill] sm:$0xff] %v7112_v45 }
  0xd6   : > { %1210 = vmatmul.mubr.bf16.gmra.mxu0 %v6746_v43  ;;  %v863_v43 = vshll.u32 %v6836_v16, 16  ;;  %v7129_v16 = vld [vmem:[%s6463_s10 + $0x84] sm:$0xff]  }
  0xd7   : > { %1217 = vmatprep.mubr.bf16.mxu0 %v7099_v62 }
  0xd8   : > { %1668 = vmatmul.mubr.bf16.gmra.mxu1 %v7106_v50  ;;  %v865_v29 = vrot.slane %v863_v43, 1 }
  0xd9   : > { %1675 = vmatprep.mubr.bf16.mxu1 %v6977_v3 }
  0xda   : > { %v7124_v46 = vsel %vm490_vm1, %v861_v33, %v865_v29 }
  0xdb   : > { %8567 = vst [vmem:[#allocation19_spill] sm:$0xff] %v7124_v46 }
  0xde   : > { %1218 = vmatmul.mubr.bf16.gmra.mxu0 %v6775_v6  ;;  %v7136_v6 = vld [vmem:[%s6463_s10 + $0x90] sm:$0xff]  }
  0xdf   : > { %1225 = vmatprep.mubr.bf16.mxu0 %v7112_v45 }
  0xe0   : > { %1676 = vmatmul.mubr.bf16.gmra.mxu1 %v7119_v34 }
  0xe1   : > { %1683 = vmatprep.mubr.bf16.mxu1 %v6998_v8 }
  0xe6   : > { %1226 = vmatmul.mubr.bf16.gmra.mxu0 %v6789_v19  ;;  %v6095_v19 = vld [vmem:[%s8515_s1 + $0x230] sm:$0xff]  }
  0xe7   : > { %1233 = vmatprep.mubr.bf16.mxu0 %v7124_v46  ;;  %v8575_v46 = vld [vmem:[#allocation12_spill] sm:$0xff] }
  0xe8   : > { %1684 = vmatmul.mubr.bf16.gmra.mxu1 %v7129_v16 }
  0xe9   : > { %1691 = vmatprep.mubr.bf16.mxu1 %v7023_v32 }
  0xee   : > { %1234 = vmatmul.mubr.bf16.gmra.mxu0 %v6825_v9  ;;  %v7147_v9 = vld [vmem:[%s6463_s10 + $0x9c] sm:$0xff]  }
  0xef   : > { %5693 = vmatprep.mubr.bf16.mxu0 %v6913_v30  ;;  %v6097_v30 = vld [vmem:[%s8515_s1 + $0x228] sm:$0xff]  }
  0xf0   : > { %1692 = vmatmul.mubr.bf16.gmra.mxu1 %v7136_v6 }
  0xf1   : > { %1699 = vmatprep.mubr.bf16.mxu1 %v7046_v39 }
  0xf6   : > { %5694 = vmatmul.mubr.bf16.vlgmr.msra.gmra.mxu0 %v6488_v20  ;;  %v6100_v20 = vld [vmem:[%s8515_s1 + $0x220] sm:$0xff]  }
  0xf7   : > { %5730 = vmatpush3.bf16.msra.mxu0 %v6903_v41  ;;  %5697 = vmatprep.mubr.bf16.mxu0 %v6531_v38  ;;  %v7160_v41 = vld [vmem:[%s6463_s10 + $0xa8] sm:$0xff]  }
  0xf8   : > { %1700 = vmatmul.mubr.bf16.gmra.mxu1 %v7147_v9  ;;  %5731 = vmatprep.subr.bf16.mxu0 %v6095_v19  ;;  %8568 = vst [vmem:[#allocation20_spill] sm:$0xff] %v7160_v41 }
  0xf9   : > { %1707 = vmatprep.mubr.bf16.mxu1 %v7068_v2 }
  0xfb   : > { %5732 = vmatpush3.bf16.msra.mxu0 %v6095_v19  ;;  %v8572_v19 = vld [vmem:[#allocation9_spill] sm:$0xff] }
  0xfc   : > { %5733 = vmatprep.subr.bf16.mxu0 %v6097_v30 }
  0xfe   : > { %5698 = vmatmul.mubr.bf16.gmra.mxu0 %v6537_v40 }
  0xff   : > { %5701 = vmatprep.mubr.bf16.mxu0 %v6568_v54  ;;  %5734 = vmatpush3.bf16.msra.mxu0 %v6097_v30  ;;  %v8573_v30 = vld [vmem:[#allocation10_spill] sm:$0xff] }
 0x100   : > { %1708 = vmatmul.mubr.bf16.gmra.mxu1 %v7160_v41  ;;  %5735 = vmatprep.subr.bf16.mxu0 %v6100_v20 }
 0x101   : > { %1715 = vmatprep.mubr.bf16.mxu1 %v7085_v63 }
 0x103   : > { %5736 = vmatpush3.bf16.msra.mxu0 %v6100_v20 }
 0x104   : > { %5737 = vmatprep.subr.bf16.mxu0 %v6103_v49 }
 0x106   : > { %5702 = vmatmul.mubr.bf16.gmra.mxu0 %v6575_v56 }
 0x107   : > { %5705 = vmatprep.mubr.bf16.mxu0 %v6613_v7  ;;  %5738 = vmatpush3.bf16.msra.mxu0 %v6103_v49  ;;  %v5643_v42 = vpop.f32.mrf.mxu1 }
 0x108   : > { %1716 = vmatmul.mubr.bf16.gmra.mxu1 %v7173_v5  ;;  %5739 = vmatprep.subr.bf16.mxu0 %v6105_v11 }
 0x109   : > { %1723 = vmatprep.mubr.bf16.mxu1 %v7099_v62  ;;  %v1276_v58 = vpop.f32.mrf.mxu1 }
 0x10b   : > { %5740 = vmatpush3.bf16.msra.mxu0 %v6105_v11  ;;  %v5644_v51 = vpop.f32.mrf.mxu1 }
 0x10c   : > { %5741 = vmatprep.subr.bf16.mxu0 %v6106_v26 }
 0x10d   : > { %v1279_v24 = vpop.f32.mrf.mxu1 }
 0x10e   : > { %5706 = vmatmul.mubr.bf16.gmra.mxu0 %v6622_v10 }
 0x10f   : > { %5709 = vmatprep.mubr.bf16.mxu0 %v6658_v31  ;;  %5742 = vmatpush3.bf16.msra.mxu0 %v6106_v26  ;;  %v7185_v25 = vpop.f32.mrf.mxu1 }
 0x110   : > { %1724 = vmatmul.mubr.bf16.gmra.mxu1 %v7188_v4  ;;  %5743 = vmatprep.subr.bf16.mxu0 %v6107_v23 }
 0x111   : > { %1731 = vmatprep.mubr.bf16.mxu1 %v7112_v45  ;;  %v1292_v37 = vpop.f32.mrf.mxu1 }
 0x113   : > { %5744 = vmatpush3.bf16.msra.mxu0 %v6107_v23  ;;  %v7192_v27 = vpop.f32.mrf.mxu1  ;;  %v8574_v23 = vld [vmem:[#allocation11_spill] sm:$0xff] }
 0x115   : > { %v1295_v55 = vpop.f32.mrf.mxu1 }
 0x116   : > { %5710 = vmatmul.mubr.bf16.gmra.mxu0 %v6664_v35 }
 0x117   : > { %5713 = vmatprep.mubr.bf16.mxu0 %v6703_v1  ;;  %v7196_v36 = vpop.f32.mrf.mxu1 }
 0x118   : > { %1732 = vmatmul.mubr.bf16.gmra.mxu1 %v7199_v44 }
 0x119   : > { %2168 = vmatprep.mubr.bf16.mxu1 %v6696_v61  ;;  %v7203_v43 = vpop.f32.mrf.mxu1 }
 0x11b   : > { %v7205_v33 = vpop.f32.mrf.mxu1 }
 0x11d   : > { %v7207_v29 = vpop.f32.mrf.mxu1 }
 0x11e   : > { %5714 = vmatmul.mubr.bf16.gmra.mxu0 %v8572_v19 }
 0x11f   : > { %5717 = vmatprep.mubr.bf16.mxu0 %v8573_v30  ;;  %v7211_v20 = vpop.f32.mrf.mxu1 }
 0x120   : > { %2169 = vmatmul.mubr.bf16.vlgmr.msra.gmra.mxu1 %v6969_v60 }
 0x121   : > { %2176 = vmatprep.mubr.bf16.mxu1 %v6735_v28  ;;  %v7215_v49 = vpop.f32.mrf.mxu1 }
 0x123   : > { %v7217_v11 = vpop.f32.mrf.mxu1 }
 0x125   : > { %v7219_v61 = vpop.f32.mrf.mxu1 }
 0x126   : > { %v1099_v26 = vpop.f32.mrf.mxu0  ;;  %5718 = vmatmul.mubr.bf16.gmra.mxu0 %v8574_v23 }
 0x127   : > { %v7222_v22 = vadd.f32 %v1276_v58, %v1099_v26  ;;  %5721 = vmatprep.mubr.bf16.mxu0 %v8575_v46  ;;  %v8578_v26 = vld [vmem:[#allocation13_spill] sm:$0xff] }
 0x128   : > { %v7225_v44 = vpop.f32.mrf.mxu1  ;;  %2177 = vmatmul.mubr.bf16.gmra.mxu1 %v6990_v18  ;;  %v1101_v60 = vpop.f32.mrf.mxu0 }
 0x129   : > { %8576 = vst [vmem:[#allocation9_spill] sm:$0xff] %v7225_v44  ;;  %2184 = vmatprep.mubr.bf16.mxu1 %v6779_v13  ;;  %v8579_v44 = vld [vmem:[#allocation14_spill] sm:$0xff] }
 0x12a   : > { %v7229_v28 = vpop.f32.mrf.mxu1  ;;  %v1102_v45 = vpop.f32.mrf.mxu0 }
 0x12b   : > { %v7231_v4 = vadd.f32 %v1279_v24, %v1102_v45 }
 0x12c   : > { %v7233_v62 = vpop.f32.mrf.mxu1  ;;  %v1104_v5 = vpop.f32.mrf.mxu0 }
 0x12d   : > { %8577 = vst [vmem:[#allocation10_spill] sm:$0xff] %v7233_v62 }
 0x12e   : > { %v7235_v63 = vpop.f32.mrf.mxu1  ;;  %v1107_v58 = vpop.f32.mrf.mxu0  ;;  %5722 = vmatmul.mubr.bf16.gmra.mxu0 %v8578_v26 }
 0x12f   : > { %v7238_v41 = vadd.f32 %v5643_v42, %v1107_v58  ;;  %5725 = vmatprep.mubr.bf16.mxu0 %v8579_v44 }
 0x130   : > { %v7241_v18 = vpop.f32.mrf.mxu1  ;;  %2185 = vmatmul.mubr.bf16.gmra.mxu1 %v7010_v21  ;;  %v1109_v13 = vpop.f32.mrf.mxu0 }
 0x131   : > { %8580 = vst [vmem:[#allocation11_spill] sm:$0xff] %v7241_v18  ;;  %2192 = vmatprep.mubr.bf16.mxu1 %v6829_v15 }
 0x132   : > { %v7245_v45 = vpop.f32.mrf.mxu1  ;;  %v1110_v24 = vpop.f32.mrf.mxu0 }
 0x133   : > { %v7247_v5 = vadd.f32 %v5644_v51, %v1110_v24 }
 0x134   : > { %v7249_v60 = vpop.f32.mrf.mxu1  ;;  %v1112_v62 = vpop.f32.mrf.mxu0 }
 0x135   : > { %8581 = vst [vmem:[#allocation12_spill] sm:$0xff] %v7249_v60 }
 0x136   : > { %v7251_v2 = vpop.f32.mrf.mxu1  ;;  %v1115_v42 = vpop.f32.mrf.mxu0  ;;  %5726 = vmatmul.mubr.bf16.gmra.mxu0 %v6843_v47 }
 0x137   : > { %v7254_v58 = vadd.f32 %v1292_v37, %v1115_v42  ;;  %5745 = vmatprep.mubr.bf16.mxu0 %v6531_v38 }
 0x138   : > { %v7257_v21 = vpop.f32.mrf.mxu1  ;;  %2193 = vmatmul.mubr.bf16.gmra.mxu1 %v7033_v52  ;;  %v1117_v15 = vpop.f32.mrf.mxu0 }
 0x139   : > { %2200 = vmatprep.mubr.bf16.mxu1 %v6864_v0 }
 0x13a   : > { %v7261_v51 = vpop.f32.mrf.mxu1  ;;  %v1118_v13 = vpop.f32.mrf.mxu0 }
 0x13b   : > { %v7263_v62 = vadd.f32 %v1295_v55, %v1118_v13 }
 0x13c   : > { %v7265_v24 = vpop.f32.mrf.mxu1  ;;  %v1120_v60 = vpop.f32.mrf.mxu0 }
 0x13e   : > { %v7267_v18 = vpop.f32.mrf.mxu1  ;;  %v1123_v37 = vpop.f32.mrf.mxu0  ;;  %5746 = vmatmul.mubr.bf16.vlgmr.msra.gmra.mxu0 %v6537_v40 }
 0x13f   : > { %v7271_v38 = vadd.f32 %v7185_v25, %v1123_v37  ;;  %5749 = vmatprep.mubr.bf16.mxu0 %v6568_v54 }
 0x140   : > { %v7274_v52 = vpop.f32.mrf.mxu1  ;;  %2201 = vmatmul.mubr.bf16.gmra.mxu1 %v7055_v48  ;;  %v1125_v0 = vpop.f32.mrf.mxu0 }
 0x141   : > { %2208 = vmatprep.mubr.bf16.mxu1 %v6890_v59 }
 0x142   : > { %v7278_v55 = vpop.f32.mrf.mxu1  ;;  %v1126_v60 = vpop.f32.mrf.mxu0 }
 0x143   : > { %v7281_v42 = vadd.f32 %v7192_v27, %v1126_v60 }
 0x144   : > { %v7283_v15 = vpop.f32.mrf.mxu1  ;;  %v1128_v40 = vpop.f32.mrf.mxu0 }
 0x146   : > { %v7285_v25 = vpop.f32.mrf.mxu1  ;;  %v1131_v13 = vpop.f32.mrf.mxu0  ;;  %5750 = vmatmul.mubr.bf16.gmra.mxu0 %v6575_v56 }
 0x147   : > { %v7289_v54 = vadd.f32 %v7203_v43, %v1131_v13  ;;  %5753 = vmatprep.mubr.bf16.mxu0 %v6613_v7  ;;  %v6110_v13 = vld [vmem:[#allocation3 + $0x178] sm:$0xff]  }
 0x148   : > { %v5675_v59 = vpop.f32.mrf.mxu1  ;;  %2209 = vmatmul.mubr.bf16.gmra.mxu1 %v7077_v57  ;;  %v1133_v48 = vpop.f32.mrf.mxu0  ;;  %5781 = vmatprep.subr.bf16.mxu1 %v6110_v13 }
 0x149   : > { %2216 = vmatprep.mubr.bf16.mxu1 %v6931_v53  ;;  %5782 = vmatpush3.bf16.msra.mxu1 %v6110_v13 }
 0x14a   : > { %v7294_v27 = vpop.f32.mrf.mxu1  ;;  %v1134_v37 = vpop.f32.mrf.mxu0 }
 0x14b   : > { %v7297_v0 = vadd.f32 %v7207_v29, %v1134_v37 }
 0x14c   : > { %v7299_v60 = vpop.f32.mrf.mxu1  ;;  %v1136_v56 = vpop.f32.mrf.mxu0 }
 0x14e   : > { %v7301_v40 = vpop.f32.mrf.mxu1  ;;  %v1139_v43 = vpop.f32.mrf.mxu0  ;;  %5754 = vmatmul.mubr.bf16.gmra.mxu0 %v6622_v10 }
 0x14f   : > { %v7305_v7 = vadd.f32 %v7196_v36, %v1139_v43  ;;  %5757 = vmatprep.mubr.bf16.mxu0 %v6658_v31  ;;  %v6112_v43 = vld [vmem:[#allocation3 + $0xf8] sm:$0xff]  }
 0x150   : > { %v1597_v53 = vpop.f32.mrf.mxu1  ;;  %2217 = vmatmul.mubr.bf16.gmra.mxu1 %v7091_v14  ;;  %v1141_v57 = vpop.f32.mrf.mxu0 }
 0x151   : > { %v7310_v29 = vadd.f32 %v1597_v53, %v7222_v22  ;;  %2224 = vmatprep.mubr.bf16.mxu1 %v6960_v12  ;;  %v6111_v22 = vld [vmem:[#allocation3 + $0x138] sm:$0xff]  }
 0x152   : > { %v1599_v59 = vpop.f32.mrf.mxu1  ;;  %v1142_v48 = vpop.f32.mrf.mxu0  ;;  %5217 = vmatprep.subr.bf16.mxu0 %v6111_v22 }
 0x153   : > { %v7314_v37 = vadd.f32 %v7205_v33, %v1142_v48  ;;  %5218 = vmatpush3.bf16.msra.mxu0 %v6112_v43 }
 0x154   : > { %v1600_v10 = vpop.f32.mrf.mxu1  ;;  %v1144_v36 = vpop.f32.mrf.mxu0 }
 0x155   : > { %v7317_v31 = vadd.f32 %v1600_v10, %v7231_v4  ;;  %v6114_v36 = vld [vmem:[#allocation3 + $0xf0] sm:$0xff]  }
 0x156   : > { %v1602_v14 = vpop.f32.mrf.mxu1  ;;  %v1147_v56 = vpop.f32.mrf.mxu0  ;;  %5758 = vmatmul.mubr.bf16.gmra.mxu0 %v6664_v35 }
 0x157   : > { %v7321_v12 = vadd.f32 %v7215_v49, %v1147_v56  ;;  %5761 = vmatprep.mubr.bf16.mxu0 %v6703_v1 }
 0x158   : > { %v1605_v33 = vpop.f32.mrf.mxu1  ;;  %2225 = vmatmul.mubr.bf16.gmra.mxu1 %v7106_v50  ;;  %v1149_v53 = vpop.f32.mrf.mxu0 }
 0x159   : > { %v7326_v57 = vadd.f32 %v1605_v33, %v7238_v41  ;;  %2232 = vmatprep.mubr.bf16.mxu1 %v6977_v3  ;;  %v6113_v3 = vld [vmem:[#allocation3 + $0x130] sm:$0xff]   ;;  %v6116_v53 = vld [vmem:[#allocation3 + $0x128] sm:$0xff]  }
 0x15a   : > { %v1607_v4 = vpop.f32.mrf.mxu1  ;;  %v1150_v35 = vpop.f32.mrf.mxu0  ;;  %5219 = vmatprep.subr.bf16.mxu0 %v6113_v3 }
 0x15b   : > { %v7330_v13 = vadd.f32 %v7219_v61, %v1150_v35  ;;  %5220 = vmatpush3.bf16.msra.mxu0 %v6114_v36  ;;  %v7382_v36 = vld [vmem:[%s6463_s10 + $0xec] ss:$0 sps:$4 sm:$0x11]  }
 0x15c   : > { %v1608_v49 = vpop.f32.mrf.mxu1  ;;  %v1152_v59 = vpop.f32.mrf.mxu0  ;;  %5221 = vmatprep.subr.bf16.mxu0 %v6116_v53 }
 0x15d   : > { %v7333_v1 = vadd.f32 %v1608_v49, %v7247_v5 }
 0x15e   : > { %v1610_v48 = vpop.f32.mrf.mxu1  ;;  %v1155_v50 = vpop.f32.mrf.mxu0  ;;  %5762 = vmatmul.mubr.bf16.gmra.mxu0 %v8572_v19  ;;  %v6115_v19 = vld [vmem:[#allocation3 + $0x170] sm:$0xff]  }
 0x15f   : > { %v7337_v41 = vadd.f32 %v7211_v20, %v1155_v50  ;;  %5765 = vmatprep.mubr.bf16.mxu0 %v8573_v30  ;;  %5783 = vmatprep.subr.bf16.mxu1 %v6115_v19  ;;  %v6118_v50 = vld [vmem:[#allocation3 + $0x120] sm:$0xff]  }
 0x160   : > { %v1613_v10 = vpop.f32.mrf.mxu1  ;;  %2233 = vmatmul.mubr.bf16.gmra.mxu1 %v7119_v34  ;;  %v1157_v61 = vpop.f32.mrf.mxu0 }
 0x161   : > { %v7342_v14 = vadd.f32 %v1613_v10, %v7254_v58  ;;  %2240 = vmatprep.mubr.bf16.mxu1 %v6998_v8  ;;  %5784 = vmatpush3.bf16.msra.mxu1 %v6115_v19  ;;  %v6119_v10 = vld [vmem:[#allocation3 + $0xe0] sm:$0xff]   ;;  %v7379_v61 = vld [vmem:[%s6463_s10 + $0xe4] sm:$0xff]   ;;  %v1940_v19 = vrot.slane %v7382_v36, 1 }
 0x162   : > { %v1615_v5 = vpop.f32.mrf.mxu1  ;;  %v1158_v56 = vpop.f32.mrf.mxu0 }
 0x163   : > { %v7346_v20 = vadd.f32 %v7217_v11, %v1158_v56 }
 0x164   : > { %v1616_v30 = vpop.f32.mrf.mxu1  ;;  %v1160_v22 = vpop.f32.mrf.mxu0 }
 0x165   : > { %v7349_v34 = vadd.f32 %v1616_v30, %v7263_v62  ;;  %v6117_v62 = vld [vmem:[#allocation3 + $0xe8] sm:$0xff]  }
 0x166   : > { %v1618_v43 = vpop.f32.mrf.mxu1  ;;  %v1163_v58 = vpop.f32.mrf.mxu0  ;;  %5766 = vmatmul.mubr.bf16.gmra.mxu0 %v8574_v23 }
 0x167   : > { %v7353_v8 = vadd.f32 %v7229_v28, %v1163_v58  ;;  %5769 = vmatprep.mubr.bf16.mxu0 %v8575_v46  ;;  %5222 = vmatpush3.bf16.msra.mxu0 %v6117_v62  ;;  %v8582_v43 = vld [vmem:[#allocation15_spill] sm:$0xff] }
 0x168   : > { %v1621_v33 = vpop.f32.mrf.mxu1  ;;  %2241 = vmatmul.mubr.bf16.gmra.mxu1 %v7129_v16  ;;  %v1165_v11 = vpop.f32.mrf.mxu0  ;;  %5223 = vmatprep.subr.bf16.mxu0 %v6118_v50 }
 0x169   : > { %v7358_v4 = vadd.f32 %v1621_v33, %v7271_v38  ;;  %2248 = vmatprep.mubr.bf16.mxu1 %v7023_v32  ;;  %v6122_v11 = vld [vmem:[#allocation3 + $0xd8] sm:$0xff]  }
 0x16a   : > { %v1623_v35 = vpop.f32.mrf.mxu1  ;;  %v1166_v49 = vpop.f32.mrf.mxu0 }
 0x16b   : > { %v7362_v23 = vadd.f32 %v7235_v63, %v1166_v49  ;;  %5224 = vmatpush3.bf16.msra.mxu0 %v6119_v10 }
 0x16c   : > { %v1624_v28 = vpop.f32.mrf.mxu1  ;;  %v1168_v46 = vpop.f32.mrf.mxu0 }
 0x16d   : > { %v7365_v16 = vadd.f32 %v1624_v28, %v7281_v42  ;;  %v8583_v28 = vld [vmem:[#allocation20_spill] sm:$0xff] }
 0x16e   : > { %v1626_v59 = vpop.f32.mrf.mxu1  ;;  %v7367_v38 = vpop.f32.mrf.mxu0  ;;  %5770 = vmatmul.mubr.bf16.gmra.mxu0 %v8578_v26 }
 0x16f   : > { %5773 = vmatprep.mubr.bf16.mxu0 %v8579_v44 }
 0x170   : > { %v1629_v32 = vpop.f32.mrf.mxu1  ;;  %2249 = vmatmul.mubr.bf16.gmra.mxu1 %v7136_v6  ;;  %v1173_v63 = vpop.f32.mrf.mxu0  ;;  %v6120_v6 = vld [vmem:[#allocation3 + $0x168] sm:$0xff]  }
 0x171   : > { %v7373_v48 = vadd.f32 %v1629_v32, %v7289_v54  ;;  %2256 = vmatprep.mubr.bf16.mxu1 %v7046_v39  ;;  %5785 = vmatprep.subr.bf16.mxu1 %v6120_v6  ;;  %v1939_v39 = vrot.slane %v7379_v61, 1  ;;  %v8584_v32 = vld [vmem:[#allocation16_spill] sm:$0xff] }
 0x172   : > { %v1631_v3 = vpop.f32.mrf.mxu1  ;;  %v7376_v42 = vpop.f32.mrf.mxu0  ;;  %5786 = vmatpush3.bf16.msra.mxu1 %v6120_v6  ;;  %v8544_v6 = vmov 0.0  }
 0x173   : > { %2605 = vst [vmem:[#allocation2] sm:$0x1] %v8544_v6  ;;  %2606 = vst [vmem:[#allocation2 + $0x18] sm:$0x1] %v8544_v6 }
 0x174   : > { %v1632_v44 = vpop.f32.mrf.mxu1  ;;  %v1176_v26 = vpop.f32.mrf.mxu0  ;;  %2607 = vst [vmem:[#allocation2 + $0x30] sm:$0x1] %v8544_v6  ;;  %2608 = vst [vmem:[#allocation2 + $0x48] sm:$0x1] %v8544_v6 }
 0x175   : > { %v7385_v5 = vadd.f32 %v1632_v44, %v7297_v0  ;;  %2609 = vst [vmem:[#allocation2 + $0x60] sm:$0x1] %v8544_v6  ;;  %2610 = vst [vmem:[#allocation2 + $0x78] sm:$0x1] %v8544_v6 }
 0x176   : > { %v1634_v54 = vpop.f32.mrf.mxu1  ;;  %v7387_v56 = vpop.f32.mrf.mxu0  ;;  %5774 = vmatmul.mubr.bf16.gmra.mxu0 %v6843_v47  ;;  %v6121_v47 = vld [vmem:[#allocation3 + $0x118] sm:$0xff]   ;;  %2611 = vst [vmem:[#allocation2 + $0x90] sm:$0x1] %v8544_v6  ;;  %2612 = vst [vmem:[#allocation2 + $0xa8] sm:$0x1] %v8544_v6 }
 0x177   : > { %5777 = vmatprep.mubr.bf16.mxu0 %v6870_v17  ;;  %v1941_v17 = vsel %vm725_vm0, %v1939_v39, %v1940_v19  ;;  %5225 = vmatprep.subr.bf16.mxu0 %v6121_v47  ;;  %2613 = vst [vmem:[#allocation2 + $0xc0] sm:$0x1] %v8544_v6  ;;  %2614 = vst [vmem:[#allocation2 + $0xd8] sm:$0x1] %v8544_v6  ;;  %v8586_v19 = vld [vmem:[#allocation17_spill] sm:$0xff] }
 0x178   : > { %v1637_v30 = vpop.f32.mrf.mxu1  ;;  %2257 = vmatmul.mubr.bf16.gmra.mxu1 %v7147_v9  ;;  %v1181_v22 = vpop.f32.mrf.mxu0  ;;  %5226 = vmatpush3.bf16.msra.mxu0 %v6122_v11  ;;  %2615 = vst [vmem:[#allocation2 + $0xf0] sm:$0x1] %v8544_v6  ;;  %2616 = vst [vmem:[#allocation2 + $0x108] sm:$0x1] %v8544_v6  ;;  %v6125_v47 = vld [vmem:[#allocation3 + $0x160] sm:$0xff]  }
 0x179   : > { %v7395_v0 = vadd.f32 %v1637_v30, %v7305_v7  ;;  %2264 = vmatprep.mubr.bf16.mxu1 %v8582_v43  ;;  %2617 = vst [vmem:[#allocation2 + $0x120] sm:$0x1] %v8544_v6  ;;  %2618 = vst [vmem:[#allocation2 + $0x138] sm:$0x1] %v8544_v6  ;;  %v6123_v30 = vld [vmem:[#allocation3 + $0x110] sm:$0xff]   ;;  %5787 = vmatprep.subr.bf16.mxu1 %v6125_v47 }
 0x17a   : > { %v1639_v58 = vpop.f32.mrf.mxu1  ;;  %v7398_v33 = vpop.f32.mrf.mxu0  ;;  %2619 = vst [vmem:[#allocation2 + $0x150] sm:$0x1] %v8544_v6  ;;  %2620 = vst [vmem:[#allocation2 + $0x168] sm:$0x1] %v8544_v6  ;;  %v6124_v22 = vld [vmem:[#allocation3 + $0xd0] sm:$0xff]   ;;  %5227 = vmatprep.subr.bf16.mxu0 %v6123_v30  ;;  %5788 = vmatpush3.bf16.msra.mxu1 %v6125_v47 }
 0x17b   : > { %2621 = vst [vmem:[#allocation2 + $0x180] sm:$0x1] %v8544_v6  ;;  %2623 = vst [vmem:[#allocation2 + $0x11] sm:$0x1] %v8544_v6 }
 0x17c   : > { %v1640_v53 = vpop.f32.mrf.mxu1  ;;  %v1184_v62 = vpop.f32.mrf.mxu0  ;;  %2624 = vst [vmem:[#allocation2 + $0x29] sm:$0x1] %v8544_v6  ;;  %2625 = vst [vmem:[#allocation2 + $0x41] sm:$0x1] %v8544_v6  ;;  %5228 = vmatpush3.bf16.msra.mxu0 %v6124_v22 }
 0x17d   : > { %v7402_v35 = vadd.f32 %v1640_v53, %v7314_v37  ;;  %2626 = vst [vmem:[#allocation2 + $0x59] sm:$0x1] %v8544_v6  ;;  %2627 = vst [vmem:[#allocation2 + $0x71] sm:$0x1] %v8544_v6 }
 0x17e   : > { %v1642_v9 = vpop.f32.mrf.mxu1  ;;  %v7404_v49 = vpop.f32.mrf.mxu0  ;;  %5778 = vmatmul.mubr.bf16.gmra.mxu0 %v1941_v17  ;;  %2628 = vst [vmem:[#allocation2 + $0x89] sm:$0x1] %v8544_v6  ;;  %2629 = vst [vmem:[#allocation2 + $0xa1] sm:$0x1] %v8544_v6 }
 0x17f   : > { %2630 = vst [vmem:[#allocation2 + $0xb9] sm:$0x1] %v8544_v6  ;;  %2631 = vst [vmem:[#allocation2 + $0xd1] sm:$0x1] %v8544_v6 }
 0x180   : > { %v1645_v7 = vpop.f32.mrf.mxu1  ;;  %2265 = vmatmul.mubr.bf16.gmra.mxu1 %v8583_v28  ;;  %v1189_v46 = vpop.f32.mrf.mxu0  ;;  %2632 = vst [vmem:[#allocation2 + $0xe9] sm:$0x1] %v8544_v6  ;;  %2633 = vst [vmem:[#allocation2 + $0x101] sm:$0x1] %v8544_v6  ;;  %v8587_v28 = vld [vmem:[#allocation22_spill] sm:$0xff] }
 0x181   : > { %v7408_v59 = vadd.f32 %v1645_v7, %v7321_v12  ;;  %2272 = vmatprep.mubr.bf16.mxu1 %v8584_v32  ;;  %2634 = vst [vmem:[#allocation2 + $0x119] sm:$0x1] %v8544_v6  ;;  %2635 = vst [vmem:[#allocation2 + $0x131] sm:$0x1] %v8544_v6 }
 0x182   : > { %v1647_v63 = vpop.f32.mrf.mxu1  ;;  %v7411_v50 = vpop.f32.mrf.mxu0  ;;  %2636 = vst [vmem:[#allocation2 + $0x149] sm:$0x1] %v8544_v6  ;;  %2637 = vst [vmem:[#allocation2 + $0x161] sm:$0x1] %v8544_v6 }
 0x183   : > { %2638 = vst [vmem:[#allocation2 + $0x179] sm:$0x1] %v8544_v6  ;;  %2639 = vst [vmem:[#allocation2 + $0x191] sm:$0x1] %v8544_v6  ;;  %v8588_v63 = vld [vmem:[#allocation18_spill] sm:$0xff] }
 0x184   : > { %v1648_v3 = vpop.f32.mrf.mxu1  ;;  %v1192_v37 = vpop.f32.mrf.mxu0  ;;  %2640 = vst [vmem:[#allocation2 + $0x1a9] sm:$0x1] %v8544_v6 }
 0x185   : > { %v7414_v10 = vadd.f32 %v1648_v3, %v7330_v13  ;;  %v8585_v13 = vld [vmem:[#allocation21_spill] sm:$0xff]  ;;  %v6126_v3 = vld [vmem:[#allocation3 + $0x108] sm:$0xff]  }
 0x186   : > { %v1650_v44 = vpop.f32.mrf.mxu1  ;;  %v7416_v26 = vpop.f32.mrf.mxu0  ;;  %5229 = vmatprep.subr.bf16.mxu0 %v6126_v3 }
 0x187   : > { %v1929_v44 = vshll.u32 %v7379_v61, 16 }
 0x188   : > { %v1653_v12 = vpop.f32.mrf.mxu1  ;;  %2273 = vmatmul.mubr.bf16.gmra.mxu1 %v8585_v13  ;;  %v1197_v54 = vpop.f32.mrf.mxu0  ;;  %v6130_v13 = vld [vmem:[#allocation3 + $0x150] sm:$0xff]  }
 0x189   : > { %v7455_v39 = vadd.f32 %v1653_v12, %v7337_v41  ;;  %2280 = vmatprep.mubr.bf16.mxu1 %v8586_v19  ;;  %v6128_v41 = vld [vmem:[#allocation3 + $0x158] sm:$0xff]   ;;  %v6127_v12 = vld [vmem:[#allocation3 + $0xc8] sm:$0xff]   ;;  %v1931_v47 = vrot.slane %v1929_v44, 1 }
 0x18a   : > { %v1655_v43 = vpop.f32.mrf.mxu1  ;;  %v7458_v58 = vpop.f32.mrf.mxu0  ;;  %5789 = vmatprep.subr.bf16.mxu1 %v6128_v41  ;;  %5230 = vmatpush3.bf16.msra.mxu0 %v6127_v12 }
 0x18b   : > { %5790 = vmatpush3.bf16.msra.mxu1 %v6128_v41  ;;  %v1927_v43 = vshrl.u32 %v7379_v61, 16 }
 0x18c   : > { %v1656_v17 = vpop.f32.mrf.mxu1  ;;  %v1200_v11 = vpop.f32.mrf.mxu0  ;;  %5791 = vmatprep.subr.bf16.mxu1 %v6130_v13 }
 0x18d   : > { %v7461_v53 = vadd.f32 %v1656_v17, %v7346_v20  ;;  %v1934_v17 = vshll.u32 %v7382_v36, 16  ;;  %v6129_v11 = vld [vmem:[#allocation3 + $0x100] sm:$0xff]   ;;  %v1932_v36 = vor.u32 %v1931_v47, %v1927_v43  ;;  %v1357_v43 = vadd.f32 %v7245_v45, %v7387_v56 }
 0x18e   : > { %v1658_v62 = vpop.f32.mrf.mxu1  ;;  %v7463_v9 = vpop.f32.mrf.mxu0  ;;  %5231 = vmatprep.subr.bf16.mxu0 %v6129_v11 }
 0x18f   : > { %5792 = vmatpush3.bf16.msra.mxu1 %v6130_v13  ;;  %v8589_v62 = vld [vmem:[#allocation9_spill] sm:$0xff]  ;;  %v1936_v13 = vrot.slane %v1934_v17, 1  ;;  %v6198_v17 = vld [vmem:[%s6463_s10 + $0xd8] sm:$0xff]   ;;  %s6315_s10 = smov [#allocation6]  }
 0x190   : > { %v1661_v7 = vpop.f32.mrf.mxu1  ;;  %2281 = vmatmul.mubr.bf16.gmra.mxu1 %v8587_v28  ;;  %v1205_v46 = vpop.f32.mrf.mxu0  ;;  %v1349_v41 = vadd.f32 %v8589_v62, %v7367_v38  ;;  %v6132_v28 = vld [vmem:[#allocation3 + $0x148] sm:$0xff]   ;;  %s6231_s8 = sshll.u32 %s6315_s10, 4  ;;  %s6232_s8 = int_to_ptr.vmem [resolvable:$false] %s6231_s8 }
 0x191   : > { %v7467_v32 = vadd.f32 %v1661_v7, %v7353_v8  ;;  %2288 = vmatprep.mubr.bf16.mxu1 %v8588_v63  ;;  %v6131_v7 = vld [vmem:[#allocation3 + $0xc0] sm:$0xff]   ;;  %5793 = vmatprep.subr.bf16.mxu1 %v6132_v28  ;;  %v8592_v38 = vld [vmem:[#allocation10_spill] sm:$0xff]  ;;  %s6233_s9 = scalar_lea.vmem %s6232_s8, 8192  ;;  %p6234_p0 = scmp.lt.s32.totalorder %s8463_s24, %s6232_s8 }
 0x192   : > { %v1663_v37 = vpop.f32.mrf.mxu1  ;;  %v7470_v20 = vpop.f32.mrf.mxu0  ;;  %5232 = vmatpush3.bf16.msra.mxu0 %v6131_v7  ;;  %v1937_v7 = vsel %vm490_vm1, %v1932_v36, %v1936_v13  ;;  %p6235_p1 = scmp.lt.s32.totalorder %s6233_s9, %s6227_s21 }
 0x193   : > { %v8591_v37 = vld [vmem:[#allocation19_spill] sm:$0xff]  ;;  %5794 = vmatpush3.bf16.msra.mxu1 %v6132_v28 }
 0x194   : > { %v1664_v54 = vpop.f32.mrf.mxu1  ;;  %v1208_v19 = vpop.f32.mrf.mxu0  ;;  %p6236_p2 = por %p6235_p1, %p6234_p0 }
 0x195   : > { %v7474_v30 = vadd.f32 %v1664_v54, %v7362_v23  ;;  %v8590_v23 = vld [vmem:[#allocation23_spill] sm:$0xff]  ;;  %v1352_v54 = vadd.f32 %v8592_v38, %v7376_v42  ;;  %v6133_v19 = vld [vmem:[#allocation3 + $0x140] sm:$0xff]  }
 0x196   : > { %v1666_v8 = vpop.f32.mrf.mxu1  ;;  %v7476_v22 = vpop.f32.mrf.mxu0  ;;  %5795 = vmatprep.subr.bf16.mxu1 %v6133_v19  ;;  %p6237_p3 = pnand %p6236_p2, %p6230_p13 }
 0x197   : > { %5796 = vmatpush3.bf16.msra.mxu1 %v6133_v19 }
 0x198   : > { %v1669_v46 = vpop.f32.mrf.mxu1  ;;  %2289 = vmatmul.mubr.bf16.gmra.mxu1 %v8590_v23  ;;  %v1213_v63 = vpop.f32.mrf.mxu0 }
 0x199   : > { %v7483_v3 = vadd.f32 %v1669_v46, %v1349_v41  ;;  %2296 = vmatprep.mubr.bf16.mxu1 %v8591_v37  ;;  %v1360_v37 = vadd.f32 %v7251_v2, %v7398_v33 }
 0x19a   : > { %v1671_v44 = vpop.f32.mrf.mxu1  ;;  %v7486_v12 = vpop.f32.mrf.mxu0 }
 0x19b   : > { %v7504_v44 = vld [vmem:[#allocation3 + $0xb8] sm:$0xff]  }
 0x19c   : > { %v1672_v8 = vpop.f32.mrf.mxu1  ;;  %v1216_v62 = vpop.f32.mrf.mxu0  ;;  %5829 = vmatprep.subr.bf16.mxu0 %v7504_v44 }
 0x19d   : > { %v7490_v11 = vadd.f32 %v1672_v8, %v1352_v54  ;;  %v8593_v54 = vld [vmem:[#allocation11_spill] sm:$0xff] }
 0x19e   : > { %v1674_v41 = vpop.f32.mrf.mxu1  ;;  %v7492_v46 = vpop.f32.mrf.mxu0  ;;  %v1365_v19 = vadd.f32 %v8593_v54, %v7404_v49  ;;  %v1373_v49 = vadd.f32 %v7261_v51, %v7416_v26 }
 0x1a0   : > { %v1677_v47 = vpop.f32.mrf.mxu1  ;;  %2297 = vmatmul.mubr.bf16.gmra.mxu1 %v6198_v17  ;;  %v1221_v42 = vpop.f32.mrf.mxu0 }
 0x1a1   : > { %v7498_v28 = vadd.f32 %v1677_v47, %v1357_v43  ;;  %2304 = vmatprep.mubr.bf16.mxu1 %v1937_v7  ;;  %v8594_v7 = vld [vmem:[#allocation12_spill] sm:$0xff] }
 0x1a2   : > { %v1679_v23 = vpop.f32.mrf.mxu1  ;;  %v7500_v63 = vpop.f32.mrf.mxu0  ;;  %v1368_v43 = vadd.f32 %v8594_v7, %v7411_v50 }
 0x1a4   : > { %v1680_v36 = vpop.f32.mrf.mxu1  ;;  %v1224_v13 = vpop.f32.mrf.mxu0 }
 0x1a5   : > { %v7506_v38 = vadd.f32 %v1680_v36, %v1360_v37 }
 0x1a6   : > { %v1682_v45 = vpop.f32.mrf.mxu1  ;;  %v7509_v56 = vpop.f32.mrf.mxu0 }
 0x1a8   : > { %v1685_v8 = vpop.f32.mrf.mxu1  ;;  %2305 = vmatmul.mubr.bf16.gmra.mxu1 %v7379_v61  ;;  %v1229_v62 = vpop.f32.mrf.mxu0 }
 0x1a9   : > { %v7514_v41 = vadd.f32 %v1685_v8, %v1365_v19  ;;  %v1376_v19 = vadd.f32 %v7267_v18, %v7458_v58 }
 0x1aa   : > { %v1687_v2 = vpop.f32.mrf.mxu1  ;;  %v7516_v33 = vpop.f32.mrf.mxu0 }
 0x1ac   : > { %v1688_v47 = vpop.f32.mrf.mxu1  ;;  %v1232_v17 = vpop.f32.mrf.mxu0 }
 0x1ad   : > { %v7520_v42 = vadd.f32 %v1688_v47, %v1368_v43  ;;  %v1381_v43 = vadd.f32 %v7257_v21, %v7463_v9 }
 0x1ae   : > { %v1690_v23 = vpop.f32.mrf.mxu1  ;;  %v1235_v37 = vpop.f32.mrf.mxu0 }
 0x1af   : > { %v1384_v37 = vadd.f32 %v7265_v24, %v7470_v20 }
 0x1b0   : > { %v1693_v36 = vpop.f32.mrf.mxu1  ;;  %v1237_v61 = vpop.f32.mrf.mxu0 }
 0x1b1   : > { %v7524_v13 = vadd.f32 %v1693_v36, %v1373_v49 }
 0x1b2   : > { %v1695_v45 = vpop.f32.mrf.mxu1  ;;  %v7526_v54 = vpop.f32.mrf.mxu0 }
 0x1b3   : > { %v1389_v45 = vadd.f32 %v7278_v55, %v7476_v22 }
 0x1b4   : > { %v1696_v50 = vpop.f32.mrf.mxu1  ;;  %v1240_v8 = vpop.f32.mrf.mxu0 }
 0x1b5   : > { %v7530_v62 = vadd.f32 %v1696_v50, %v1376_v19 }
 0x1b6   : > { %v1698_v2 = vpop.f32.mrf.mxu1  ;;  %v5695_v7 = vpop.f32.mrf.mxu0 }
 0x1b7   : > { %v7535_v51 = vadd.f32 %v5695_v7, %v7326_v57  ;;  %v1392_v2 = vadd.f32 %v7285_v25, %v7486_v12 }
 0x1b8   : > { %v1701_v26 = vpop.f32.mrf.mxu1  ;;  %v1774_v47 = vpop.f32.mrf.mxu0 }
 0x1b9   : > { %v7537_v17 = vadd.f32 %v1701_v26, %v1381_v43  ;;  %v7540_v23 = vadd.f32 %v1774_v47, %v7310_v29  ;;  %v1397_v47 = vadd.f32 %v7274_v52, %v7492_v46 }
 0x1ba   : > { %v1703_v18 = vpop.f32.mrf.mxu1  ;;  %v5696_v58 = vpop.f32.mrf.mxu0 }
 0x1bb   : > { %v7545_v49 = vadd.f32 %v5696_v58, %v7333_v1 }
 0x1bc   : > { %v1704_v36 = vpop.f32.mrf.mxu1  ;;  %v7547_v21 = vpop.f32.mrf.mxu0 }
 0x1bd   : > { %v7549_v57 = vadd.f32 %v1704_v36, %v1384_v37  ;;  %v1400_v36 = vadd.f32 %v7283_v15, %v7500_v63 }
 0x1be   : > { %v1706_v9 = vpop.f32.mrf.mxu1  ;;  %v5699_v61 = vpop.f32.mrf.mxu0 }
 0x1bf   : > { %v7554_v29 = vadd.f32 %v5699_v61, %v7358_v4 }
 0x1c0   : > { %v1709_v19 = vpop.f32.mrf.mxu1  ;;  %v1790_v50 = vpop.f32.mrf.mxu0 }
 0x1c1   : > { %v7556_v8 = vadd.f32 %v1709_v19, %v1389_v45  ;;  %v7559_v24 = vadd.f32 %v1790_v50, %v7342_v14  ;;  %v1405_v19 = vadd.f32 %v7294_v27, %v7509_v56 }
 0x1c2   : > { %v1711_v1 = vpop.f32.mrf.mxu1  ;;  %v5700_v20 = vpop.f32.mrf.mxu0 }
 0x1c3   : > { %v7564_v7 = vadd.f32 %v5700_v20, %v7365_v16 }
 0x1c4   : > { %v1712_v43 = vpop.f32.mrf.mxu1  ;;  %v7566_v55 = vpop.f32.mrf.mxu0 }
 0x1c5   : > { %v7568_v4 = vadd.f32 %v1712_v43, %v1392_v2  ;;  %v1408_v2 = vadd.f32 %v7301_v40, %v7516_v33 }
 0x1c6   : > { %v1714_v22 = vpop.f32.mrf.mxu1  ;;  %v5703_v26 = vpop.f32.mrf.mxu0 }
 0x1c7   : > { %v7573_v14 = vadd.f32 %v5703_v26, %v7395_v0 }
 0x1c8   : > { %v1717_v18 = vpop.f32.mrf.mxu1  ;;  %v1806_v58 = vpop.f32.mrf.mxu0 }
 0x1c9   : > { %v7575_v37 = vadd.f32 %v1717_v18, %v1397_v47  ;;  %v7578_v25 = vadd.f32 %v1806_v58, %v7373_v48 }
 0x1ca   : > { %v1719_v16 = vpop.f32.mrf.mxu1  ;;  %v5704_v12 = vpop.f32.mrf.mxu0 }
 0x1cb   : > { %v7583_v9 = vadd.f32 %v5704_v12, %v7402_v35 }
 0x1cc   : > { %v1720_v61 = vpop.f32.mrf.mxu1  ;;  %v7585_v52 = vpop.f32.mrf.mxu0 }
 0x1cd   : > { %v1721_v0 = vadd.f32 %v1720_v61, %v1400_v36 }
 0x1ce   : > { %v1722_v46 = vpop.f32.mrf.mxu1  ;;  %v5707_v45 = vpop.f32.mrf.mxu0 }
 0x1cf   : > { %v7590_v48 = vadd.f32 %v5707_v45, %v7455_v39 }
 0x1d0   : > { %v1725_v50 = vpop.f32.mrf.mxu1  ;;  %v1822_v1 = vpop.f32.mrf.mxu0 }
 0x1d1   : > { %v1726_v20 = vadd.f32 %v1725_v50, %v1405_v19  ;;  %v7593_v15 = vadd.f32 %v1822_v1, %v7408_v59 }
 0x1d2   : > { %v1727_v35 = vpop.f32.mrf.mxu1  ;;  %v5708_v63 = vpop.f32.mrf.mxu0 }
 0x1d3   : > { %v7598_v43 = vadd.f32 %v5708_v63, %v7461_v53  ;;  %v1416_v53 = vadd.f32 %v7299_v60, %v7526_v54  ;;  %v6139_v60 = vld [vmem:[#allocation3 + $0x78] sm:$0xff]  }
 0x1d4   : > { %v1728_v22 = vpop.f32.mrf.mxu1  ;;  %v7600_v26 = vpop.f32.mrf.mxu0  ;;  %5353 = vmatprep.subr.bf16.mxu1 %v6139_v60 }
 0x1d5   : > { %v7602_v27 = vadd.f32 %v1728_v22, %v1408_v2 }
 0x1d6   : > { %v1730_v39 = vpop.f32.mrf.mxu1  ;;  %v5711_v56 = vpop.f32.mrf.mxu0 }
 0x1d7   : > { %8595 = vst [vmem:[#allocation13_spill] sm:$0xff] %v7602_v27  ;;  %v7605_v47 = vadd.f32 %v5711_v56, %v7483_v3 }
 0x1d8   : > { %v1733_v59 = vpop.f32.mrf.mxu1  ;;  %v1838_v18 = vpop.f32.mrf.mxu0 }
 0x1d9   : > { %v7608_v58 = vadd.f32 %v1838_v18, %v7467_v32 }
 0x1da   : > { %v1735_v16 = vpop.f32.mrf.mxu1  ;;  %v5712_v40 = vpop.f32.mrf.mxu0 }
 0x1db   : > { %v7613_v33 = vadd.f32 %v5712_v40, %v7490_v11 }
 0x1dc   : > { %v1736_v12 = vpop.f32.mrf.mxu1  ;;  %v7615_v36 = vpop.f32.mrf.mxu0 }
 0x1dd   : > { %v1737_v61 = vadd.f32 %v1736_v12, %v1416_v53 }
 0x1de   : > { %v1738_v46 = vpop.f32.mrf.mxu1  ;;  %v5715_v3 = vpop.f32.mrf.mxu0 }
 0x1df   : > { %v7618_v45 = vadd.f32 %v5715_v3, %v7514_v41 }
 0x1e0   : > { %v2170_v19 = vpop.f32.mrf.mxu1  ;;  %v1854_v32 = vpop.f32.mrf.mxu0 }
 0x1e1   : > { %v7621_v50 = vadd.f32 %v1854_v32, %v7498_v28 }
 0x1e2   : > { %v2172_v1 = vpop.f32.mrf.mxu1  ;;  %v5716_v35 = vpop.f32.mrf.mxu0 }
 0x1e3   : > { %v7624_v11 = vadd.f32 %v5716_v35, %v7520_v42 }
 0x1e4   : > { %v2173_v54 = vpop.f32.mrf.mxu1  ;;  %v7626_v63 = vpop.f32.mrf.mxu0 }
 0x1e6   : > { %v2175_v2 = vpop.f32.mrf.mxu1  ;;  %v5719_v22 = vpop.f32.mrf.mxu0 }
 0x1e7   : > { %v7629_v41 = vadd.f32 %v5719_v22, %v7537_v17 }
 0x1e8   : > { %v2178_v39 = vpop.f32.mrf.mxu1  ;;  %v1870_v56 = vpop.f32.mrf.mxu0 }
 0x1e9   : > { %v7632_v28 = vadd.f32 %v1870_v56, %v7524_v13 }
 0x1ea   : > { %v2180_v59 = vpop.f32.mrf.mxu1  ;;  %v5720_v18 = vpop.f32.mrf.mxu0 }
 0x1eb   : > { %v7635_v16 = vadd.f32 %v5720_v18, %v7549_v57 }
 0x1ec   : > { %v2181_v42 = vpop.f32.mrf.mxu1  ;;  %v7637_v40 = vpop.f32.mrf.mxu0 }
 0x1ee   : > { %v2183_v53 = vpop.f32.mrf.mxu1  ;;  %v5723_v12 = vpop.f32.mrf.mxu0 }
 0x1ef   : > { %v7640_v46 = vadd.f32 %v5723_v12, %v7575_v37 }
 0x1f0   : > { %v2186_v17 = vpop.f32.mrf.mxu1  ;;  %v1886_v3 = vpop.f32.mrf.mxu0 }
 0x1f1   : > { %v7643_v32 = vadd.f32 %v1886_v3, %v7556_v8 }
 0x1f2   : > { %v2188_v13 = vpop.f32.mrf.mxu1  ;;  %v5724_v1 = vpop.f32.mrf.mxu0 }
 0x1f3   : > { %v7645_v35 = vadd.f32 %v5724_v1, %v1721_v0  ;;  %v7658_v1 = vld [vmem:[%s8516_s2] ss:$0 sm:$0xff] }
 0x1f4   : > { %v2189_v60 = vpop.f32.mrf.mxu1  ;;  %v7647_v57 = vpop.f32.mrf.mxu0 }
 0x1f6   : > { %v2191_v2 = vpop.f32.mrf.mxu1  ;;  %v5727_v22 = vpop.f32.mrf.mxu0 }
 0x1f8   : > { %v2194_v56 = vpop.f32.mrf.mxu1  ;;  %v1902_v59 = vpop.f32.mrf.mxu0 }
 0x1f9   : > { %v7649_v18 = vadd.f32 %v1902_v59, %v1726_v20 }
 0x1fa   : > { %v2196_v37 = vpop.f32.mrf.mxu1  ;;  %v5728_v53 = vpop.f32.mrf.mxu0 }
 0x1fb   : > { %8596 = vst [vmem:[#allocation14_spill] sm:$0xff] %v7649_v18  ;;  %v7651_v12 = vadd.f32 %v5728_v53, %v1737_v61 }
 0x1fc   : > { %v2197_v6 = vpop.f32.mrf.mxu1  ;;  %v7653_v8 = vpop.f32.mrf.mxu0 }
 0x1fd   : > { %8597 = vst [vmem:[#allocation15_spill] sm:$0xff] %v7651_v12  ;;  %8598 = vst [vmem:[#allocation20_spill] sm:$0xff] %v7653_v8 }
 0x1fe   : > { %v2199_v3 = vpop.f32.mrf.mxu1  ;;  %v5747_v13 = vpop.f32.mrf.mxu0 }
 0x1ff   : > { %v2356_v0 = vadd.f32 %v5747_v13, %v2178_v39  ;;  %v1778_v13 = vadd.f32 %v7547_v21, %v7317_v31 }
 0x200   : > { %v2202_v2 = vpop.f32.mrf.mxu1  ;;  %v2347_v22 = vpop.f32.mrf.mxu0 }
 0x201   : > { %v2492_v20 = vadd.f32 %v2356_v0, %v7535_v51  ;;  %v2348_v59 = vadd.f32 %v2347_v22, %v2170_v19 }
 0x202   : > { %v2204_v37 = vpop.f32.mrf.mxu1  ;;  %v5748_v27 = vpop.f32.mrf.mxu0 }
 0x203   : > { %v2535_v61 = vadd.f32 %v7658_v1, %v2492_v20  ;;  %v2490_v53 = vadd.f32 %v2348_v59, %v7540_v23  ;;  %v2359_v12 = vadd.f32 %v5748_v27, %v2181_v42  ;;  %v8599_v27 = vmov 0.0  }
 0x204   : > { %v7663_v3 = vpop.f32.mrf.mxu1  ;;  %v2350_v39 = vpop.f32.mrf.mxu0 }
 0x205   : > { %2571 = vst [vmem:[#allocation2 + $0x19] sm:$0xff] %v2535_v61  ;;  %v2533_v8 = vadd.f32 %v7658_v1, %v2490_v53  ;;  %v2493_v18 = vadd.f32 %v2359_v12, %v7545_v49  ;;  %v2351_v51 = vadd.f32 %v2350_v39, %v2173_v54  ;;  %v1794_v53 = vadd.f32 %v7566_v55, %v7349_v34 }
 0x206   : > { %v2207_v19 = vpop.f32.mrf.mxu1  ;;  %v5751_v0 = vpop.f32.mrf.mxu0 }
 0x207   : > { %2569 = vst [vmem:[#allocation2 + $0x1] sm:$0xff] %v2533_v8  ;;  %v2536_v22 = vadd.f32 %v7658_v1, %v2493_v18  ;;  %v2491_v20 = vadd.f32 %v2351_v51, %v1778_v13  ;;  %v2372_v23 = vadd.f32 %v5751_v0, %v2194_v56 }
 0x208   : > { %2645 = vst [vmem:[#allocation2] sm:$0xff] %v8599_v27  ;;  %v2210_v42 = vpop.f32.mrf.mxu1  ;;  %v2363_v59 = vpop.f32.mrf.mxu0 }
 0x209   : > { %2572 = vst [vmem:[#allocation2 + $0x21] sm:$0xff] %v2536_v22  ;;  %v2534_v31 = vadd.f32 %v7658_v1, %v2491_v20  ;;  %v2496_v21 = vadd.f32 %v2372_v23, %v7554_v29  ;;  %v2364_v37 = vadd.f32 %v2363_v59, %v2186_v17 }
 0x20a   : > { %v2212_v61 = vpop.f32.mrf.mxu1  ;;  %v5752_v49 = vpop.f32.mrf.mxu0 }
 0x20b   : > { %2570 = vst [vmem:[#allocation2 + $0x9] sm:$0xff] %v2534_v31  ;;  %v2539_v54 = vadd.f32 %v7658_v1, %v2496_v21  ;;  %v2494_v12 = vadd.f32 %v2364_v37, %v7559_v24  ;;  %v2375_v18 = vadd.f32 %v5752_v49, %v2197_v6 }
 0x20c   : > { %2647 = vst [vmem:[#allocation2 + $0x10] sm:$0x3] %v8599_v27  ;;  %v2213_v56 = vpop.f32.mrf.mxu1  ;;  %v2366_v8 = vpop.f32.mrf.mxu0  ;;  %v2655_v20 = vld [vmem:[#allocation2 + $0x18] sm:$0xff] }
 0x20d   : > { %2575 = vst [vmem:[#allocation2 + $0x49] sm:$0xff] %v2539_v54  ;;  %v2537_v39 = vadd.f32 %v7658_v1, %v2494_v12  ;;  %v2497_v29 = vadd.f32 %v2375_v18, %v7564_v7  ;;  %v2367_v17 = vadd.f32 %v2366_v8, %v2189_v60 }
 0x20e   : > { %v2215_v13 = vpop.f32.mrf.mxu1  ;;  %v5755_v51 = vpop.f32.mrf.mxu0 }
 0x20f   : > { %2573 = vst [vmem:[#allocation2 + $0x31] sm:$0xff] %v2537_v39  ;;  %v2540_v19 = vadd.f32 %v7658_v1, %v2497_v29  ;;  %v2495_v24 = vadd.f32 %v2367_v17, %v1794_v53  ;;  %v2388_v6 = vadd.f32 %v5755_v51, %v2210_v42 }
 0x210   : > { %v2218_v0 = vpop.f32.mrf.mxu1  ;;  %v2379_v22 = vpop.f32.mrf.mxu0  ;;  %v2656_v23 = vld [vmem:[#allocation2 + $0x20] sm:$0xff]  ;;  %v2657_v27 = vld [vmem:[#allocation2 + $0x28] sm:$0x3] }
 0x211   : > { %2576 = vst [vmem:[#allocation2 + $0x51] sm:$0xff] %v2540_v19  ;;  %v2538_v34 = vadd.f32 %v7658_v1, %v2495_v24  ;;  %v2500_v55 = vadd.f32 %v2388_v6, %v7573_v14  ;;  %v2380_v59 = vadd.f32 %v2379_v22, %v2202_v2  ;;  %v7683_v7 = vpack.c.bf16 %v2656_v23, %v2655_v20 }
 0x212   : > { %v2220_v60 = vpop.f32.mrf.mxu1  ;;  %v5756_v31 = vpop.f32.mrf.mxu0  ;;  %v2709_v21 = vpack.c.bf16 %v2657_v27, %v2657_v27  ;;  %v1810_v2 = vadd.f32 %v7585_v52, %v7385_v5 }
 0x213   : > { %2574 = vst [vmem:[#allocation2 + $0x39] sm:$0xff] %v2538_v34  ;;  %v2543_v37 = vadd.f32 %v7658_v1, %v2500_v55  ;;  %v2498_v42 = vadd.f32 %v2380_v59, %v7578_v25  ;;  %v2391_v61 = vadd.f32 %v5756_v31, %v2213_v56  ;;  %v2985_v49 = vrot.slane %v7683_v7, 1  ;;  %v6135_v59 = vld [vmem:[#allocation3 + $0xb0] sm:$0xff]  }
 0x214   : > { %v2221_v54 = vpop.f32.mrf.mxu1  ;;  %v2382_v12 = vpop.f32.mrf.mxu0  ;;  %v2986_v18 = vrot.slane %v2709_v21, 1  ;;  %v2757_v8 = vshll.u32 %v7683_v7, 16  ;;  %v2762_v14 = vshll.u32 %v2709_v21, 16  ;;  %v2755_v13 = vshrl.u32 %v7683_v7, 16  ;;  %v2661_v22 = vld [vmem:[#allocation2 + $0x48] sm:$0xff] }
 0x215   : > { %2579 = vst [vmem:[#allocation2 + $0x79] sm:$0xff] %v2543_v37  ;;  %v2541_v53 = vadd.f32 %v7658_v1, %v2498_v42  ;;  %v2501_v39 = vadd.f32 %v2391_v61, %v7583_v9  ;;  %v2383_v29 = vadd.f32 %v2382_v12, %v7663_v3 }
 0x216   : > { %v2223_v25 = vpop.f32.mrf.mxu1  ;;  %v5759_v56 = vpop.f32.mrf.mxu0  ;;  %v7695_v17 = vsel %vm725_vm0, %v2985_v49, %v2986_v18  ;;  %v2759_v51 = vrot.slane %v2757_v8, 1  ;;  %v2764_v9 = vrot.slane %v2762_v14, 1  ;;  %v2658_v37 = vld [vmem:[#allocation2 + $0x30] sm:$0xff]  ;;  %v1826_v14 = vadd.f32 %v7600_v26, %v7414_v10 }
 0x217   : > { %2577 = vst [vmem:[#allocation2 + $0x61] sm:$0xff] %v2541_v53  ;;  %v2544_v19 = vadd.f32 %v7658_v1, %v2501_v39  ;;  %v2499_v24 = vadd.f32 %v2383_v29, %v1810_v2  ;;  %5797 = vmatprep.mubr.bf16.mxu1 %v7695_v17 }
 0x218   : > { %v2226_v5 = vpop.f32.mrf.mxu1  ;;  %v2395_v52 = vpop.f32.mrf.mxu0  ;;  %v2760_v6 = vor.u32 %v2759_v51, %v2755_v13  ;;  %v2662_v3 = vld [vmem:[#allocation2 + $0x50] sm:$0xff]  ;;  %v2663_v20 = vld [vmem:[#allocation2 + $0x58] sm:$0x3] }
 0x219   : > { %2580 = vst [vmem:[#allocation2 + $0x81] sm:$0xff] %v2544_v19  ;;  %v2542_v23 = vadd.f32 %v7658_v1, %v2499_v24  ;;  %v2404_v27 = vadd.f32 %v5759_v56, %v2226_v5  ;;  %v2396_v34 = vadd.f32 %v2395_v52, %v2218_v0  ;;  %v7701_v55 = vpack.c.bf16 %v2662_v3, %v2661_v22  ;;  %v6136_v52 = vld [vmem:[#allocation3 + $0xa8] sm:$0xff]   ;;  %v6140_v22 = vld [vmem:[#allocation3 + $0x38] sm:$0xff]  }
 0x21a   : > { %v2228_v60 = vpop.f32.mrf.mxu1  ;;  %v5760_v31 = vpop.f32.mrf.mxu0  ;;  %v7704_v21 = vsel %vm490_vm1, %v2760_v6, %v2764_v9  ;;  %v2659_v42 = vld [vmem:[#allocation2 + $0x38] sm:$0xff]  ;;  %v2660_v61 = vld [vmem:[#allocation2 + $0x40] sm:$0x3]  ;;  %v7706_v49 = vpack.c.bf16 %v2663_v20, %v2663_v20 }
 0x21b   : > { %2578 = vst [vmem:[#allocation2 + $0x69] sm:$0xff] %v2542_v23  ;;  %v2504_v12 = vadd.f32 %v2404_v27, %v7590_v48  ;;  %v2502_v18 = vadd.f32 %v2396_v34, %v7593_v15  ;;  %3338 = vmatprep.mubr.bf16.mxu0 %v7704_v21  ;;  %v7711_v0 = vpack.c.bf16 %v2659_v42, %v2658_v37  ;;  %v2991_v39 = vrot.slane %v7701_v55, 1  ;;  %v6141_v37 = vld [vmem:[#allocation3 + $0x70] sm:$0xff]  }
 0x21c   : > { %v2711_v8 = vpack.c.bf16 %v2660_v61, %v2660_v61  ;;  %v2229_v2 = vpop.f32.mrf.mxu1  ;;  %3339 = vmatmul.mubr.bf16.vlgmr.msra.gmra.mxu0 %v7683_v7  ;;  %v2398_v53 = vpop.f32.mrf.mxu0  ;;  %v2992_v29 = vrot.slane %v7706_v49, 1  ;;  %v2781_v48 = vshll.u32 %v7701_v55, 16  ;;  %v2779_v5 = vshrl.u32 %v7701_v55, 16 }
 0x21d   : > { %v2547_v15 = vadd.f32 %v7658_v1, %v2504_v12  ;;  %v2545_v25 = vadd.f32 %v7658_v1, %v2502_v18  ;;  %v2407_v56 = vadd.f32 %v5760_v31, %v2229_v2  ;;  %v2399_v13 = vadd.f32 %v2398_v53, %v2221_v54  ;;  %5830 = vmatpush3.bf16.msra.mxu0 %v7504_v44  ;;  %v2667_v18 = vld [vmem:[#allocation2 + $0x78] sm:$0xff] }
 0x21e   : > { %v2231_v51 = vpop.f32.mrf.mxu1  ;;  %v7722_v10 = vpop.f32.mrf.mxu0  ;;  %v2988_v26 = vrot.slane %v7711_v0, 1  ;;  %v2989_v19 = vrot.slane %v2711_v8, 1  ;;  %v7726_v24 = vsel %vm725_vm0, %v2991_v39, %v2992_v29  ;;  %5831 = vmatprep.subr.bf16.mxu0 %v6135_v59  ;;  %v2769_v44 = vshll.u32 %v7711_v0, 16  ;;  %v2664_v29 = vld [vmem:[#allocation2 + $0x60] sm:$0xff] }
 0x21f   : > { %2583 = vst [vmem:[#allocation2 + $0xa9] sm:$0xff] %v2547_v15  ;;  %2581 = vst [vmem:[#allocation2 + $0x91] sm:$0xff] %v2545_v25  ;;  %v2505_v6 = vadd.f32 %v2407_v56, %v7598_v43  ;;  %v2503_v54 = vadd.f32 %v2399_v13, %v1826_v14  ;;  %v2774_v9 = vshll.u32 %v2711_v8, 16  ;;  %v2767_v27 = vshrl.u32 %v7711_v0, 16  ;;  %v6137_v14 = vld [vmem:[#allocation3 + $0xa0] sm:$0xff]  }
 0x220   : > { %v2234_v3 = vpop.f32.mrf.mxu1  ;;  %v2411_v20 = vpop.f32.mrf.mxu0  ;;  %v7732_v23 = vsel %vm725_vm0, %v2988_v26, %v2989_v19  ;;  %v2783_v34 = vrot.slane %v2781_v48, 1  ;;  %v2786_v60 = vshll.u32 %v7706_v49, 16  ;;  %v2668_v31 = vld [vmem:[#allocation2 + $0x80] sm:$0xff]  ;;  %v2771_v12 = vrot.slane %v2769_v44, 1  ;;  %v2669_v8 = vld [vmem:[#allocation2 + $0x88] sm:$0x3] }
 0x221   : > { %v2548_v42 = vadd.f32 %v7658_v1, %v2505_v6  ;;  %v2546_v43 = vadd.f32 %v7658_v1, %v2503_v54  ;;  %v2412_v61 = vadd.f32 %v2411_v20, %v2234_v3  ;;  %5798 = vmatmul.mubr.bf16.vlgmr.msra.gmra.mxu1 %v7732_v23  ;;  %5832 = vmatpush3.bf16.msra.mxu0 %v6135_v59  ;;  %v2776_v49 = vrot.slane %v2774_v9, 1  ;;  %v6142_v26 = vld [vmem:[#allocation3 + $0x30] sm:$0xff]   ;;  %v6143_v3 = vld [vmem:[#allocation3 + $0x68] sm:$0xff]  }
 0x222   : > { %v2236_v2 = vpop.f32.mrf.mxu1  ;;  %5801 = vmatprep.mubr.bf16.mxu1 %v7726_v24  ;;  %v7740_v53 = vpop.f32.mrf.mxu0  ;;  %v2784_v39 = vor.u32 %v2783_v34, %v2779_v5  ;;  %v2665_v48 = vld [vmem:[#allocation2 + $0x68] sm:$0xff]  ;;  %v2666_v15 = vld [vmem:[#allocation2 + $0x70] sm:$0x3]  ;;  %v7742_v25 = vpack.c.bf16 %v2668_v31, %v2667_v18  ;;  %5833 = vmatprep.subr.bf16.mxu0 %v6136_v52  ;;  %v2772_v13 = vor.u32 %v2771_v12, %v2767_v27  ;;  %v2788_v54 = vrot.slane %v2786_v60, 1 }
 0x223   : > { %2584 = vst [vmem:[#allocation2 + $0xb1] sm:$0xff] %v2548_v42  ;;  %2582 = vst [vmem:[#allocation2 + $0x99] sm:$0xff] %v2546_v43  ;;  %v2506_v56 = vadd.f32 %v2412_v61, %v7608_v58  ;;  %v7745_v59 = vpack.c.bf16 %v2665_v48, %v2664_v29  ;;  %v7747_v51 = vpack.c.bf16 %v2666_v15, %v2666_v15  ;;  %5354 = vmatpush3.bf16.msra.mxu1 %v6140_v22 }
 0x224   : > { %v1842_v19 = vadd.f32 %v7615_v36, %v7474_v30  ;;  %v2237_v5 = vpop.f32.mrf.mxu1  ;;  %v2414_v6 = vpop.f32.mrf.mxu0  ;;  %v7751_v44 = vpack.c.bf16 %v2669_v8, %v2669_v8  ;;  %v2997_v9 = vrot.slane %v7742_v25, 1  ;;  %5355 = vmatprep.subr.bf16.mxu1 %v6141_v37  ;;  %v7756_v27 = vsel %vm490_vm1, %v2772_v13, %v2776_v49  ;;  %v6138_v37 = vld [vmem:[#allocation3 + $0x98] sm:$0xff]   ;;  %v6145_v49 = vld [vmem:[#allocation3 + $0x60] sm:$0xff]   ;;  %v6147_v13 = vld [vmem:[#allocation3 + $0x90] sm:$0xff]  }
 0x225   : > { %v2549_v58 = vadd.f32 %v7658_v1, %v2506_v56  ;;  %v2415_v20 = vadd.f32 %v2414_v6, %v2237_v5  ;;  %v2994_v22 = vrot.slane %v7745_v59, 1  ;;  %5834 = vmatpush3.bf16.msra.mxu0 %v6136_v52  ;;  %3346 = vmatprep.mubr.bf16.mxu0 %v7756_v27  ;;  %v2995_v36 = vrot.slane %v7747_v51, 1  ;;  %v6144_v52 = vld [vmem:[#allocation3 + $0x28] sm:$0xff]  }
 0x226   : > { %v2239_v30 = vpop.f32.mrf.mxu1  ;;  %v2998_v34 = vrot.slane %v7751_v44, 1  ;;  %v7762_v60 = vpop.f32.mrf.mxu0  ;;  %v2793_v31 = vshll.u32 %v7745_v59, 16  ;;  %5835 = vmatprep.subr.bf16.mxu0 %v6137_v14  ;;  %3347 = vmatmul.mubr.bf16.gmra.mxu0 %v7711_v0  ;;  %v7767_v43 = vsel %vm490_vm1, %v2784_v39, %v2788_v54  ;;  %v2791_v18 = vshrl.u32 %v7745_v59, 16  ;;  %v2670_v15 = vld [vmem:[#allocation2 + $0x90] sm:$0xff]  ;;  %v2673_v56 = vld [vmem:[#allocation2 + $0xa8] sm:$0xff] }
 0x227   : > { %2585 = vst [vmem:[#allocation2 + $0xc1] sm:$0xff] %v2549_v58  ;;  %v2507_v42 = vadd.f32 %v2415_v20, %v1842_v19  ;;  %5356 = vmatpush3.bf16.msra.mxu1 %v6142_v26  ;;  %3354 = vmatprep.mubr.bf16.mxu0 %v7767_v43  ;;  %v7771_v12 = vsel %vm725_vm0, %v2994_v22, %v2995_v36  ;;  %v2798_v2 = vshll.u32 %v7747_v51, 16  ;;  %v6146_v22 = vld [vmem:[#allocation3 + $0x20] sm:$0xff]  }
 0x228   : > { %v2242_v61 = vpop.f32.mrf.mxu1  ;;  %v2795_v8 = vrot.slane %v2793_v31, 1  ;;  %5357 = vmatprep.subr.bf16.mxu1 %v6143_v3  ;;  %v7779_v48 = vsel %vm725_vm0, %v2997_v9, %v2998_v34  ;;  %v2427_v51 = vpop.f32.mrf.mxu0  ;;  %v2805_v3 = vshll.u32 %v7742_v25, 16  ;;  %v6148_v31 = vld [vmem:[#allocation3 + $0x58] sm:$0xff]  }
 0x229   : > { %v2550_v29 = vadd.f32 %v7658_v1, %v2507_v42  ;;  %v2420_v39 = vadd.f32 %v7722_v10, %v2242_v61  ;;  %5802 = vmatmul.mubr.bf16.gmra.mxu1 %v7771_v12  ;;  %5836 = vmatpush3.bf16.msra.mxu0 %v6137_v14  ;;  %v2800_v36 = vrot.slane %v2798_v2, 1 }
 0x22a   : > { %v2244_v26 = vpop.f32.mrf.mxu1  ;;  %5805 = vmatprep.mubr.bf16.mxu1 %v7779_v48  ;;  %v2796_v19 = vor.u32 %v2795_v8, %v2791_v18  ;;  %v2671_v5 = vld [vmem:[#allocation2 + $0x98] sm:$0xff]  ;;  %v2672_v6 = vld [vmem:[#allocation2 + $0xa0] sm:$0x3]  ;;  %v2674_v54 = vld [vmem:[#allocation2 + $0xb0] sm:$0xff]  ;;  %5837 = vmatprep.subr.bf16.mxu0 %v6138_v37 }
 0x22b   : > { %2586 = vst [vmem:[#allocation2 + $0xc9] sm:$0xff] %v2550_v29  ;;  %v2508_v10 = vadd.f32 %v2420_v39, %v7605_v47  ;;  %v7784_v9 = vpack.c.bf16 %v2671_v5, %v2670_v15  ;;  %v7786_v58 = vpack.c.bf16 %v2672_v6, %v2672_v6  ;;  %v2675_v14 = vld [vmem:[#allocation2 + $0xb8] sm:$0x3]  ;;  %v7788_v20 = vpack.c.bf16 %v2674_v54, %v2673_v56  ;;  %v7796_v29 = vpop.f32.mrf.mxu0  ;;  %v6149_v56 = vld [vmem:[#allocation3 + $0x18] sm:$0xff]   ;;  %v6150_v54 = vld [vmem:[#allocation3 + $0x50] sm:$0xff]  }
 0x22c   : > { %5358 = vmatpush3.bf16.msra.mxu1 %v6144_v52  ;;  %v2245_v30 = vpop.f32.mrf.mxu1  ;;  %v7790_v34 = vpack.c.bf16 %v2675_v14, %v2675_v14  ;;  %v2807_v39 = vrot.slane %v2805_v3, 1  ;;  %v2803_v5 = vshrl.u32 %v7742_v25, 16  ;;  %v2810_v6 = vshll.u32 %v7751_v44, 16 }
 0x22d   : > { %5359 = vmatprep.subr.bf16.mxu1 %v6145_v49  ;;  %v2551_v42 = vadd.f32 %v7658_v1, %v2508_v10  ;;  %v2423_v61 = vadd.f32 %v7740_v53, %v2245_v30  ;;  %v3000_v47 = vrot.slane %v7784_v9, 1  ;;  %v3001_v18 = vrot.slane %v7786_v58, 1  ;;  %5838 = vmatpush3.bf16.msra.mxu0 %v6138_v37  ;;  %v6156_v49 = vld [vmem:[#allocation3 + $0x88] sm:$0xff]   ;;  %v6157_v10 = vld [vmem:[#allocation3 + $0x80] sm:$0xff]  }
 0x22e   : > { %v2247_v8 = vpop.f32.mrf.mxu1  ;;  %v3003_v52 = vrot.slane %v7788_v20, 1  ;;  %v3004_v2 = vrot.slane %v7790_v34, 1  ;;  %5839 = vmatprep.subr.bf16.mxu0 %v6147_v13  ;;  %3355 = vmatmul.mubr.bf16.gmra.mxu0 %v7701_v55  ;;  %v7803_v53 = vsel %vm490_vm1, %v2796_v19, %v2800_v36  ;;  %v2808_v30 = vor.u32 %v2807_v39, %v2803_v5  ;;  %v2676_v36 = vld [vmem:[#allocation2 + $0xc0] sm:$0xff] }
 0x22f   : > { %2587 = vst [vmem:[#allocation2 + $0xd9] sm:$0xff] %v2551_v42  ;;  %v2509_v15 = vadd.f32 %v2423_v61, %v7613_v33  ;;  %v7806_v37 = vsel %vm725_vm0, %v3000_v47, %v3001_v18  ;;  %3362 = vmatprep.mubr.bf16.mxu0 %v7803_v53  ;;  %v2817_v47 = vshll.u32 %v7784_v9, 16  ;;  %v1858_v18 = vadd.f32 %v7626_v63, %v7506_v38 }
 0x230   : > { %5360 = vmatpush3.bf16.msra.mxu1 %v6146_v22  ;;  %v2250_v26 = vpop.f32.mrf.mxu1  ;;  %v7814_v19 = vsel %vm725_vm0, %v3003_v52, %v3004_v2  ;;  %v2430_v22 = vpop.f32.mrf.mxu0  ;;  %v2812_v52 = vrot.slane %v2810_v6, 1  ;;  %v6152_v2 = vld [vmem:[#allocation3 + $0x48] sm:$0xff]  }
 0x231   : > { %5361 = vmatprep.subr.bf16.mxu1 %v6148_v31  ;;  %v2552_v33 = vadd.f32 %v7658_v1, %v2509_v15  ;;  %v2428_v3 = vadd.f32 %v2427_v51, %v2250_v26  ;;  %5806 = vmatmul.mubr.bf16.gmra.mxu1 %v7806_v37  ;;  %v2819_v6 = vrot.slane %v2817_v47, 1 }
 0x232   : > { %5840 = vmatpush3.bf16.msra.mxu0 %v6147_v13  ;;  %v2252_v14 = vpop.f32.mrf.mxu1  ;;  %5809 = vmatprep.mubr.bf16.mxu1 %v7814_v19  ;;  %v2677_v42 = vld [vmem:[#allocation2 + $0xc8] sm:$0xff]  ;;  %v2678_v44 = vld [vmem:[#allocation2 + $0xd0] sm:$0x3]  ;;  %v6151_v13 = vld [vmem:[#allocation3 + $0x10] sm:$0xff]   ;;  %v7832_v38 = vsel %vm490_vm1, %v2808_v30, %v2812_v52  ;;  %v2815_v30 = vshrl.u32 %v7784_v9, 16 }
 0x233   : > { %5841 = vmatprep.subr.bf16.mxu0 %v6156_v49  ;;  %2588 = vst [vmem:[#allocation2 + $0xe1] sm:$0xff] %v2552_v33  ;;  %v2510_v31 = vadd.f32 %v2428_v3, %v7621_v50  ;;  %v7818_v51 = vpack.c.bf16 %v2677_v42, %v2676_v36  ;;  %v7820_v61 = vpack.c.bf16 %v2678_v44, %v2678_v44  ;;  %v7828_v33 = vpop.f32.mrf.mxu0  ;;  %v2822_v14 = vshll.u32 %v7786_v58, 16 }
 0x234   : > { %5362 = vmatpush3.bf16.msra.mxu1 %v6149_v56  ;;  %v2253_v8 = vpop.f32.mrf.mxu1  ;;  %v6158_v56 = vld [vmem:[#allocation3 + $0x1f8] sm:$0xff]   ;;  %v2820_v52 = vor.u32 %v2819_v6, %v2815_v30  ;;  %v2827_v30 = vshrl.u32 %v7788_v20, 16 }
 0x235   : > { %5363 = vmatprep.subr.bf16.mxu1 %v6150_v54  ;;  %v2553_v39 = vadd.f32 %v7658_v1, %v2510_v31  ;;  %v2431_v15 = vadd.f32 %v2430_v22, %v2253_v8  ;;  %v3006_v50 = vrot.slane %v7818_v51, 1  ;;  %v3007_v26 = vrot.slane %v7820_v61, 1  ;;  %v6153_v54 = vld [vmem:[#allocation3 + $0x8] sm:$0xff]   ;;  %v6154_v22 = vld [vmem:[#allocation3 + $0x40] sm:$0xff]   ;;  %v2443_v31 = vpop.f32.mrf.mxu0 }
 0x236   : > { %5842 = vmatpush3.bf16.msra.mxu0 %v6156_v49  ;;  %v2255_v5 = vpop.f32.mrf.mxu1  ;;  %v2679_v47 = vld [vmem:[#allocation2 + $0xd8] sm:$0xff]  ;;  %v2829_v8 = vshll.u32 %v7788_v20, 16 }
 0x237   : > { %5843 = vmatprep.subr.bf16.mxu0 %v6157_v10  ;;  %2589 = vst [vmem:[#allocation2 + $0xf1] sm:$0xff] %v2553_v39  ;;  %v2511_v3 = vadd.f32 %v2431_v15, %v1858_v18  ;;  %3363 = vmatmul.mubr.bf16.gmra.mxu0 %v7745_v59  ;;  %v7835_v63 = vsel %vm725_vm0, %v3006_v50, %v3007_v26  ;;  %v6155_v39 = vld [vmem:[#allocation3] sm:$0xff]   ;;  %v7855_v6 = vpop.f32.mrf.mxu0 }
 0x238   : > { %5364 = vmatpush3.bf16.msra.mxu1 %v6151_v13  ;;  %3370 = vmatprep.mubr.bf16.mxu0 %v7832_v38  ;;  %v2258_v49 = vpop.f32.mrf.mxu1 }
 0x239   : > { %5365 = vmatprep.subr.bf16.mxu1 %v6152_v2  ;;  %v2554_v36 = vadd.f32 %v7658_v1, %v2511_v3  ;;  %v2436_v42 = vadd.f32 %v7762_v60, %v2258_v49  ;;  %5810 = vmatmul.mubr.bf16.gmra.mxu1 %v7835_v63  ;;  %v7853_v3 = vld [vmem:[#allocation3 + $0x238] sm:$0xff]  }
 0x23a   : > { %5844 = vmatpush3.bf16.msra.mxu0 %v6157_v10  ;;  %v2260_v44 = vpop.f32.mrf.mxu1  ;;  %v2680_v13 = vld [vmem:[#allocation2 + $0xe0] sm:$0xff]  ;;  %v2681_v18 = vld [vmem:[#allocation2 + $0xe8] sm:$0x3]  ;;  %v2824_v10 = vrot.slane %v2822_v14, 1 }
 0x23b   : > { %5489 = vmatprep.subr.bf16.mxu0 %v6158_v56  ;;  %2590 = vst [vmem:[#allocation2 + $0xf9] sm:$0xff] %v2554_v36  ;;  %v2512_v58 = vadd.f32 %v2436_v42, %v7618_v45  ;;  %v7845_v2 = vpack.c.bf16 %v2680_v13, %v2679_v47  ;;  %v7847_v60 = vpack.c.bf16 %v2681_v18, %v2681_v18  ;;  %v2834_v36 = vshll.u32 %v7790_v34, 16  ;;  %v2446_v47 = vpop.f32.mrf.mxu0 }
 0x23c   : > { %5366 = vmatpush3.bf16.msra.mxu1 %v6153_v54  ;;  %v2261_v15 = vpop.f32.mrf.mxu1  ;;  %v7860_v49 = vsel %vm490_vm1, %v2820_v52, %v2824_v10 }
 0x23d   : > { %5367 = vmatprep.subr.bf16.mxu1 %v6154_v22  ;;  %v2555_v50 = vadd.f32 %v7658_v1, %v2512_v58  ;;  %v2439_v26 = vadd.f32 %v7796_v29, %v2261_v15  ;;  %v3009_v5 = vrot.slane %v7845_v2, 1  ;;  %v3010_v56 = vrot.slane %v7847_v60, 1 }
 0x23e   : > { %v2263_v45 = vpop.f32.mrf.mxu1  ;;  %v2831_v29 = vrot.slane %v2829_v8, 1  ;;  %v2682_v13 = vld [vmem:[#allocation2 + $0xf0] sm:$0xff]  ;;  %v2841_v58 = vshll.u32 %v7818_v51, 16 }
 0x23f   : > { %2591 = vst [vmem:[#allocation2 + $0x109] sm:$0xff] %v2555_v50  ;;  %v2513_v54 = vadd.f32 %v2439_v26, %v7624_v11  ;;  %3371 = vmatmul.mubr.bf16.gmra.mxu0 %v7742_v25  ;;  %v7863_v14 = vsel %vm725_vm0, %v3009_v5, %v3010_v56  ;;  %v2836_v50 = vrot.slane %v2834_v36, 1  ;;  %v2839_v36 = vshrl.u32 %v7818_v51, 16 }
 0x240   : > { %5368 = vmatpush3.bf16.msra.mxu1 %v6155_v39  ;;  %3378 = vmatprep.mubr.bf16.mxu0 %v7860_v49  ;;  %v2266_v22 = vpop.f32.mrf.mxu1  ;;  %v2832_v39 = vor.u32 %v2831_v29, %v2827_v30 }
 0x241   : > { %5813 = vmatprep.mubr.bf16.mxu1 %v7863_v14  ;;  %v2556_v42 = vadd.f32 %v7658_v1, %v2513_v54  ;;  %v2444_v11 = vadd.f32 %v2443_v31, %v2266_v22  ;;  %5877 = vmatprep.subr.bf16.mxu1 %v7853_v3  ;;  %v1874_v31 = vadd.f32 %v7637_v40, %v7530_v62  ;;  %v7882_v22 = vpop.f32.mrf.mxu0 }
 0x242   : > { %v2268_v44 = vpop.f32.mrf.mxu1  ;;  %v2683_v18 = vld [vmem:[#allocation2 + $0xf8] sm:$0xff]  ;;  %v2684_v8 = vld [vmem:[#allocation2 + $0x100] sm:$0x3] }
 0x243   : > { %2592 = vst [vmem:[#allocation2 + $0x111] sm:$0xff] %v2556_v42  ;;  %v2514_v52 = vadd.f32 %v2444_v11, %v7632_v28  ;;  %v7873_v15 = vpack.c.bf16 %v2683_v18, %v2682_v13  ;;  %v7875_v34 = vpack.c.bf16 %v2684_v8, %v2684_v8  ;;  %v2843_v28 = vrot.slane %v2841_v58, 1  ;;  %v2459_v18 = vpop.f32.mrf.mxu0 }
 0x244   : > { %v2269_v10 = vpop.f32.mrf.mxu1  ;;  %v7886_v42 = vsel %vm490_vm1, %v2832_v39, %v2836_v50  ;;  %v2846_v11 = vshll.u32 %v7820_v61, 16  ;;  %v2853_v50 = vshll.u32 %v7845_v2, 16 }
 0x245   : > { %v2557_v26 = vadd.f32 %v7658_v1, %v2514_v52  ;;  %v2447_v5 = vadd.f32 %v2446_v47, %v2269_v10  ;;  %v3012_v56 = vrot.slane %v7873_v15, 1  ;;  %v3013_v45 = vrot.slane %v7875_v34, 1 }
 0x246   : > { %v2271_v54 = vpop.f32.mrf.mxu1  ;;  %v2844_v13 = vor.u32 %v2843_v28, %v2839_v36  ;;  %v2685_v8 = vld [vmem:[#allocation2 + $0x108] sm:$0xff]  ;;  %v5776_v28 = vpop.f32.mrf.mxu0  ;;  %v2855_v36 = vrot.slane %v2853_v50, 1 }
 0x247   : > { %2593 = vst [vmem:[#allocation2 + $0x121] sm:$0xff] %v2557_v26  ;;  %v2515_v29 = vadd.f32 %v2447_v5, %v1874_v31  ;;  %3379 = vmatmul.mubr.bf16.gmra.mxu0 %v7784_v9  ;;  %v7889_v62 = vsel %vm725_vm0, %v3012_v56, %v3013_v45  ;;  %v2848_v26 = vrot.slane %v2846_v11, 1  ;;  %v2858_v11 = vshll.u32 %v7847_v60, 16 }
 0x248   : > { %3386 = vmatprep.mubr.bf16.mxu0 %v7886_v42  ;;  %v2274_v40 = vpop.f32.mrf.mxu1  ;;  %5814 = vmatmul.mubr.bf16.gmra.mxu1 %v7889_v62  ;;  %v1890_v60 = vadd.f32 %v7647_v57, %v7568_v4 }
 0x249   : > { %v2558_v30 = vadd.f32 %v7658_v1, %v2515_v29  ;;  %v2452_v44 = vadd.f32 %v7828_v33, %v2274_v40  ;;  %v7910_v29 = vsel %vm490_vm1, %v2844_v13, %v2848_v26 }
 0x24a   : > { %v2276_v47 = vpop.f32.mrf.mxu1  ;;  %v2686_v58 = vld [vmem:[#allocation2 + $0x110] sm:$0xff]  ;;  %v2687_v52 = vld [vmem:[#allocation2 + $0x118] sm:$0x3] }
 0x24b   : > { %2594 = vst [vmem:[#allocation2 + $0x129] sm:$0xff] %v2558_v30  ;;  %v2516_v39 = vadd.f32 %v2452_v44, %v7629_v41  ;;  %v7898_v31 = vpack.c.bf16 %v2686_v58, %v2685_v8  ;;  %v7900_v10 = vpack.c.bf16 %v2687_v52, %v2687_v52  ;;  %v2462_v8 = vpop.f32.mrf.mxu0 }
 0x24c   : > { %v2277_v61 = vpop.f32.mrf.mxu1 }
 0x24d   : > { %v2559_v5 = vadd.f32 %v7658_v1, %v2516_v39  ;;  %v2455_v33 = vadd.f32 %v7855_v6, %v2277_v61  ;;  %v3015_v56 = vrot.slane %v7898_v31, 1  ;;  %v3016_v45 = vrot.slane %v7900_v10, 1 }
 0x24e   : > { %v2279_v54 = vpop.f32.mrf.mxu1  ;;  %v2688_v13 = vld [vmem:[#allocation2 + $0x120] sm:$0xff]  ;;  %v2865_v39 = vshll.u32 %v7873_v15, 16 }
 0x24f   : > { %2595 = vst [vmem:[#allocation2 + $0x139] sm:$0xff] %v2559_v5  ;;  %v2517_v41 = vadd.f32 %v2455_v33, %v7635_v16  ;;  %3387 = vmatmul.mubr.bf16.gmra.mxu0 %v7788_v20  ;;  %v7913_v40 = vsel %vm725_vm0, %v3015_v56, %v3016_v45  ;;  %v2851_v16 = vshrl.u32 %v7845_v2, 16  ;;  %v2860_v33 = vrot.slane %v2858_v11, 1 }
 0x250   : > { %3394 = vmatprep.mubr.bf16.mxu0 %v7910_v29  ;;  %v2282_v6 = vpop.f32.mrf.mxu1  ;;  %5817 = vmatprep.mubr.bf16.mxu1 %v7913_v40  ;;  %v2863_v11 = vshrl.u32 %v7873_v15, 16 }
 0x251   : > { %v2560_v30 = vadd.f32 %v7658_v1, %v2517_v41  ;;  %v2460_v44 = vadd.f32 %v2459_v18, %v2282_v6  ;;  %v2856_v61 = vor.u32 %v2855_v36, %v2851_v16  ;;  %v2870_v16 = vshll.u32 %v7875_v34, 16 }
 0x252   : > { %v2284_v47 = vpop.f32.mrf.mxu1  ;;  %v2689_v58 = vld [vmem:[#allocation2 + $0x128] sm:$0xff]  ;;  %v2690_v52 = vld [vmem:[#allocation2 + $0x130] sm:$0x3] }
 0x253   : > { %2596 = vst [vmem:[#allocation2 + $0x141] sm:$0xff] %v2560_v30  ;;  %v2518_v50 = vadd.f32 %v2460_v44, %v7643_v32  ;;  %v7922_v26 = vpack.c.bf16 %v2689_v58, %v2688_v13  ;;  %v7924_v5 = vpack.c.bf16 %v2690_v52, %v2690_v52  ;;  %v5779_v30 = vpop.f32.mrf.mxu0  ;;  %v2867_v32 = vrot.slane %v2865_v39, 1 }
 0x254   : > { %v2285_v18 = vpop.f32.mrf.mxu1  ;;  %v7933_v44 = vsel %vm490_vm1, %v2856_v61, %v2860_v33 }
 0x255   : > { %v2561_v56 = vadd.f32 %v7658_v1, %v2518_v50  ;;  %v2463_v45 = vadd.f32 %v2462_v8, %v2285_v18  ;;  %v3018_v54 = vrot.slane %v7922_v26, 1  ;;  %v3019_v41 = vrot.slane %v7924_v5, 1  ;;  %v2475_v52 = vpop.f32.mrf.mxu0 }
 0x256   : > { %v2287_v6 = vpop.f32.mrf.mxu1  ;;  %v2868_v58 = vor.u32 %v2867_v32, %v2863_v11  ;;  %v2691_v39 = vld [vmem:[#allocation2 + $0x138] sm:$0xff] }
 0x257   : > { %2597 = vst [vmem:[#allocation2 + $0x151] sm:$0xff] %v2561_v56  ;;  %v2519_v36 = vadd.f32 %v2463_v45, %v1890_v60  ;;  %3395 = vmatmul.mubr.bf16.gmra.mxu0 %v7818_v51  ;;  %v7936_v4 = vsel %vm725_vm0, %v3018_v54, %v3019_v41  ;;  %v2877_v56 = vshll.u32 %v7898_v31, 16  ;;  %v2872_v45 = vrot.slane %v2870_v16, 1  ;;  %v5780_v32 = vpop.f32.mrf.mxu0 }
 0x258   : > { %3402 = vmatprep.mubr.bf16.mxu0 %v7933_v44  ;;  %v2290_v57 = vpop.f32.mrf.mxu1  ;;  %5818 = vmatmul.mubr.bf16.gmra.mxu1 %v7936_v4  ;;  %v2882_v16 = vshll.u32 %v7900_v10, 16  ;;  %v8603_v10 = vld [vmem:[#allocation13_spill] sm:$0xff] }
 0x259   : > { %v2562_v47 = vadd.f32 %v7658_v1, %v2519_v36  ;;  %v2468_v8 = vadd.f32 %v7882_v22, %v2290_v57  ;;  %v7956_v36 = vsel %vm490_vm1, %v2868_v58, %v2872_v45  ;;  %v2879_v11 = vrot.slane %v2877_v56, 1  ;;  %v8602_v56 = vld [vmem:[#allocation14_spill] sm:$0xff] }
 0x25a   : > { %v2292_v13 = vpop.f32.mrf.mxu1  ;;  %v2692_v50 = vld [vmem:[#allocation2 + $0x140] sm:$0xff]  ;;  %v2693_v61 = vld [vmem:[#allocation2 + $0x148] sm:$0x3]  ;;  %8600 = vst [vmem:[#allocation16_spill] sm:$0xff] %v7956_v36 }
 0x25b   : > { %2598 = vst [vmem:[#allocation2 + $0x159] sm:$0xff] %v2562_v47  ;;  %v2520_v60 = vadd.f32 %v2468_v8, %v7640_v46  ;;  %v7945_v18 = vpack.c.bf16 %v2692_v50, %v2691_v39  ;;  %v7947_v33 = vpack.c.bf16 %v2693_v61, %v2693_v61  ;;  %v2478_v39 = vpop.f32.mrf.mxu0 }
 0x25c   : > { %v2293_v34 = vpop.f32.mrf.mxu1 }
 0x25d   : > { %v2563_v54 = vadd.f32 %v7658_v1, %v2520_v60  ;;  %v2471_v22 = vadd.f32 %v5776_v28, %v2293_v34  ;;  %v3021_v41 = vrot.slane %v7945_v18, 1  ;;  %v3022_v6 = vrot.slane %v7947_v33, 1 }
 0x25e   : > { %v2295_v30 = vpop.f32.mrf.mxu1  ;;  %v2694_v58 = vld [vmem:[#allocation2 + $0x150] sm:$0xff]  ;;  %v2889_v60 = vshll.u32 %v7922_v26, 16 }
 0x25f   : > { %2599 = vst [vmem:[#allocation2 + $0x169] sm:$0xff] %v2563_v54  ;;  %v2521_v46 = vadd.f32 %v2471_v22, %v7645_v35  ;;  %3403 = vmatmul.mubr.bf16.gmra.mxu0 %v7845_v2  ;;  %v7959_v57 = vsel %vm725_vm0, %v3021_v41, %v3022_v6  ;;  %v2875_v35 = vshrl.u32 %v7898_v31, 16  ;;  %v8604_v41 = vld [vmem:[#allocation20_spill] sm:$0xff]  ;;  %v2884_v30 = vrot.slane %v2882_v16, 1  ;;  %v2654_v16 = vld [vmem:[#allocation2 + $0x10] sm:$0x3] }
 0x260   : > { %8601 = vst [vmem:[#allocation21_spill] sm:$0xff] %v7959_v57  ;;  %3410 = vmatprep.mubr.bf16.mxu0 %v7956_v36  ;;  %v2298_v28 = vpop.f32.mrf.mxu1  ;;  %5821 = vmatprep.mubr.bf16.mxu1 %v7959_v57  ;;  %v2891_v36 = vrot.slane %v2889_v60, 1 }
 0x261   : > { %v2564_v47 = vadd.f32 %v7658_v1, %v2521_v46  ;;  %v2476_v8 = vadd.f32 %v2475_v52, %v2298_v28  ;;  %v2880_v45 = vor.u32 %v2879_v11, %v2875_v35  ;;  %v1906_v52 = vadd.f32 %v8604_v41, %v8603_v10 }
 0x262   : > { %v2300_v13 = vpop.f32.mrf.mxu1  ;;  %v2695_v50 = vld [vmem:[#allocation2 + $0x158] sm:$0xff]  ;;  %v2696_v61 = vld [vmem:[#allocation2 + $0x160] sm:$0x3]  ;;  %v7991_v10 = vpack.c.bf16 %v2654_v16, %v2654_v16 }
 0x263   : > { %2600 = vst [vmem:[#allocation2 + $0x171] sm:$0xff] %v2564_v47  ;;  %v2522_v34 = vadd.f32 %v2476_v8, %v8602_v56  ;;  %v7968_v54 = vpack.c.bf16 %v2695_v50, %v2694_v58  ;;  %v7970_v22 = vpack.c.bf16 %v2696_v61, %v2696_v61  ;;  %v7979_v8 = vsel %vm490_vm1, %v2880_v45, %v2884_v30  ;;  %v6199_v50 = vld [vmem:[%s8516_s2] ss:$0 sm:$0xff] }
 0x264   : > { %v2301_v6 = vpop.f32.mrf.mxu1  ;;  %v2894_v58 = vshll.u32 %v7924_v5, 16  ;;  %v8606_v16 = vld [vmem:[#allocation15_spill] sm:$0xff] }
 0x265   : > { %v2565_v46 = vadd.f32 %v7658_v1, %v2522_v34  ;;  %v2479_v28 = vadd.f32 %v2478_v39, %v2301_v6  ;;  %v3024_v13 = vrot.slane %v7968_v54, 1  ;;  %v3025_v57 = vrot.slane %v7970_v22, 1 }
 0x266   : > { %v2303_v47 = vpop.f32.mrf.mxu1  ;;  %v2887_v39 = vshrl.u32 %v7922_v26, 16  ;;  %v2697_v34 = vld [vmem:[#allocation2 + $0x168] sm:$0xff]  ;;  %v2901_v6 = vshll.u32 %v7945_v18, 16  ;;  %v2896_v5 = vrot.slane %v2894_v58, 1  ;;  %v6200_v58 = vld [vmem:[#allocation2] sm:$0xff] }
 0x267   : > { %2601 = vst [vmem:[#allocation2 + $0x181] sm:$0xff] %v2565_v46  ;;  %v2523_v11 = vadd.f32 %v2479_v28, %v1906_v52  ;;  %3411 = vmatmul.mubr.bf16.gmra.mxu0 %v7873_v15  ;;  %v7982_v35 = vsel %vm725_vm0, %v3024_v13, %v3025_v57  ;;  %v8605_v47 = vmov 0  }
 0x268   : > { %3418 = vmatprep.mubr.bf16.mxu0 %v7979_v8  ;;  %v2306_v1 = vpop.f32.mrf.mxu1  ;;  %5822 = vmatmul.mubr.bf16.gmra.mxu1 %v7982_v35  ;;  %v2892_v56 = vor.u32 %v2891_v36, %v2887_v39  ;;  %v2750_v36 = vshll.u32 %v7991_v10, 16 }
 0x269   : > { %v2566_v61 = vadd.f32 %v6199_v50, %v2523_v11  ;;  %v7998_v11 = vrot.slane %v8605_v47, 1 }
 0x26a   : > { %v2308_v60 = vpop.f32.mrf.mxu1  ;;  %v2698_v57 = vld [vmem:[#allocation2 + $0x170] sm:$0xff]  ;;  %v2699_v45 = vld [vmem:[#allocation2 + $0x178] sm:$0x3] }
 0x26b   : > { %2602 = vst [vmem:[#allocation2 + $0x189] sm:$0xff] %v2566_v61  ;;  %v7993_v41 = vpack.c.bf16 %v2698_v57, %v2697_v34  ;;  %v2737_v52 = vpack.c.bf16 %v2699_v45, %v2699_v45  ;;  %v8004_v61 = vsel %vm490_vm1, %v2892_v56, %v2896_v5  ;;  %v2899_v57 = vshrl.u32 %v7945_v18, 16 }
 0x26c   : > { %v2309_v30 = vpop.f32.mrf.mxu1  ;;  %v2906_v45 = vshll.u32 %v7947_v33, 16 }
 0x26d   : > { %v2487_v46 = vadd.f32 %v5780_v32, %v2309_v30  ;;  %v3027_v28 = vrot.slane %v7993_v41, 1  ;;  %v3028_v13 = vrot.slane %v2737_v52, 1  ;;  %v2903_v32 = vrot.slane %v2901_v6, 1 }
 0x26e   : > { %v2311_v1 = vpop.f32.mrf.mxu1  ;;  %v2700_v30 = vld [vmem:[#allocation2 + $0x180] sm:$0xff]  ;;  %v2913_v6 = vshll.u32 %v7968_v54, 16 }
 0x26f   : > { %v2525_v39 = vadd.f32 %v2487_v46, %v8606_v16  ;;  %3419 = vmatmul.mubr.bf16.gmra.mxu0 %v7898_v31  ;;  %v8007_v60 = vsel %vm725_vm0, %v3027_v28, %v3028_v13  ;;  %v2752_v1 = vrot.slane %v2750_v36, 1  ;;  %v2904_v56 = vor.u32 %v2903_v32, %v2899_v57 }
 0x270   : > { %3426 = vmatprep.mubr.bf16.mxu0 %v8004_v61  ;;  %5825 = vmatprep.mubr.bf16.mxu1 %v8007_v60  ;;  %v2908_v13 = vrot.slane %v2906_v45, 1  ;;  %v2915_v32 = vrot.slane %v2913_v6, 1  ;;  %v2925_v45 = vshll.u32 %v7993_v41, 16  ;;  %v2930_v6 = vshll.u32 %v2737_v52, 16 }
 0x271   : > { %v2568_v34 = vadd.f32 %v6199_v50, %v2525_v39  ;;  %v2753_v39 = vsel %vm490_vm1, %v7998_v11, %v2752_v1 }
 0x272   : > { %v2701_v46 = vld [vmem:[#allocation2 + $0x188] sm:$0xff]  ;;  %v2702_v47 = vld [vmem:[#allocation2 + $0x190] sm:$0x3]  ;;  %v8021_v33 = vsel %vm490_vm1, %v2904_v56, %v2908_v13  ;;  %v2927_v1 = vrot.slane %v2925_v45, 1  ;;  %v6314_v56 = vmov 0.0|0.0   ;;  %v6170_v13 = vld [vmem:[#allocation3 + $0x228] sm:$0xff]  }
 0x273   : > { %2604 = vst [vmem:[#allocation2 + $0x1a1] sm:$0xff] %v2568_v34  ;;  %v8013_v5 = vpack.c.bf16 %v2701_v46, %v2700_v30  ;;  %v2739_v28 = vpack.c.bf16 %v2702_v47, %v2702_v47  ;;  %v2918_v34 = vshll.u32 %v7970_v22, 16  ;;  %v6165_v46 = vld [vmem:[#allocation3 + $0x230] sm:$0xff]   ;;  %v2923_v22 = vshrl.u32 %v7993_v41, 16 }
 0x274   : > { %2651 = vst [vmem:[#allocation2 + $0x1a8] sm:$0x3] %v6200_v58  ;;  %v2911_v58 = vshrl.u32 %v7968_v54, 16 }
 0x275   : > { %v3109_v16 = vrot.slane %v8013_v5, 1  ;;  %v3110_v50 = vrot.slane %v2739_v28, 1  ;;  %v2920_v30 = vrot.slane %v2918_v34, 1  ;;  %v3102_v52 = vshll.u32 %v2739_v28, 16  ;;  %v6178_v34 = vld [vmem:[#allocation3 + $0x218] sm:$0xff]  }
 0x276   : > { %v2916_v57 = vor.u32 %v2915_v32, %v2911_v58  ;;  %v6175_v32 = vld [vmem:[#allocation3 + $0x220] sm:$0xff]   ;;  %v2983_v28 = vrot.slane %v7991_v10, 1  ;;  %v6161_v10 = vld [vmem:[#allocation3 + $0x1f0] sm:$0xff]  }
 0x277   : > { %3427 = vmatmul.mubr.bf16.gmra.mxu0 %v7922_v26  ;;  %v8024_v36 = vsel %vm725_vm0, %v3109_v16, %v3110_v50  ;;  %v2928_v16 = vor.u32 %v2927_v1, %v2923_v22  ;;  %v3097_v50 = vshll.u32 %v8013_v5, 16  ;;  %v3104_v45 = vrot.slane %v3102_v52, 1  ;;  %v6180_v1 = vld [vmem:[#allocation3 + $0x208] sm:$0xff]   ;;  %v6171_v52 = vld [vmem:[#allocation3 + $0x1d0] sm:$0xff]  }
 0x278   : > { %3434 = vmatprep.mubr.bf16.mxu0 %v8021_v33  ;;  %5826 = vmatmul.mubr.bf16.gmra.mxu1 %v8024_v36  ;;  %v8033_v47 = vsel %vm490_vm1, %v2916_v57, %v2920_v30  ;;  %v6179_v30 = vld [vmem:[#allocation3 + $0x210] sm:$0xff]  }
 0x279   : > { %3804 = vmatprep.mubr.bf16.mxu1 %v2753_v39  ;;  %v2932_v39 = vrot.slane %v2930_v6, 1  ;;  %v6181_v6 = vld [vmem:[#allocation3 + $0x200] sm:$0xff]  }
 0x27b   : > { %v8043_v58 = vsel %vm490_vm1, %v2928_v16, %v2932_v39  ;;  %v6162_v16 = vld [vmem:[#allocation3 + $0x1b0] sm:$0xff]   ;;  %v6164_v39 = vld [vmem:[#allocation3 + $0x1a8] sm:$0xff]  }
 0x27f   : > { %3435 = vmatmul.mubr.bf16.gmra.mxu0 %v7945_v18 }
 0x280   : > { %3442 = vmatprep.mubr.bf16.mxu0 %v8033_v47  ;;  %3805 = vmatmul.mubr.bf16.vlgmr.msra.gmra.mxu1 %v6314_v56 }
 0x281   : > { %3812 = vmatprep.mubr.bf16.mxu1 %v7704_v21  ;;  %5878 = vmatpush3.bf16.msra.mxu1 %v7853_v3  ;;  %v3099_v21 = vrot.slane %v3097_v50, 1  ;;  %v3095_v3 = vshrl.u32 %v8013_v5, 16  ;;  %v6163_v50 = vld [vmem:[#allocation3 + $0x1e8] sm:$0xff]  }
 0x282   : > { %5879 = vmatprep.subr.bf16.mxu1 %v6165_v46 }
 0x283   : > { %v3100_v57 = vor.u32 %v3099_v21, %v3095_v3  ;;  %v6168_v21 = vld [vmem:[#allocation3 + $0x1d8] sm:$0xff]  }
 0x284   : > { %v6169_v3 = vld [vmem:[#allocation3 + $0x198] sm:$0xff]  }
 0x285   : > { %5880 = vmatpush3.bf16.msra.mxu1 %v6165_v46  ;;  %v8051_v46 = vsel %vm490_vm1, %v3100_v57, %v3104_v45  ;;  %v6173_v57 = vld [vmem:[#allocation3 + $0x1c8] sm:$0xff]  }
 0x286   : > { %5881 = vmatprep.subr.bf16.mxu1 %v6170_v13  ;;  %v6174_v45 = vld [vmem:[#allocation3 + $0x188] sm:$0xff]  }
 0x287   : > { %3443 = vmatmul.mubr.bf16.gmra.mxu0 %v7968_v54 }
 0x288   : > { %3450 = vmatprep.mubr.bf16.mxu0 %v8043_v58  ;;  %3813 = vmatmul.mubr.bf16.gmra.mxu1 %v7683_v7  ;;  %v8057_v7 = vrot.slane %v6314_v56, 1 }
 0x289   : > { %3820 = vmatprep.mubr.bf16.mxu1 %v7756_v27  ;;  %5882 = vmatpush3.bf16.msra.mxu1 %v6170_v13  ;;  %v6159_v13 = vld [vmem:[#allocation3 + $0x1b8] sm:$0xff]  }
 0x28a   : > { %5883 = vmatprep.subr.bf16.mxu1 %v6175_v32  ;;  %v2984_v22 = vsel %vm725_vm0, %v8057_v7, %v2983_v28  ;;  %v6177_v28 = vld [vmem:[#allocation3 + $0x180] sm:$0xff]  }
 0x28d   : > { %5884 = vmatpush3.bf16.msra.mxu1 %v6175_v32  ;;  %v6166_v32 = vld [vmem:[#allocation3 + $0x1e0] sm:$0xff]  }
 0x28e   : > { %5885 = vmatprep.subr.bf16.mxu1 %v6178_v34 }
 0x28f   : > { %3451 = vmatmul.mubr.bf16.gmra.mxu0 %v7993_v41 }
 0x290   : > { %3458 = vmatprep.mubr.bf16.mxu0 %v8051_v46  ;;  %3821 = vmatmul.mubr.bf16.gmra.mxu1 %v7711_v0 }
 0x291   : > { %3828 = vmatprep.mubr.bf16.mxu1 %v7767_v43  ;;  %5886 = vmatpush3.bf16.msra.mxu1 %v6178_v34  ;;  %v6172_v34 = vld [vmem:[#allocation3 + $0x190] sm:$0xff]  }
 0x292   : > { %5887 = vmatprep.subr.bf16.mxu1 %v6179_v30 }
 0x295   : > { %5888 = vmatpush3.bf16.msra.mxu1 %v6179_v30  ;;  %v6176_v30 = vld [vmem:[#allocation3 + $0x1c0] sm:$0xff]  }
 0x296   : > { %5889 = vmatprep.subr.bf16.mxu1 %v6180_v1 }
 0x297   : > { %3459 = vmatmul.mubr.bf16.gmra.mxu0 %v8013_v5 }
 0x298   : > { %3829 = vmatmul.mubr.bf16.gmra.mxu1 %v7701_v55  ;;  %5845 = vmatprep.mubr.bf16.mxu0 %v2984_v22  ;;  %v8608_v22 = vld [vmem:[#allocation21_spill] sm:$0xff] }
 0x299   : > { %3836 = vmatprep.mubr.bf16.mxu1 %v7803_v53  ;;  %5890 = vmatpush3.bf16.msra.mxu1 %v6180_v1  ;;  %v8607_v1 = vld [vmem:[#allocation16_spill] sm:$0xff] }
 0x29a   : > { %5891 = vmatprep.subr.bf16.mxu1 %v6181_v6 }
 0x29d   : > { %5892 = vmatpush3.bf16.msra.mxu1 %v6181_v6 }
 0x29f   : > { %5846 = vmatmul.mubr.bf16.vlgmr.msra.gmra.mxu0 %v7695_v17  ;;  %v6167_v17 = vld [vmem:[#allocation3 + $0x1a0] sm:$0xff]  }
 0x2a0   : > { %5849 = vmatprep.mubr.bf16.mxu0 %v7732_v23  ;;  %5490 = vmatpush3.bf16.msra.mxu0 %v6159_v13 }
 0x2a1   : > { %3837 = vmatmul.mubr.bf16.gmra.mxu1 %v7745_v59  ;;  %5491 = vmatprep.subr.bf16.mxu0 %v6161_v10 }
 0x2a2   : > { %3844 = vmatprep.mubr.bf16.mxu1 %v7832_v38 }
 0x2a4   : > { %5492 = vmatpush3.bf16.msra.mxu0 %v6162_v16 }
 0x2a5   : > { %5493 = vmatprep.subr.bf16.mxu0 %v6163_v50 }
 0x2a7   : > { %5850 = vmatmul.mubr.bf16.gmra.mxu0 %v7726_v24 }
 0x2a8   : > { %5853 = vmatprep.mubr.bf16.mxu0 %v7771_v12  ;;  %5494 = vmatpush3.bf16.msra.mxu0 %v6164_v39 }
 0x2a9   : > { %3845 = vmatmul.mubr.bf16.gmra.mxu1 %v7742_v25  ;;  %5495 = vmatprep.subr.bf16.mxu0 %v6166_v32 }
 0x2aa   : > { %3852 = vmatprep.mubr.bf16.mxu1 %v7860_v49 }
 0x2ac   : > { %5496 = vmatpush3.bf16.msra.mxu0 %v6167_v17 }
 0x2ad   : > { %5497 = vmatprep.subr.bf16.mxu0 %v6168_v21 }
 0x2af   : > { %5854 = vmatmul.mubr.bf16.gmra.mxu0 %v7779_v48 }
 0x2b0   : > { %5857 = vmatprep.mubr.bf16.mxu0 %v7806_v37  ;;  %5498 = vmatpush3.bf16.msra.mxu0 %v6169_v3 }
 0x2b1   : > { %3853 = vmatmul.mubr.bf16.gmra.mxu1 %v7784_v9  ;;  %5499 = vmatprep.subr.bf16.mxu0 %v6171_v52 }
 0x2b2   : > { %3860 = vmatprep.mubr.bf16.mxu1 %v7886_v42 }
 0x2b4   : > { %5500 = vmatpush3.bf16.msra.mxu0 %v6172_v34 }
 0x2b5   : > { %5501 = vmatprep.subr.bf16.mxu0 %v6173_v57 }
 0x2b7   : > { %5858 = vmatmul.mubr.bf16.gmra.mxu0 %v7814_v19 }
 0x2b8   : > { %5861 = vmatprep.mubr.bf16.mxu0 %v7835_v63  ;;  %5502 = vmatpush3.bf16.msra.mxu0 %v6174_v45 }
 0x2b9   : > { %3861 = vmatmul.mubr.bf16.gmra.mxu1 %v7788_v20  ;;  %5503 = vmatprep.subr.bf16.mxu0 %v6176_v30 }
 0x2ba   : > { %3868 = vmatprep.mubr.bf16.mxu1 %v7910_v29 }
 0x2bc   : > { %5504 = vmatpush3.bf16.msra.mxu0 %v6177_v28 }
 0x2bf   : > { %5862 = vmatmul.mubr.bf16.gmra.mxu0 %v7863_v14 }
 0x2c0   : > { %5865 = vmatprep.mubr.bf16.mxu0 %v7889_v62 }
 0x2c1   : > { %3869 = vmatmul.mubr.bf16.gmra.mxu1 %v7818_v51 }
 0x2c2   : > { %3876 = vmatprep.mubr.bf16.mxu1 %v7933_v44 }
 0x2c7   : > { %5866 = vmatmul.mubr.bf16.gmra.mxu0 %v7913_v40 }
 0x2c8   : > { %5869 = vmatprep.mubr.bf16.mxu0 %v7936_v4 }
 0x2c9   : > { %3877 = vmatmul.mubr.bf16.gmra.mxu1 %v7845_v2 }
 0x2ca   : > { %3884 = vmatprep.mubr.bf16.mxu1 %v8607_v1 }
 0x2cf   : > { %5870 = vmatmul.mubr.bf16.gmra.mxu0 %v8608_v22 }
 0x2d0   : > { %5873 = vmatprep.mubr.bf16.mxu0 %v7982_v35 }
 0x2d1   : > { %3885 = vmatmul.mubr.bf16.gmra.mxu1 %v7873_v15 }
 0x2d2   : > { %3892 = vmatprep.mubr.bf16.mxu1 %v7979_v8 }
 0x2d7   : > { %5874 = vmatmul.mubr.bf16.gmra.mxu0 %v8007_v60 }
 0x2d8   : > { %4338 = vmatprep.mubr.bf16.mxu0 %v7756_v27 }
 0x2d9   : > { %3893 = vmatmul.mubr.bf16.gmra.mxu1 %v7898_v31 }
 0x2da   : > { %3900 = vmatprep.mubr.bf16.mxu1 %v8004_v61 }
 0x2dc   : > { %v5233_v6 = vpop.f32.mrf.mxu0 }
 0x2de   : > { %v5234_v13 = vpop.f32.mrf.mxu0 }
 0x2df   : > { %v5235_v10 = vadd.f32 %v5234_v13, %v5233_v6  ;;  %4339 = vmatmul.mubr.bf16.vlgmr.msra.gmra.mxu0 %v7711_v0 }
 0x2e0   : > { %4346 = vmatprep.mubr.bf16.mxu0 %v7767_v43  ;;  %v5236_v16 = vpop.f32.mrf.mxu0 }
 0x2e1   : > { %3901 = vmatmul.mubr.bf16.gmra.mxu1 %v7922_v26  ;;  %v5799_v50 = vpop.f32.mrf.mxu1 }
 0x2e2   : > { %3908 = vmatprep.mubr.bf16.mxu1 %v8021_v33  ;;  %v5237_v39 = vpop.f32.mrf.mxu0 }
 0x2e3   : > { %v5238_v32 = vadd.f32 %v5237_v39, %v5236_v16  ;;  %v3501_v27 = vpop.f32.mrf.mxu1 }
 0x2e4   : > { %v8101_v17 = vadd.f32 %v5235_v10, %v3501_v27 }
 0x2e5   : > { %v5800_v21 = vpop.f32.mrf.mxu1 }
 0x2e6   : > { %v5239_v3 = vpop.f32.mrf.mxu0 }
 0x2e7   : > { %4347 = vmatmul.mubr.bf16.gmra.mxu0 %v7701_v55  ;;  %v3504_v52 = vpop.f32.mrf.mxu1 }
 0x2e8   : > { %v8104_v34 = vadd.f32 %v5238_v32, %v3504_v52  ;;  %4354 = vmatprep.mubr.bf16.mxu0 %v7803_v53  ;;  %v5240_v0 = vpop.f32.mrf.mxu0 }
 0x2e9   : > { %3909 = vmatmul.mubr.bf16.gmra.mxu1 %v7945_v18  ;;  %v5803_v43 = vpop.f32.mrf.mxu1  ;;  %v5241_v57 = vadd.f32 %v5240_v0, %v5239_v3 }
 0x2ea   : > { %3916 = vmatprep.mubr.bf16.mxu1 %v8033_v47  ;;  %v5242_v45 = vpop.f32.mrf.mxu0 }
 0x2eb   : > { %v3517_v30 = vpop.f32.mrf.mxu1  ;;  %v8109_v28 = vadd.f32 %v5799_v50, %v5241_v57 }
 0x2ec   : > { %v5243_v6 = vpop.f32.mrf.mxu0 }
 0x2ed   : > { %v5804_v13 = vpop.f32.mrf.mxu1  ;;  %v5244_v10 = vadd.f32 %v5243_v6, %v5242_v45 }
 0x2ee   : > { %v5245_v55 = vpop.f32.mrf.mxu0 }
 0x2ef   : > { %4355 = vmatmul.mubr.bf16.gmra.mxu0 %v7745_v59  ;;  %v3520_v16 = vpop.f32.mrf.mxu1  ;;  %v8112_v39 = vadd.f32 %v5800_v21, %v5244_v10 }
 0x2f0   : > { %4362 = vmatprep.mubr.bf16.mxu0 %v7832_v38  ;;  %v5246_v53 = vpop.f32.mrf.mxu0 }
 0x2f1   : > { %3917 = vmatmul.mubr.bf16.gmra.mxu1 %v7968_v54  ;;  %v5807_v32 = vpop.f32.mrf.mxu1  ;;  %v5247_v27 = vadd.f32 %v5246_v53, %v5245_v55 }
 0x2f2   : > { %3924 = vmatprep.mubr.bf16.mxu1 %v8043_v58  ;;  %v5248_v50 = vpop.f32.mrf.mxu0 }
 0x2f3   : > { %v8117_v3 = vadd.f32 %v5247_v27, %v3517_v30  ;;  %v3533_v52 = vpop.f32.mrf.mxu1 }
 0x2f4   : > { %v5249_v0 = vpop.f32.mrf.mxu0 }
 0x2f5   : > { %v5250_v57 = vadd.f32 %v5249_v0, %v5248_v50  ;;  %v5808_v21 = vpop.f32.mrf.mxu1 }
 0x2f7   : > { %v5251_v45 = vpop.f32.mrf.mxu0  ;;  %4363 = vmatmul.mubr.bf16.gmra.mxu0 %v7742_v25  ;;  %v8120_v59 = vadd.f32 %v5250_v57, %v3520_v16  ;;  %v3536_v30 = vpop.f32.mrf.mxu1 }
 0x2f8   : > { %4370 = vmatprep.mubr.bf16.mxu0 %v7860_v49 }
 0x2f9   : > { %v5252_v38 = vpop.f32.mrf.mxu0  ;;  %3925 = vmatmul.mubr.bf16.gmra.mxu1 %v7993_v41  ;;  %v5811_v25 = vpop.f32.mrf.mxu1 }
 0x2fa   : > { %v5253_v6 = vadd.f32 %v5252_v38, %v5251_v45  ;;  %5893 = vmatprep.mubr.bf16.mxu1 %v7732_v23 }
 0x2fb   : > { %v5254_v10 = vpop.f32.mrf.mxu0  ;;  %v3549_v57 = vpop.f32.mrf.mxu1 }
 0x2fc   : > { %v8125_v55 = vadd.f32 %v5803_v43, %v5253_v6 }
 0x2fd   : > { %v5255_v53 = vpop.f32.mrf.mxu0 }
 0x2fe   : > { %v5256_v27 = vadd.f32 %v5255_v53, %v5254_v10 }
 0x2ff   : > { %v5257_v50 = vpop.f32.mrf.mxu0  ;;  %4371 = vmatmul.mubr.bf16.gmra.mxu0 %v7784_v9  ;;  %v5812_v9 = vpop.f32.mrf.mxu1 }
 0x300   : > { %v8128_v16 = vadd.f32 %v5804_v13, %v5256_v27  ;;  %4378 = vmatprep.mubr.bf16.mxu0 %v7886_v42 }
 0x301   : > { %v5258_v49 = vpop.f32.mrf.mxu0  ;;  %5894 = vmatmul.mubr.bf16.vlgmr.msra.gmra.mxu1 %v7726_v24  ;;  %v3552_v10 = vpop.f32.mrf.mxu1 }
 0x302   : > { %v5259_v0 = vadd.f32 %v5258_v49, %v5257_v50  ;;  %5897 = vmatprep.mubr.bf16.mxu1 %v7771_v12 }
 0x303   : > { %v5260_v23 = vpop.f32.mrf.mxu0 }
 0x304   : > { %v8133_v43 = vadd.f32 %v5259_v0, %v3533_v52 }
 0x305   : > { %v5261_v45 = vpop.f32.mrf.mxu0 }
 0x306   : > { %v5262_v38 = vadd.f32 %v5261_v45, %v5260_v23 }
 0x307   : > { %v5263_v6 = vpop.f32.mrf.mxu0  ;;  %4379 = vmatmul.mubr.bf16.gmra.mxu0 %v7788_v20 }
 0x308   : > { %v8136_v13 = vadd.f32 %v5262_v38, %v3536_v30  ;;  %4386 = vmatprep.mubr.bf16.mxu0 %v7910_v29  ;;  %v5815_v27 = vpop.f32.mrf.mxu1 }
 0x309   : > { %v5264_v42 = vpop.f32.mrf.mxu0  ;;  %5898 = vmatmul.mubr.bf16.gmra.mxu1 %v7779_v48 }
 0x30a   : > { %v5265_v24 = vadd.f32 %v5264_v42, %v5263_v6  ;;  %5901 = vmatprep.mubr.bf16.mxu1 %v7806_v37  ;;  %v3565_v48 = vpop.f32.mrf.mxu1 }
 0x30b   : > { %v5266_v12 = vpop.f32.mrf.mxu0 }
 0x30c   : > { %v8141_v52 = vadd.f32 %v5807_v32, %v5265_v24  ;;  %v5816_v23 = vpop.f32.mrf.mxu1 }
 0x30d   : > { %v5267_v53 = vpop.f32.mrf.mxu0 }
 0x30e   : > { %v5268_v50 = vadd.f32 %v5267_v53, %v5266_v12 }
 0x30f   : > { %v5269_v49 = vpop.f32.mrf.mxu0  ;;  %4387 = vmatmul.mubr.bf16.gmra.mxu0 %v7818_v51 }
 0x310   : > { %v8144_v20 = vadd.f32 %v5808_v21, %v5268_v50  ;;  %4394 = vmatprep.mubr.bf16.mxu0 %v7933_v44 }
 0x311   : > { %v5270_v29 = vpop.f32.mrf.mxu0  ;;  %5902 = vmatmul.mubr.bf16.gmra.mxu1 %v7814_v19  ;;  %v3568_v19 = vpop.f32.mrf.mxu1 }
 0x312   : > { %v5271_v30 = vadd.f32 %v5270_v29, %v5269_v49  ;;  %5905 = vmatprep.mubr.bf16.mxu1 %v7835_v63 }
 0x313   : > { %v5272_v37 = vpop.f32.mrf.mxu0 }
 0x314   : > { %v8149_v32 = vadd.f32 %v5271_v30, %v3549_v57 }
 0x315   : > { %v5273_v0 = vpop.f32.mrf.mxu0 }
 0x316   : > { %v5274_v45 = vadd.f32 %v5273_v0, %v5272_v37 }
 0x317   : > { %v5275_v38 = vpop.f32.mrf.mxu0  ;;  %4395 = vmatmul.mubr.bf16.gmra.mxu0 %v7845_v2 }
 0x318   : > { %v8152_v51 = vadd.f32 %v5274_v45, %v3552_v10  ;;  %4402 = vmatprep.mubr.bf16.mxu0 %v8607_v1  ;;  %v5819_v6 = vpop.f32.mrf.mxu1 }
 0x319   : > { %v5276_v44 = vpop.f32.mrf.mxu0  ;;  %5906 = vmatmul.mubr.bf16.gmra.mxu1 %v7863_v14 }
 0x31a   : > { %v5277_v21 = vadd.f32 %v5276_v44, %v5275_v38  ;;  %5909 = vmatprep.mubr.bf16.mxu1 %v7889_v62  ;;  %v3581_v2 = vpop.f32.mrf.mxu1 }
 0x31b   : > { %v5278_v63 = vpop.f32.mrf.mxu0 }
 0x31c   : > { %v8157_v57 = vadd.f32 %v5811_v25, %v5277_v21  ;;  %v5820_v25 = vpop.f32.mrf.mxu1 }
 0x31d   : > { %v5279_v42 = vpop.f32.mrf.mxu0 }
 0x31e   : > { %v5280_v24 = vadd.f32 %v5279_v42, %v5278_v63 }
 0x31f   : > { %v5281_v12 = vpop.f32.mrf.mxu0  ;;  %4403 = vmatmul.mubr.bf16.gmra.mxu0 %v7873_v15  ;;  %v3584_v15 = vpop.f32.mrf.mxu1 }
 0x320   : > { %v8160_v10 = vadd.f32 %v5812_v9, %v5280_v24  ;;  %4410 = vmatprep.mubr.bf16.mxu0 %v7979_v8 }
 0x321   : > { %v5282_v1 = vpop.f32.mrf.mxu0  ;;  %5910 = vmatmul.mubr.bf16.gmra.mxu1 %v7913_v40 }
 0x322   : > { %v5283_v14 = vadd.f32 %v5282_v1, %v5281_v12  ;;  %5913 = vmatprep.mubr.bf16.mxu1 %v7936_v4 }
 0x323   : > { %v5284_v62 = vpop.f32.mrf.mxu0 }
 0x324   : > { %v8165_v53 = vadd.f32 %v5283_v14, %v3565_v48  ;;  %v2705_v48 = vld [vmem:[#allocation2 + $0x1a8] sm:$0x3] }
 0x325   : > { %v5285_v50 = vpop.f32.mrf.mxu0  ;;  %v2741_v38 = vpack.c.bf16 %v2705_v48, %v2705_v48 }
 0x326   : > { %v5286_v49 = vadd.f32 %v5285_v50, %v5284_v62 }
 0x327   : > { %v5287_v29 = vpop.f32.mrf.mxu0  ;;  %4411 = vmatmul.mubr.bf16.gmra.mxu0 %v7898_v31 }
 0x328   : > { %v8168_v9 = vadd.f32 %v5286_v49, %v3568_v19  ;;  %4418 = vmatprep.mubr.bf16.mxu0 %v8004_v61  ;;  %v8172_v30 = vpop.f32.mrf.mxu1 }
 0x329   : > { %v5288_v8 = vpop.f32.mrf.mxu0  ;;  %5914 = vmatmul.mubr.bf16.gmra.mxu1 %v8608_v22 }
 0x32a   : > { %v5289_v40 = vadd.f32 %v5288_v8, %v5287_v29  ;;  %5917 = vmatprep.mubr.bf16.mxu1 %v7982_v35  ;;  %v3597_v45 = vpop.f32.mrf.mxu1 }
 0x32b   : > { %v5290_v4 = vpop.f32.mrf.mxu0 }
 0x32c   : > { %v8175_v37 = vadd.f32 %v5815_v27, %v5289_v40  ;;  %v8182_v19 = vpop.f32.mrf.mxu1  ;;  %v4110_v27 = vrot.slane %v2741_v38, 1 }
 0x32d   : > { %v5291_v0 = vpop.f32.mrf.mxu0 }
 0x32e   : > { %v5292_v31 = vadd.f32 %v5291_v0, %v5290_v4  ;;  %v3600_v24 = vpop.f32.mrf.mxu1 }
 0x32f   : > { %v5293_v44 = vpop.f32.mrf.mxu0  ;;  %4419 = vmatmul.mubr.bf16.gmra.mxu0 %v7922_v26  ;;  %v4111_v26 = vsel %vm725_vm0, %v8057_v7, %v4110_v27 }
 0x330   : > { %v8178_v61 = vadd.f32 %v5816_v23, %v5292_v31  ;;  %4426 = vmatprep.mubr.bf16.mxu0 %v8021_v33 }
 0x331   : > { %v5294_v22 = vpop.f32.mrf.mxu0  ;;  %5918 = vmatmul.mubr.bf16.gmra.mxu1 %v8007_v60 }
 0x332   : > { %v5295_v35 = vadd.f32 %v5294_v22, %v5293_v44  ;;  %5921 = vmatprep.mubr.bf16.mxu1 %v8024_v36  ;;  %v4102_v22 = vshll.u32 %v2741_v38, 16 }
 0x333   : > { %v5296_v21 = vpop.f32.mrf.mxu0 }
 0x334   : > { %v8185_v63 = vadd.f32 %v5295_v35, %v3581_v2 }
 0x335   : > { %v5297_v42 = vpop.f32.mrf.mxu0 }
 0x336   : > { %v5298_v12 = vadd.f32 %v5297_v42, %v5296_v21 }
 0x337   : > { %v5299_v23 = vpop.f32.mrf.mxu0  ;;  %4427 = vmatmul.mubr.bf16.gmra.mxu0 %v7945_v18 }
 0x338   : > { %v8190_v33 = vadd.f32 %v5298_v12, %v3584_v15  ;;  %4434 = vmatprep.mubr.bf16.mxu0 %v8033_v47  ;;  %v8193_v60 = vpop.f32.mrf.mxu1 }
 0x339   : > { %v5300_v36 = vpop.f32.mrf.mxu0  ;;  %5922 = vmatmul.mubr.bf16.gmra.mxu1 %v4111_v26 }
 0x33a   : > { %v5301_v1 = vadd.f32 %v5300_v36, %v5299_v23  ;;  %v3613_v2 = vpop.f32.mrf.mxu1 }
 0x33b   : > { %v5302_v14 = vpop.f32.mrf.mxu0 }
 0x33c   : > { %v8195_v62 = vadd.f32 %v5819_v6, %v5301_v1  ;;  %v8197_v50 = vpop.f32.mrf.mxu1 }
 0x33d   : > { %v5303_v49 = vpop.f32.mrf.mxu0 }
 0x33e   : > { %v5304_v7 = vadd.f32 %v5303_v49, %v5302_v14  ;;  %v3616_v29 = vpop.f32.mrf.mxu1 }
 0x33f   : > { %v5305_v8 = vpop.f32.mrf.mxu0  ;;  %4435 = vmatmul.mubr.bf16.gmra.mxu0 %v7968_v54 }
 0x340   : > { %v8200_v18 = vadd.f32 %v5820_v25, %v5304_v7  ;;  %4442 = vmatprep.mubr.bf16.mxu0 %v8043_v58  ;;  %v5369_v47 = vpop.f32.mrf.mxu1 }
 0x341   : > { %v5306_v15 = vpop.f32.mrf.mxu0 }
 0x342   : > { %v5307_v40 = vadd.f32 %v5306_v15, %v5305_v8  ;;  %v5370_v4 = vpop.f32.mrf.mxu1 }
 0x343   : > { %v5308_v48 = vpop.f32.mrf.mxu0  ;;  %v5371_v0 = vadd.f32 %v5370_v4, %v5369_v47 }
 0x344   : > { %v8203_v6 = vadd.f32 %v5307_v40, %v3597_v45  ;;  %v5372_v31 = vpop.f32.mrf.mxu1  ;;  %v4104_v45 = vrot.slane %v4102_v22, 1 }
 0x345   : > { %v5309_v44 = vpop.f32.mrf.mxu0  ;;  %v8206_v35 = vadd.f32 %v5371_v0, %v8101_v17 }
 0x346   : > { %v5310_v27 = vadd.f32 %v5309_v44, %v5308_v48  ;;  %v5373_v54 = vpop.f32.mrf.mxu1 }
 0x347   : > { %v5311_v25 = vpop.f32.mrf.mxu0  ;;  %v5374_v21 = vadd.f32 %v5373_v54, %v5372_v31  ;;  %4443 = vmatmul.mubr.bf16.gmra.mxu0 %v7993_v41  ;;  %v4105_v41 = vsel %vm490_vm1, %v7998_v11, %v4104_v45 }
 0x348   : > { %v8209_v58 = vadd.f32 %v5310_v27, %v3600_v24  ;;  %4450 = vmatprep.mubr.bf16.mxu0 %v8051_v46  ;;  %v5375_v42 = vpop.f32.mrf.mxu1 }
 0x349   : > { %v5312_v12 = vpop.f32.mrf.mxu0  ;;  %v3810_v26 = vadd.f32 %v5374_v21, %v8104_v34 }
 0x34a   : > { %v5313_v23 = vadd.f32 %v5312_v12, %v5311_v25  ;;  %v5376_v38 = vpop.f32.mrf.mxu1 }
 0x34b   : > { %v5314_v36 = vpop.f32.mrf.mxu0  ;;  %v5377_v17 = vadd.f32 %v5376_v38, %v5375_v42 }
 0x34c   : > { %v8214_v1 = vadd.f32 %v8172_v30, %v5313_v23  ;;  %v5378_v14 = vpop.f32.mrf.mxu1 }
 0x34d   : > { %v5315_v49 = vpop.f32.mrf.mxu0  ;;  %v3815_v24 = vadd.f32 %v5377_v17, %v8109_v28 }
 0x34e   : > { %v5316_v46 = vadd.f32 %v5315_v49, %v5314_v36  ;;  %v5379_v7 = vpop.f32.mrf.mxu1 }
 0x34f   : > { %v5317_v8 = vpop.f32.mrf.mxu0  ;;  %v5380_v47 = vadd.f32 %v5379_v7, %v5378_v14  ;;  %4451 = vmatmul.mubr.bf16.gmra.mxu0 %v8013_v5 }
 0x350   : > { %v8221_v34 = vadd.f32 %v8182_v19, %v5316_v46  ;;  %v5381_v15 = vpop.f32.mrf.mxu1  ;;  %4458 = vmatprep.mubr.bf16.mxu0 %v4105_v41 }
 0x351   : > { %v5318_v30 = vpop.f32.mrf.mxu0  ;;  %v3818_v40 = vadd.f32 %v5380_v47, %v8112_v39 }
 0x352   : > { %v5319_v4 = vadd.f32 %v5318_v30, %v5317_v8  ;;  %v5382_v48 = vpop.f32.mrf.mxu1 }
 0x353   : > { %v5320_v0 = vpop.f32.mrf.mxu0  ;;  %v5383_v11 = vadd.f32 %v5382_v48, %v5381_v15 }
 0x354   : > { %v8224_v31 = vadd.f32 %v5319_v4, %v3613_v2  ;;  %v5384_v28 = vpop.f32.mrf.mxu1 }
 0x355   : > { %v5321_v44 = vpop.f32.mrf.mxu0  ;;  %v3823_v22 = vadd.f32 %v5383_v11, %v8117_v3 }
 0x356   : > { %v5322_v27 = vadd.f32 %v5321_v44, %v5320_v0  ;;  %v5385_v5 = vpop.f32.mrf.mxu1 }
 0x357   : > { %v5323_v54 = vpop.f32.mrf.mxu0  ;;  %v5386_v19 = vadd.f32 %v5385_v5, %v5384_v28  ;;  %4459 = vmatmul.mubr.bf16.gmra.mxu0 %v6314_v56 }
 0x358   : > { %v8228_v25 = vadd.f32 %v5322_v27, %v3616_v29  ;;  %v5387_v21 = vpop.f32.mrf.mxu1 }
 0x359   : > { %v5324_v39 = vpop.f32.mrf.mxu0  ;;  %v3826_v42 = vadd.f32 %v5386_v19, %v8120_v59 }
 0x35a   : > { %v5325_v12 = vadd.f32 %v5324_v39, %v5323_v54  ;;  %v5388_v45 = vpop.f32.mrf.mxu1 }
 0x35b   : > { %v5326_v2 = vpop.f32.mrf.mxu0  ;;  %v5389_v23 = vadd.f32 %v5388_v45, %v5387_v21 }
 0x35c   : > { %v8232_v38 = vadd.f32 %v8193_v60, %v5325_v12  ;;  %v5390_v3 = vpop.f32.mrf.mxu1 }
 0x35d   : > { %v5327_v36 = vpop.f32.mrf.mxu0  ;;  %v3831_v17 = vadd.f32 %v5389_v23, %v8125_v55 }
 0x35e   : > { %v5328_v14 = vadd.f32 %v5327_v36, %v5326_v2  ;;  %v5391_v49 = vpop.f32.mrf.mxu1 }
 0x35f   : > { %v5392_v56 = vadd.f32 %v5391_v49, %v5390_v3  ;;  %v5847_v29 = vpop.f32.mrf.mxu0 }
 0x360   : > { %v8236_v41 = vadd.f32 %v8197_v50, %v5328_v14  ;;  %v8238_v46 = vadd.f32 %v5847_v29, %v3815_v24 }
 0x361   : > { %v5393_v59 = vpop.f32.mrf.mxu1  ;;  %v3967_v7 = vpop.f32.mrf.mxu0  ;;  %v3834_v8 = vadd.f32 %v5392_v56, %v8128_v16 }
 0x362   : > { %v8242_v60 = vadd.f32 %v3967_v7, %v8206_v35 }
 0x363   : > { %v5394_v47 = vpop.f32.mrf.mxu1  ;;  %v5848_v15 = vpop.f32.mrf.mxu0 }
 0x364   : > { %v5395_v30 = vadd.f32 %v5394_v47, %v5393_v59  ;;  %v8244_v55 = vadd.f32 %v5848_v15, %v3818_v40 }
 0x365   : > { %v5396_v4 = vpop.f32.mrf.mxu1  ;;  %v3970_v48 = vpop.f32.mrf.mxu0 }
 0x366   : > { %v8246_v0 = vadd.f32 %v3970_v48, %v3810_v26  ;;  %v3839_v50 = vadd.f32 %v5395_v30, %v8133_v43 }
 0x367   : > { %v5397_v24 = vpop.f32.mrf.mxu1  ;;  %v5851_v11 = vpop.f32.mrf.mxu0 }
 0x368   : > { %v5398_v28 = vadd.f32 %v5397_v24, %v5396_v4  ;;  %v8249_v44 = vadd.f32 %v5851_v11, %v3831_v17 }
 0x369   : > { %v5399_v16 = vpop.f32.mrf.mxu1  ;;  %v3983_v27 = vpop.f32.mrf.mxu0 }
 0x36a   : > { %v8251_v35 = vadd.f32 %v3983_v27, %v3823_v22  ;;  %v3842_v5 = vadd.f32 %v5398_v28, %v8136_v13 }
 0x36b   : > { %v5400_v54 = vpop.f32.mrf.mxu1  ;;  %v5852_v40 = vpop.f32.mrf.mxu0 }
 0x36c   : > { %v5401_v19 = vadd.f32 %v5400_v54, %v5399_v16  ;;  %v8254_v21 = vadd.f32 %v5852_v40, %v3834_v8 }
 0x36d   : > { %v5402_v26 = vpop.f32.mrf.mxu1  ;;  %v3986_v39 = vpop.f32.mrf.mxu0 }
 0x36e   : > { %v8256_v12 = vadd.f32 %v3986_v39, %v3826_v42  ;;  %v3847_v43 = vadd.f32 %v5401_v19, %v8141_v52 }
 0x36f   : > { %v5403_v45 = vpop.f32.mrf.mxu1  ;;  %v5855_v2 = vpop.f32.mrf.mxu0 }
 0x370   : > { %v5404_v23 = vadd.f32 %v5403_v45, %v5402_v26  ;;  %v8259_v3 = vadd.f32 %v5855_v2, %v3847_v43 }
 0x371   : > { %v5405_v22 = vpop.f32.mrf.mxu1  ;;  %v3999_v36 = vpop.f32.mrf.mxu0 }
 0x372   : > { %v8261_v17 = vadd.f32 %v3999_v36, %v3839_v50  ;;  %v3850_v13 = vadd.f32 %v5404_v23, %v8144_v20 }
 0x373   : > { %v5406_v14 = vpop.f32.mrf.mxu1  ;;  %v5856_v49 = vpop.f32.mrf.mxu0 }
 0x374   : > { %v5407_v56 = vadd.f32 %v5406_v14, %v5405_v22  ;;  %v8264_v29 = vadd.f32 %v5856_v49, %v3850_v13 }
 0x375   : > { %v5408_v42 = vpop.f32.mrf.mxu1  ;;  %v4002_v59 = vpop.f32.mrf.mxu0 }
 0x376   : > { %v8266_v7 = vadd.f32 %v4002_v59, %v3842_v5  ;;  %v3855_v52 = vadd.f32 %v5407_v56, %v8149_v32 }
 0x377   : > { %v5409_v8 = vpop.f32.mrf.mxu1  ;;  %v5859_v47 = vpop.f32.mrf.mxu0 }
 0x378   : > { %v5410_v15 = vadd.f32 %v5409_v8, %v5408_v42 }
 0x379   : > { %v5411_v30 = vpop.f32.mrf.mxu1  ;;  %v4015_v4 = vpop.f32.mrf.mxu0 }
 0x37a   : > { %v8269_v48 = vadd.f32 %v4015_v4, %v3855_v52  ;;  %v3858_v20 = vadd.f32 %v5410_v15, %v8152_v51 }
 0x37b   : > { %v5412_v50 = vpop.f32.mrf.mxu1  ;;  %v5860_v24 = vpop.f32.mrf.mxu0 }
 0x37c   : > { %v5413_v11 = vadd.f32 %v5412_v50, %v5411_v30 }
 0x37d   : > { %v5414_v28 = vpop.f32.mrf.mxu1  ;;  %v4018_v16 = vpop.f32.mrf.mxu0 }
 0x37e   : > { %v3863_v27 = vadd.f32 %v5413_v11, %v8157_v57  ;;  %v8273_v5 = vadd.f32 %v4018_v16, %v3858_v20 }
 0x37f   : > { %v5415_v54 = vpop.f32.mrf.mxu1  ;;  %v5863_v32 = vpop.f32.mrf.mxu0 }
 0x380   : > { %v5416_v40 = vadd.f32 %v5415_v54, %v5414_v28  ;;  %v8275_v19 = vadd.f32 %v5859_v47, %v3863_v27 }
 0x381   : > { %v5417_v26 = vpop.f32.mrf.mxu1  ;;  %v4031_v39 = vpop.f32.mrf.mxu0 }
 0x382   : > { %v3866_v43 = vadd.f32 %v5416_v40, %v8160_v10 }
 0x383   : > { %v5418_v45 = vpop.f32.mrf.mxu1  ;;  %v5864_v51 = vpop.f32.mrf.mxu0 }
 0x384   : > { %v5419_v2 = vadd.f32 %v5418_v45, %v5417_v26  ;;  %v8278_v23 = vadd.f32 %v5860_v24, %v3866_v43 }
 0x385   : > { %v5420_v22 = vpop.f32.mrf.mxu1  ;;  %v4034_v36 = vpop.f32.mrf.mxu0 }
 0x386   : > { %v3871_v57 = vadd.f32 %v5419_v2, %v8165_v53 }
 0x387   : > { %v5421_v13 = vpop.f32.mrf.mxu1  ;;  %v5867_v14 = vpop.f32.mrf.mxu0 }
 0x388   : > { %v5422_v49 = vadd.f32 %v5421_v13, %v5420_v22  ;;  %v8281_v56 = vadd.f32 %v4031_v39, %v3871_v57 }
 0x389   : > { %v5423_v42 = vpop.f32.mrf.mxu1  ;;  %v4047_v59 = vpop.f32.mrf.mxu0 }
 0x38a   : > { %v3874_v52 = vadd.f32 %v5422_v49, %v8168_v9 }
 0x38b   : > { %v5424_v8 = vpop.f32.mrf.mxu1  ;;  %v5868_v10 = vpop.f32.mrf.mxu0 }
 0x38c   : > { %v5425_v47 = vadd.f32 %v5424_v8, %v5423_v42  ;;  %v8284_v15 = vadd.f32 %v4034_v36, %v3874_v52 }
 0x38d   : > { %v5426_v30 = vpop.f32.mrf.mxu1  ;;  %v4050_v4 = vpop.f32.mrf.mxu0 }
 0x38e   : > { %v3879_v20 = vadd.f32 %v5425_v47, %v8175_v37 }
 0x38f   : > { %v5427_v50 = vpop.f32.mrf.mxu1  ;;  %v5871_v53 = vpop.f32.mrf.mxu0 }
 0x390   : > { %v8287_v24 = vadd.f32 %v5863_v32, %v3879_v20  ;;  %v5428_v11 = vadd.f32 %v5427_v50, %v5426_v30 }
 0x391   : > { %v5429_v28 = vpop.f32.mrf.mxu1  ;;  %v4063_v16 = vpop.f32.mrf.mxu0 }
 0x392   : > { %v3882_v27 = vadd.f32 %v5428_v11, %v8178_v61 }
 0x393   : > { %v5430_v54 = vpop.f32.mrf.mxu1  ;;  %v5872_v9 = vpop.f32.mrf.mxu0 }
 0x394   : > { %v8290_v40 = vadd.f32 %v5864_v51, %v3882_v27  ;;  %v5431_v26 = vadd.f32 %v5430_v54, %v5429_v28 }
 0x395   : > { %v5432_v39 = vpop.f32.mrf.mxu1  ;;  %v4066_v43 = vpop.f32.mrf.mxu0 }
 0x396   : > { %v3887_v45 = vadd.f32 %v5431_v26, %v8185_v63 }
 0x397   : > { %v5433_v2 = vpop.f32.mrf.mxu1  ;;  %v8293_v37 = vpop.f32.mrf.mxu0 }
 0x398   : > { %v8295_v22 = vadd.f32 %v4047_v59, %v3887_v45  ;;  %v5434_v32 = vadd.f32 %v5433_v2, %v5432_v39 }
 0x399   : > { %v5435_v36 = vpop.f32.mrf.mxu1  ;;  %v4079_v57 = vpop.f32.mrf.mxu0 }
 0x39a   : > { %v3890_v13 = vadd.f32 %v5434_v32, %v8190_v33 }
 0x39b   : > { %v5436_v61 = vpop.f32.mrf.mxu1  ;;  %v8298_v49 = vpop.f32.mrf.mxu0 }
 0x39c   : > { %v8300_v51 = vadd.f32 %v4050_v4, %v3890_v13  ;;  %v5437_v42 = vadd.f32 %v5436_v61, %v5435_v36 }
 0x39d   : > { %v5438_v52 = vpop.f32.mrf.mxu1  ;;  %v4082_v8 = vpop.f32.mrf.mxu0 }
 0x39e   : > { %v3895_v63 = vadd.f32 %v5437_v42, %v8195_v62 }
 0x39f   : > { %v5439_v47 = vpop.f32.mrf.mxu1  ;;  %v8303_v30 = vpop.f32.mrf.mxu0 }
 0x3a0   : > { %v8305_v59 = vadd.f32 %v5867_v14, %v3895_v63  ;;  %v5440_v20 = vadd.f32 %v5439_v47, %v5438_v52 }
 0x3a1   : > { %v5441_v50 = vpop.f32.mrf.mxu1  ;;  %v5506_v11 = vpop.f32.mrf.mxu0 }
 0x3a2   : > { %v3898_v33 = vadd.f32 %v5440_v20, %v8200_v18 }
 0x3a3   : > { %v5442_v28 = vpop.f32.mrf.mxu1  ;;  %v8308_v27 = vpop.f32.mrf.mxu0 }
 0x3a4   : > { %v8310_v4 = vadd.f32 %v5868_v10, %v3898_v33  ;;  %v5443_v54 = vadd.f32 %v5442_v28, %v5441_v50 }
 0x3a5   : > { %v5444_v26 = vpop.f32.mrf.mxu1  ;;  %v8312_v39 = vpop.f32.mrf.mxu0 }
 0x3a6   : > { %v3903_v62 = vadd.f32 %v5443_v54, %v8203_v6 }
 0x3a7   : > { %v5445_v45 = vpop.f32.mrf.mxu1  ;;  %v5511_v2 = vpop.f32.mrf.mxu0 }
 0x3a8   : > { %v8315_v14 = vadd.f32 %v4063_v16, %v3903_v62  ;;  %v5446_v32 = vadd.f32 %v5445_v45, %v5444_v26 }
 0x3a9   : > { %v5447_v36 = vpop.f32.mrf.mxu1  ;;  %v5512_v13 = vpop.f32.mrf.mxu0 }
 0x3aa   : > { %v3906_v18 = vadd.f32 %v5446_v32, %v8209_v58 }
 0x3ab   : > { %v5448_v61 = vpop.f32.mrf.mxu1  ;;  %v5514_v42 = vpop.f32.mrf.mxu0 }
 0x3ac   : > { %v8318_v52 = vadd.f32 %v4066_v43, %v3906_v18  ;;  %v5449_v10 = vadd.f32 %v5448_v61, %v5447_v36 }
 0x3ad   : > { %v5450_v63 = vpop.f32.mrf.mxu1  ;;  %v5515_v47 = vpop.f32.mrf.mxu0 }
 0x3ae   : > { %v3911_v20 = vadd.f32 %v5449_v10, %v8214_v1 }
 0x3af   : > { %v5451_v50 = vpop.f32.mrf.mxu1  ;;  %v5517_v6 = vpop.f32.mrf.mxu0 }
 0x3b0   : > { %v8321_v33 = vadd.f32 %v5871_v53, %v3911_v20  ;;  %v5452_v16 = vadd.f32 %v5451_v50, %v5450_v63 }
 0x3b1   : > { %v5453_v28 = vpop.f32.mrf.mxu1  ;;  %v5518_v54 = vpop.f32.mrf.mxu0 }
 0x3b2   : > { %v3914_v26 = vadd.f32 %v5452_v16, %v8221_v34 }
 0x3b3   : > { %v5454_v62 = vpop.f32.mrf.mxu1  ;;  %v8324_v58 = vpop.f32.mrf.mxu0 }
 0x3b4   : > { %v8326_v45 = vadd.f32 %v5872_v9, %v3914_v26  ;;  %v5455_v43 = vadd.f32 %v5454_v62, %v5453_v28 }
 0x3b5   : > { %v5456_v32 = vpop.f32.mrf.mxu1  ;;  %v8328_v36 = vpop.f32.mrf.mxu0 }
 0x3b6   : > { %8609 = vst [vmem:[#allocation17_spill] sm:$0xff] %v8326_v45  ;;  %v3919_v1 = vadd.f32 %v5455_v43, %v8224_v31 }
 0x3b7   : > { %v5457_v18 = vpop.f32.mrf.mxu1  ;;  %v5523_v53 = vpop.f32.mrf.mxu0 }
 0x3b8   : > { %v5458_v61 = vadd.f32 %v5457_v18, %v5456_v32  ;;  %v8331_v10 = vadd.f32 %v4079_v57, %v3919_v1  ;;  %v5513_v32 = vadd.f32 %v5512_v13, %v5511_v2 }
 0x3b9   : > { %v5459_v63 = vpop.f32.mrf.mxu1  ;;  %v5524_v20 = vpop.f32.mrf.mxu0 }
 0x3ba   : > { %v3922_v34 = vadd.f32 %v5458_v61, %v8228_v25  ;;  %v5507_v61 = vadd.f32 %v5506_v11, %v8303_v30 }
 0x3bb   : > { %v5460_v50 = vpop.f32.mrf.mxu1  ;;  %v5526_v16 = vpop.f32.mrf.mxu0 }
 0x3bc   : > { %v5461_v9 = vadd.f32 %v5460_v50, %v5459_v63  ;;  %v8334_v28 = vadd.f32 %v4082_v8, %v3922_v34 }
 0x3bd   : > { %v5462_v26 = vpop.f32.mrf.mxu1  ;;  %v5527_v62 = vpop.f32.mrf.mxu0 }
 0x3be   : > { %v3927_v31 = vadd.f32 %v5461_v9, %v8232_v38  ;;  %v8348_v38 = vld [vmem:[%s8518_s4] ss:$0 sm:$0xff]  ;;  %v5510_v9 = vadd.f32 %v8312_v39, %v8308_v27 }
 0x3bf   : > { %v5463_v43 = vpop.f32.mrf.mxu1  ;;  %v5529_v45 = vpop.f32.mrf.mxu0 }
 0x3c0   : > { %v8339_v57 = vadd.f32 %v8293_v37, %v3927_v31  ;;  %v5464_v1 = vadd.f32 %v5463_v43, %v5462_v26  ;;  %v5516_v37 = vadd.f32 %v5515_v47, %v5514_v42  ;;  %v5519_v47 = vadd.f32 %v5518_v54, %v5517_v6 }
 0x3c1   : > { %v5530_v18 = vpop.f32.mrf.mxu0  ;;  %v5895_v25 = vpop.f32.mrf.mxu1  ;;  %v5522_v6 = vadd.f32 %v8328_v36, %v8324_v58 }
 0x3c2   : > { %v3930_v63 = vadd.f32 %v5464_v1, %v8236_v41  ;;  %v4510_v8 = vadd.f32 %v5895_v25, %v5513_v32  ;;  %v5525_v25 = vadd.f32 %v5524_v20, %v5523_v53  ;;  %v5531_v58 = vadd.f32 %v5530_v18, %v5529_v45 }
 0x3c3   : > { %v8350_v34 = vpop.f32.mrf.mxu0  ;;  %v4501_v2 = vpop.f32.mrf.mxu1 }
 0x3c4   : > { %v8353_v13 = vadd.f32 %v8298_v49, %v3930_v63  ;;  %v4630_v50 = vadd.f32 %v4510_v8, %v8238_v46  ;;  %v4502_v30 = vadd.f32 %v5507_v61, %v4501_v2  ;;  %v5528_v8 = vadd.f32 %v5527_v62, %v5526_v16 }
 0x3c5   : > { %v5533_v11 = vpop.f32.mrf.mxu0  ;;  %v5896_v41 = vpop.f32.mrf.mxu1 }
 0x3c6   : > { %v4669_v26 = vadd.f32 %v8348_v38, %v4630_v50  ;;  %v4628_v31 = vadd.f32 %v4502_v30, %v8242_v60  ;;  %v4513_v43 = vadd.f32 %v5896_v41, %v5516_v37  ;;  %v5534_v45 = vadd.f32 %v5533_v11, %v8350_v34 }
 0x3c7   : > { %v5535_v32 = vpop.f32.mrf.mxu0  ;;  %v4504_v1 = vpop.f32.mrf.mxu1 }
 0x3c8   : > { %4701 = vst [vmem:[%s8360_s16 + $0x10] sm:$0xff] %v4669_v26  ;;  %v4667_v46 = vadd.f32 %v8348_v38, %v4628_v31  ;;  %v4631_v49 = vadd.f32 %v4513_v43, %v8244_v55  ;;  %v4505_v42 = vadd.f32 %v5510_v9, %v4504_v1 }
 0x3c9   : > { %v5536_v27 = vpop.f32.mrf.mxu0  ;;  %v5899_v39 = vpop.f32.mrf.mxu1 }
 0x3ca   : > { %4699 = vst [vmem:[%s8360_s16] sm:$0xff] %v4667_v46  ;;  %v4670_v60 = vadd.f32 %v8348_v38, %v4631_v49  ;;  %v4629_v53 = vadd.f32 %v4505_v42, %v8246_v0  ;;  %v4526_v20 = vadd.f32 %v5899_v39, %v5525_v25  ;;  %v5537_v62 = vadd.f32 %v5536_v27, %v5535_v32 }
 0x3cb   : > { %v5538_v61 = vpop.f32.mrf.mxu0  ;;  %v4517_v63 = vpop.f32.mrf.mxu1 }
 0x3cc   : > { %4702 = vst [vmem:[%s8360_s16 + $0x18] sm:$0xff] %v4670_v60  ;;  %v4668_v2 = vadd.f32 %v8348_v38, %v4629_v53  ;;  %v4634_v55 = vadd.f32 %v4526_v20, %v8249_v44  ;;  %v4518_v37 = vadd.f32 %v5519_v47, %v4517_v63 }
 0x3cd   : > { %v5539_v50 = vpop.f32.mrf.mxu0  ;;  %v5900_v30 = vpop.f32.mrf.mxu1 }
 0x3ce   : > { %4700 = vst [vmem:[%s8360_s16 + $0x8] sm:$0xff] %v4668_v2  ;;  %v4673_v0 = vadd.f32 %v8348_v38, %v4634_v55  ;;  %v4632_v54 = vadd.f32 %v4518_v37, %v8251_v35  ;;  %v4529_v41 = vadd.f32 %v5900_v30, %v5528_v8  ;;  %v5540_v32 = vadd.f32 %v5539_v50, %v5538_v61 }
 0x3cf   : > { %v5541_v9 = vpop.f32.mrf.mxu0  ;;  %v4520_v16 = vpop.f32.mrf.mxu1 }
 0x3d0   : > { %4705 = vst [vmem:[%s8360_s16 + $0x30] sm:$0xff] %v4673_v0  ;;  %v4671_v44 = vadd.f32 %v8348_v38, %v4632_v54  ;;  %v4635_v26 = vadd.f32 %v4529_v41, %v8254_v21  ;;  %v4521_v31 = vadd.f32 %v5522_v6, %v4520_v16 }
 0x3d1   : > { %v5542_v43 = vpop.f32.mrf.mxu0  ;;  %v5903_v1 = vpop.f32.mrf.mxu1 }
 0x3d2   : > { %4703 = vst [vmem:[%s8360_s16 + $0x20] sm:$0xff] %v4671_v44  ;;  %v4674_v36 = vadd.f32 %v8348_v38, %v4635_v26  ;;  %v4633_v35 = vadd.f32 %v4521_v31, %v8256_v12  ;;  %v4542_v25 = vadd.f32 %v5903_v1, %v5537_v62  ;;  %v5543_v55 = vadd.f32 %v5542_v43, %v5541_v9 }
 0x3d3   : > { %v5544_v46 = vpop.f32.mrf.mxu0  ;;  %v4533_v49 = vpop.f32.mrf.mxu1 }
 0x3d4   : > { %4706 = vst [vmem:[%s8360_s16 + $0x38] sm:$0xff] %v4674_v36  ;;  %v4672_v42 = vadd.f32 %v8348_v38, %v4633_v35  ;;  %v4638_v21 = vadd.f32 %v4542_v25, %v8259_v3  ;;  %v4534_v27 = vadd.f32 %v5531_v58, %v4533_v49 }
 0x3d5   : > { %v5545_v39 = vpop.f32.mrf.mxu0  ;;  %v5904_v47 = vpop.f32.mrf.mxu1 }
 0x3d6   : > { %4704 = vst [vmem:[%s8360_s16 + $0x28] sm:$0xff] %v4672_v42  ;;  %v4677_v18 = vadd.f32 %v8348_v38, %v4638_v21  ;;  %v4636_v12 = vadd.f32 %v4534_v27, %v8261_v17  ;;  %v4545_v60 = vadd.f32 %v5904_v47, %v5540_v32  ;;  %v5546_v41 = vadd.f32 %v5545_v39, %v5544_v46 }
 0x3d7   : > { %v5547_v53 = vpop.f32.mrf.mxu0  ;;  %v4536_v20 = vpop.f32.mrf.mxu1 }
 0x3d8   : > { %4709 = vst [vmem:[%s8360_s16 + $0x50] sm:$0xff] %v4677_v18  ;;  %v4675_v61 = vadd.f32 %v8348_v38, %v4636_v12  ;;  %v4639_v3 = vadd.f32 %v4545_v60, %v8264_v29  ;;  %v4537_v63 = vadd.f32 %v5534_v45, %v4536_v20 }
 0x3d9   : > { %v5548_v8 = vpop.f32.mrf.mxu0  ;;  %v5907_v2 = vpop.f32.mrf.mxu1 }
 0x3da   : > { %4707 = vst [vmem:[%s8360_s16 + $0x40] sm:$0xff] %v4675_v61  ;;  %v4678_v34 = vadd.f32 %v8348_v38, %v4639_v3  ;;  %v4637_v11 = vadd.f32 %v4537_v63, %v8266_v7  ;;  %v5549_v17 = vadd.f32 %v5548_v8, %v5547_v53 }
 0x3db   : > { %v5550_v37 = vpop.f32.mrf.mxu0  ;;  %v4549_v50 = vpop.f32.mrf.mxu1 }
 0x3dc   : > { %4710 = vst [vmem:[%s8360_s16 + $0x58] sm:$0xff] %v4678_v34  ;;  %v4676_v30 = vadd.f32 %v8348_v38, %v4637_v11  ;;  %v4558_v6 = vadd.f32 %v5907_v2, %v5549_v17  ;;  %v4550_v0 = vadd.f32 %v5543_v55, %v4549_v50 }
 0x3dd   : > { %v5551_v29 = vpop.f32.mrf.mxu0  ;;  %v5908_v54 = vpop.f32.mrf.mxu1 }
 0x3de   : > { %4708 = vst [vmem:[%s8360_s16 + $0x48] sm:$0xff] %v4676_v30  ;;  %v4642_v9 = vadd.f32 %v4558_v6, %v8275_v19  ;;  %v4640_v16 = vadd.f32 %v4550_v0, %v8269_v48  ;;  %v5552_v62 = vadd.f32 %v5551_v29, %v5550_v37 }
 0x3df   : > { %v5553_v7 = vpop.f32.mrf.mxu0  ;;  %v4552_v44 = vpop.f32.mrf.mxu1 }
 0x3e0   : > { %v4681_v26 = vadd.f32 %v8348_v38, %v4642_v9  ;;  %v4679_v31 = vadd.f32 %v8348_v38, %v4640_v16  ;;  %v4561_v43 = vadd.f32 %v5908_v54, %v5552_v62  ;;  %v4553_v1 = vadd.f32 %v5546_v41, %v4552_v44 }
 0x3e1   : > { %v5554_v58 = vpop.f32.mrf.mxu0  ;;  %v5911_v36 = vpop.f32.mrf.mxu1 }
 0x3e2   : > { %4713 = vst [vmem:[%s8360_s16 + $0x70] sm:$0xff] %v4681_v26  ;;  %4711 = vst [vmem:[%s8360_s16 + $0x60] sm:$0xff] %v4679_v31  ;;  %v4643_v35 = vadd.f32 %v4561_v43, %v8278_v23  ;;  %v4641_v19 = vadd.f32 %v4553_v1, %v8273_v5  ;;  %v5555_v48 = vadd.f32 %v5554_v58, %v5553_v7 }
 0x3e3   : > { %v5556_v25 = vpop.f32.mrf.mxu0  ;;  %v4565_v46 = vpop.f32.mrf.mxu1 }
 0x3e4   : > { %v4682_v49 = vadd.f32 %v8348_v38, %v4643_v35  ;;  %v4680_v32 = vadd.f32 %v8348_v38, %v4641_v19  ;;  %v4566_v42 = vadd.f32 %v5555_v48, %v4565_v46 }
 0x3e5   : > { %v5557_v21 = vpop.f32.mrf.mxu0  ;;  %v5912_v27 = vpop.f32.mrf.mxu1 }
 0x3e6   : > { %4714 = vst [vmem:[%s8360_s16 + $0x78] sm:$0xff] %v4682_v49  ;;  %4712 = vst [vmem:[%s8360_s16 + $0x68] sm:$0xff] %v4680_v32  ;;  %v4644_v39 = vadd.f32 %v4566_v42, %v8281_v56  ;;  %v5558_v47 = vadd.f32 %v5557_v21, %v5556_v25 }
 0x3e7   : > { %v5559_v23 = vpop.f32.mrf.mxu0  ;;  %v4568_v45 = vpop.f32.mrf.mxu1 }
 0x3e8   : > { %v4683_v5 = vadd.f32 %v8348_v38, %v4644_v39  ;;  %v4569_v18 = vadd.f32 %v5558_v47, %v4568_v45 }
 0x3e9   : > { %v5560_v12 = vpop.f32.mrf.mxu0  ;;  %v5915_v20 = vpop.f32.mrf.mxu1 }
 0x3ea   : > { %4715 = vst [vmem:[%s8360_s16 + $0x80] sm:$0xff] %v4683_v5  ;;  %v4645_v60 = vadd.f32 %v4569_v18, %v8284_v15  ;;  %v5561_v53 = vadd.f32 %v5560_v12, %v5559_v23 }
 0x3eb   : > { %v5562_v61 = vpop.f32.mrf.mxu0  ;;  %v4581_v55 = vpop.f32.mrf.mxu1 }
 0x3ec   : > { %v4684_v3 = vadd.f32 %v8348_v38, %v4645_v60  ;;  %v4574_v63 = vadd.f32 %v5911_v36, %v5561_v53 }
 0x3ed   : > { %v5563_v8 = vpop.f32.mrf.mxu0  ;;  %v5916_v30 = vpop.f32.mrf.mxu1 }
 0x3ee   : > { %4716 = vst [vmem:[%s8360_s16 + $0x88] sm:$0xff] %v4684_v3  ;;  %v4646_v56 = vadd.f32 %v4574_v63, %v8287_v24  ;;  %v5564_v2 = vadd.f32 %v5563_v8, %v5562_v61 }
 0x3ef   : > { %v5565_v34 = vpop.f32.mrf.mxu0  ;;  %v4584_v9 = vpop.f32.mrf.mxu1 }
 0x3f0   : > { %v4685_v11 = vadd.f32 %v8348_v38, %v4646_v56  ;;  %v4577_v17 = vadd.f32 %v5912_v27, %v5564_v2 }
 0x3f1   : > { %v5566_v37 = vpop.f32.mrf.mxu0  ;;  %v5919_v31 = vpop.f32.mrf.mxu1 }
 0x3f2   : > { %4717 = vst [vmem:[%s8360_s16 + $0x90] sm:$0xff] %v4685_v11  ;;  %v4647_v15 = vadd.f32 %v4577_v17, %v8290_v40  ;;  %v5567_v50 = vadd.f32 %v5566_v37, %v5565_v34 }
 0x3f3   : > { %v5568_v6 = vpop.f32.mrf.mxu0  ;;  %v4597_v19 = vpop.f32.mrf.mxu1 }
 0x3f4   : > { %v4686_v0 = vadd.f32 %v8348_v38, %v4647_v15  ;;  %v4582_v29 = vadd.f32 %v5567_v50, %v4581_v55 }
 0x3f5   : > { %v5569_v54 = vpop.f32.mrf.mxu0  ;;  %v5920_v42 = vpop.f32.mrf.mxu1 }
 0x3f6   : > { %4718 = vst [vmem:[%s8360_s16 + $0x98] sm:$0xff] %v4686_v0  ;;  %v4648_v24 = vadd.f32 %v4582_v29, %v8295_v22  ;;  %v5570_v41 = vadd.f32 %v5569_v54, %v5568_v6 }
 0x3f7   : > { %v5571_v16 = vpop.f32.mrf.mxu0  ;;  %v4600_v45 = vpop.f32.mrf.mxu1 }
 0x3f8   : > { %v4687_v62 = vadd.f32 %v8348_v38, %v4648_v24  ;;  %v4585_v7 = vadd.f32 %v5570_v41, %v4584_v9 }
 0x3f9   : > { %v5572_v44 = vpop.f32.mrf.mxu0 }
 0x3fa   : > { %4719 = vst [vmem:[%s8360_s16 + $0xa0] sm:$0xff] %v4687_v62  ;;  %v4649_v40 = vadd.f32 %v4585_v7, %v8300_v51  ;;  %v5573_v26 = vadd.f32 %v5572_v44, %v5571_v16 }
 0x3fb   : > { %v5574_v43 = vpop.f32.mrf.mxu0 }
 0x3fc   : > { %v4688_v1 = vadd.f32 %v8348_v38, %v4649_v40  ;;  %v4590_v58 = vadd.f32 %v5915_v20, %v5573_v26 }
 0x3fd   : > { %v5575_v36 = vpop.f32.mrf.mxu0 }
 0x3fe   : > { %4720 = vst [vmem:[%s8360_s16 + $0xa8] sm:$0xff] %v4688_v1  ;;  %v4650_v22 = vadd.f32 %v4590_v58, %v8305_v59  ;;  %v5576_v35 = vadd.f32 %v5575_v36, %v5574_v43 }
 0x3ff   : > { %v5577_v48 = vpop.f32.mrf.mxu0 }
 0x400   : > { %v4689_v25 = vadd.f32 %v8348_v38, %v4650_v22  ;;  %v4593_v46 = vadd.f32 %v5916_v30, %v5576_v35 }
 0x401   : > { %v5578_v49 = vpop.f32.mrf.mxu0 }
 0x402   : > { %4721 = vst [vmem:[%s8360_s16 + $0xb0] sm:$0xff] %v4689_v25  ;;  %v4651_v51 = vadd.f32 %v4593_v46, %v8310_v4  ;;  %v5579_v32 = vadd.f32 %v5578_v49, %v5577_v48  ;;  %v5923_v4 = vpop.f32.mrf.mxu1 }
 0x403   : > { %v5580_v21 = vpop.f32.mrf.mxu0 }
 0x404   : > { %v4690_v27 = vadd.f32 %v8348_v38, %v4651_v51  ;;  %v4598_v39 = vadd.f32 %v5579_v32, %v4597_v19 }
 0x405   : > { %v5581_v47 = vpop.f32.mrf.mxu0 }
 0x406   : > { %4722 = vst [vmem:[%s8360_s16 + $0xb8] sm:$0xff] %v4690_v27  ;;  %v4652_v59 = vadd.f32 %v4598_v39, %v8315_v14  ;;  %v5582_v23 = vadd.f32 %v5581_v47, %v5580_v21  ;;  %v4613_v14 = vpop.f32.mrf.mxu1 }
 0x407   : > { %v5583_v5 = vpop.f32.mrf.mxu0 }
 0x408   : > { %v4691_v18 = vadd.f32 %v8348_v38, %v4652_v59  ;;  %v4601_v12 = vadd.f32 %v5582_v23, %v4600_v45  ;;  %v5924_v37 = vpop.f32.mrf.mxu1 }
 0x409   : > { %v5584_v60 = vpop.f32.mrf.mxu0 }
 0x40a   : > { %4723 = vst [vmem:[%s8360_s16 + $0xc0] sm:$0xff] %v4691_v18  ;;  %v4653_v53 = vadd.f32 %v4601_v12, %v8318_v52  ;;  %v5585_v20 = vadd.f32 %v5584_v60, %v5583_v5  ;;  %v8610_v52 = vld [vmem:[#allocation17_spill] sm:$0xff]  ;;  %v4616_v54 = vpop.f32.mrf.mxu1 }
 0x40b   : > { %v5586_v61 = vpop.f32.mrf.mxu0 }
 0x40c   : > { %v4692_v3 = vadd.f32 %v8348_v38, %v4653_v53  ;;  %v4606_v63 = vadd.f32 %v5919_v31, %v5585_v20 }
 0x40d   : > { %v5587_v8 = vpop.f32.mrf.mxu0 }
 0x40e   : > { %4724 = vst [vmem:[%s8360_s16 + $0xc8] sm:$0xff] %v4692_v3  ;;  %v4654_v56 = vadd.f32 %v4606_v63, %v8321_v33  ;;  %v5588_v2 = vadd.f32 %v5587_v8, %v5586_v61 }
 0x40f   : > { %v5589_v55 = vpop.f32.mrf.mxu0 }
 0x410   : > { %v4693_v34 = vadd.f32 %v8348_v38, %v4654_v56  ;;  %v4609_v11 = vadd.f32 %v5920_v42, %v5588_v2 }
 0x411   : > { %v5590_v17 = vpop.f32.mrf.mxu0 }
 0x412   : > { %4725 = vst [vmem:[%s8360_s16 + $0xd0] sm:$0xff] %v4693_v34  ;;  %v4655_v15 = vadd.f32 %v4609_v11, %v8610_v52  ;;  %v5591_v50 = vadd.f32 %v5590_v17, %v5589_v55 }
 0x413   : > { %v5592_v30 = vpop.f32.mrf.mxu0 }
 0x414   : > { %v4694_v6 = vadd.f32 %v8348_v38, %v4655_v15  ;;  %v4614_v0 = vadd.f32 %v5591_v50, %v4613_v14 }
 0x415   : > { %v5593_v29 = vpop.f32.mrf.mxu0 }
 0x416   : > { %4726 = vst [vmem:[%s8360_s16 + $0xd8] sm:$0xff] %v4694_v6  ;;  %v4656_v33 = vadd.f32 %v4614_v0, %v8331_v10  ;;  %v5594_v24 = vadd.f32 %v5593_v29, %v5592_v30 }
 0x417   : > { %v5595_v41 = vpop.f32.mrf.mxu0 }
 0x418   : > { %v4695_v9 = vadd.f32 %v8348_v38, %v4656_v33  ;;  %v4617_v16 = vadd.f32 %v5594_v24, %v4616_v54 }
 0x419   : > { %v5596_v62 = vpop.f32.mrf.mxu0 }
 0x41a   : > { %4727 = vst [vmem:[%s8360_s16 + $0xe0] sm:$0xff] %v4695_v9  ;;  %v4657_v7 = vadd.f32 %v4617_v16, %v8334_v28  ;;  %v5597_v44 = vadd.f32 %v5596_v62, %v5595_v41 }
 0x41b   : > { %v5598_v40 = vpop.f32.mrf.mxu0 }
 0x41c   : > { %v4696_v26 = vadd.f32 %v8348_v38, %v4657_v7  ;;  %v4622_v31 = vadd.f32 %v5923_v4, %v5597_v44 }
 0x41d   : > { %v5599_v10 = vpop.f32.mrf.mxu0 }
 0x41e   : > { %4728 = vst [vmem:[%s8360_s16 + $0xe8] sm:$0xff] %v4696_v26  ;;  %v4658_v43 = vadd.f32 %v4622_v31, %v8339_v57  ;;  %v5600_v1 = vadd.f32 %v5599_v10, %v5598_v40 }
 0x420   : > { %v4697_v58 = vadd.f32 %v8348_v38, %v4658_v43  ;;  %v4625_v36 = vadd.f32 %v5924_v37, %v5600_v1 }
 0x422   : > { %4729 = vst [vmem:[%s8360_s16 + $0xf0] sm:$0xff] %v4697_v58  ;;  %v4659_v28 = vadd.f32 %v4625_v36, %v8353_v13 }
 0x424   : > { %v4698_v57 = vadd.f32 %v8348_v38, %v4659_v28 }
 0x426   : > { %4730 = vst [vmem:[%s8360_s16 + $0xf8] sm:$0xff] %v4698_v57 }
 0x427   : > { %6240 = shalt.err (!%p6237_p3)
}
 0x428   : > { %s6241_s11 = scalar_lea.hbm %s8461_s29, 4096  ;;  %s6245_s14 = scalar_lea.hbm %s8519_s5, 8192 }
 0x429   : > { %p6242_p5 = scmp.ne.s32.totalorder %s8461_s29, %s6241_s11  ;;  %p6246_p9 = scmp.lt.s32.totalorder %s8461_s29, %s8519_s5 }
 0x42a   : > { %p6247_p10 = scmp.lt.s32.totalorder %s6245_s14, %s6241_s11 }
 0x42b   : > { %p6243_p6 = pnand %p6242_p5, %p6388_p4 }
 0x42c   : > { %p6248_p11 = por %p6247_p10, %p6246_p9 }
 0x42d   : > { %p6244_p7 = pneg %p6243_p6 }
 0x42f   : > { %p6249_p12 = pnand %p6248_p11, %p6244_p7 }
 0x431   : > { %6252 = shalt.err (!%p6249_p12)
}
 0x432   : > { %s6316_s17 = smov 128   ;;  %s6317_s25 = smov 8  }
 0x433   : > { %5930 = dma.vmem_to_hbm [thread:$0]  (%p6388_p4), %s8463_s24, 4096, %s8461_s29, %s8469_s7, %s6316_s17, %s6316_s17, %s6317_s25  }
 0x434 PF: > { %p5942_p13 = scmp.ge.s32.totalorder %s6307_s23, 2  ;;  %s4763_s27 = sand.u32 1, %s6287_s18  }
 0x435   : > { %s4764_s21 = scalar_lea.sflag [#allocation5], %s4763_s27 }
 0x436   : > { %p5937_p0 = pnand %p5942_p13, %p6395_p8 }
 0x438   : > { %p5938_p1 = pneg %p5937_p0 }
 0x43a   : > { %6282 = dma.done.wait (%p5938_p1), %s4764_s21, 4096  }
 0x43b   : > { %6284 = vsyncadd (%p5938_p1), %s4764_s21, 4294963200  ;;  %s19_s23 = sadd.s32 1, %s6307_s23   ;;  %s8611_s18 = smov %s6291_s19 }
 0x43c   : > { %p16_p2 = scmp.ge.s32.totalorder %s19_s23, 4   ;;  %s8612_s19 = smov %s6295_s20 }
 0x43d   : > { %s8613_s20 = smov %s6401_s6  ;;  %s8614_s21 = smov %s6303_s22 }
 0x43e   : > { %s8615_s22 = smov %s8617_s26  ;;  %18 = sbr.rel (!%p16_p2) target bundleno = 5 (0x5), region = 89 }
 0x443   :  { %4769 = vsyncpa [#allocation4], 1 }
 0x444   :  { %4771 = vsyncpa [#allocation4 + $0x1], 1 }
 0x445   :  { %4772 = vsyncpa [#allocation5], 1 }
 0x446   :  { %4774 = vsyncpa [#allocation5 + $0x1], 1 }

</bundles_post_ra>
